<compile_context>
chip_gen: v6e
topology: v6e:2x2x1
jax: 0.10.0
libtpu: 0.0.40
codegen_flags: <defaults>
</compile_context>

<pallas_src>
from functools import partial

import numpy as np
import jax
import jax.numpy as jnp
from jax import lax
from jax.experimental import pallas as pl
from jax.experimental.pallas import tpu as pltpu

_HI = lax.Precision.HIGHEST          # used only by the pure-JAX f32 reference
_W_PER_LAYER = 7                     # wr_x, wu_x, wc_x, wr_h, wu_h, wc_h, bias(3,U)


# ----------------------------------------------------------------------------
# Pallas kernel: all DCGRU layers, one batch block, one time step per grid point
# ----------------------------------------------------------------------------
def _make_encoder_kernel(num_layers, K, U, N, B_tile):
    def kernel(x_ref, h0_ref, p_ref, *rest):
        w_refs = rest[: _W_PER_LAYER * num_layers]
        hT_ref = rest[_W_PER_LAYER * num_layers]       # (L, B_tile, N, U) carry across t
        out_ref = rest[_W_PER_LAYER * num_layers + 1]  # (1, B_tile, N, U) per-step output

        t = pl.program_id(1)

        @pl.when(t == 0)
        def _init():
            hT_ref[...] = h0_ref[...]

        if K > 1:
            supports = p_ref[...].astype(jnp.bfloat16)          # (K-1, N, N), resident

        def diffuse(v3):
            """v3: (B_tile, N, F) f32 -> K diffusion terms, each (B_tile*N, F) bf16."""
            F = v3.shape[-1]
            vb = v3.astype(jnp.bfloat16)
            terms = [vb.reshape(B_tile * N, F)]                 # T_0 = I term
            for k in range(K - 1):
                per_b = [jnp.dot(supports[k], vb[b], preferred_element_type=jnp.float32)
                         for b in range(B_tile)]
                tk = jnp.stack(per_b, axis=0).astype(jnp.bfloat16)
                terms.append(tk.reshape(B_tile * N, F))
            return terms

        def gconv(tx, th, wx_ref, wh_ref, bias):
            """sum_k tx[k] @ Wx[k] + th[k] @ Wh[k] + bias   (f32 accumulation)."""
            acc = jnp.dot(tx[0], wx_ref[0], preferred_element_type=jnp.float32)
            acc = acc + jnp.dot(th[0], wh_ref[0], preferred_element_type=jnp.float32)
            for k in range(1, K):
                acc = acc + jnp.dot(tx[k], wx_ref[k], preferred_element_type=jnp.float32)
                acc = acc + jnp.dot(th[k], wh_ref[k], preferred_element_type=jnp.float32)
            return acc + bias

        # diffusion of the layer input, computed ONCE and shared by gate & candidate convs
        tx = diffuse(x_ref[0])                                  # (B_tile, N, D_in)
        hnew3 = None
        for l in range(num_layers):
            base = _W_PER_LAYER * l
            wr_x, wu_x, wc_x = w_refs[base], w_refs[base + 1], w_refs[base + 2]
            wr_h, wu_h, wc_h = w_refs[base + 3], w_refs[base + 4], w_refs[base + 5]
            b_all = w_refs[base + 6][...]                       # (3, U) f32
            b_r, b_u, b_c = b_all[0:1], b_all[1:2], b_all[2:3]

            h3 = hT_ref[l]                                      # (B_tile, N, U) f32
            th = diffuse(h3)

            # gates: element-wise math stays f32 (v5e has no bf16 VPU/EUP path)
            r = jax.nn.sigmoid(gconv(tx, th, wr_x, wr_h, b_r))  # (B_tile*N, U)
            u = jax.nn.sigmoid(gconv(tx, th, wu_x, wu_h, b_u))

            h2 = h3.reshape(B_tile * N, U)                      # leading-dim merge (free)
            trh = diffuse((r * h2).reshape(B_tile, N, U))
            c = jnp.tanh(gconv(tx, trh, wc_x, wc_h, b_c))

            hnew = u * h2 + (1.0 - u) * c                       # (B_tile*N, U) f32
            hnew3 = hnew.reshape(B_tile, N, U)
            hT_ref[l] = hnew3
            if l + 1 < num_layers:
                tx = diffuse(hnew3)      # next layer's input diffusion (hoisted, reused twice)

        out_ref[0] = hnew3               # top-layer output of this time step

    return kernel


def _const_index_map(ndim):
    zeros = (0,) * ndim
    return lambda b, t: zeros


@partial(jax.jit, static_argnames=("num_layers", "K", "U", "N", "D_in", "B_tile"))
def _encoder_pallas(x_seq, hidden, p_stk, params, *, num_layers, K, U, N, D_in, B_tile):
    """x_seq: (T, B, N*D_in), hidden: (L, B, N*U) -> (outputs (T,B,N*U), hidden (L,B,N*U))."""
    T, B = x_seq.shape[0], x_seq.shape[1]
    L = num_layers
    x4 = x_seq.reshape(T, B, N, D_in)           # contiguous HBM reshapes, no transposes
    h4 = hidden.reshape(L, B, N, U)

    Bp = ((B + B_tile - 1) // B_tile) * B_tile
    pad = Bp - B
    if pad:
        x4 = jnp.pad(x4, ((0, 0), (0, pad), (0, 0), (0, 0)))
        h4 = jnp.pad(h4, ((0, 0), (0, pad), (0, 0), (0, 0)))
    grid_b = Bp // B_tile

    # weights / supports are grid-invariant (constant index maps -> DMA'd once, stay resident)
    w_specs = [pl.BlockSpec(w.shape, _const_index_map(w.ndim)) for w in params]

    grid_spec = pltpu.PrefetchScalarGridSpec(
        num_scalar_prefetch=0,
        grid=(grid_b, T),
        in_specs=[pl.BlockSpec((1, B_tile, N, D_in), lambda b, t: (t, b, 0, 0)),
                  pl.BlockSpec((L, B_tile, N, U), lambda b, t: (0, b, 0, 0)),
                  pl.BlockSpec(p_stk.shape, _const_index_map(3))] + w_specs,
        out_specs=[pl.BlockSpec((L, B_tile, N, U), lambda b, t: (0, b, 0, 0)),   # carry
                   pl.BlockSpec((1, B_tile, N, U), lambda b, t: (t, b, 0, 0))],  # per-step out
    )

    hT4, out4 = pl.pallas_call(
        _make_encoder_kernel(L, K, U, N, B_tile),
        out_shape=(jax.ShapeDtypeStruct((L, Bp, N, U), jnp.float32),
                   jax.ShapeDtypeStruct((T, Bp, N, U), jnp.float32)),
        grid_spec=grid_spec,
        compiler_params=pltpu.CompilerParams(
            dimension_semantics=("parallel", "arbitrary")),   # batch parallel, time sequential
    )(x4, h4, p_stk, *params)

    if pad:
        hT4 = hT4[:, :B]
        out4 = out4[:, :B]
    return out4.reshape(T, B, N * U), hT4.reshape(L, B, N * U)


# ----------------------------------------------------------------------------
# Graph preprocessing + deterministic parameter init (host-side glue)
# ----------------------------------------------------------------------------
def calculate_scaled_laplacian(adj_mx):
    adj = np.asarray(adj_mx, dtype=np.float64)
    adj = np.maximum(adj, adj.T)
    d = adj.sum(axis=1)
    d_inv_sqrt = np.where(d > 0, 1.0 / np.sqrt(d), 0.0)
    n = adj.shape[0]
    L = np.eye(n) - d_inv_sqrt[:, None] * adj * d_inv_sqrt[None, :]
    lambda_max = float(np.linalg.eigvalsh(L).max())            # host-side preprocessing only
    return (2.0 / lambda_max) * L - np.eye(n)                  # float64


def chebyshev_supports(P64, K):
    """Host-side float64 Chebyshev recursion; returns T_1..T_{K-1} stacked (f32)."""
    P = np.asarray(P64, np.float64)
    n = P.shape[0]
    if K <= 1:
        return np.zeros((1, n, n), np.float32)                 # dummy, never read in-kernel
    terms = [P]
    tkm2, tkm1 = np.eye(n), P
    for _ in range(2, K):
        tk = 2.0 * P @ tkm1 - tkm2
        terms.append(tk)
        tkm2, tkm1 = tkm1, tk
    return np.stack(terms).astype(np.float32)


def init_cell_flat(key, D, U, K):
    """PyTorch-style flat params: W_ru ((D+U)*K, 2U), b_ru=1.0, W_c ((D+U)*K, U), b_c=0.0."""
    rows = (D + U) * K
    k1, k2 = jax.random.split(key)
    W_ru = jax.random.normal(k1, (rows, 2 * U), jnp.float32) * np.sqrt(2.0 / (rows + 2 * U))
    b_ru = jnp.full((2 * U,), 1.0, jnp.float32)                # bias_start = 1.0 for gates
    W_c = jax.random.normal(k2, (rows, U), jnp.float32) * np.sqrt(2.0 / (rows + U))
    b_c = jnp.zeros((U,), jnp.float32)                         # bias_start = 0.0 for candidate
    return W_ru, b_ru, W_c, b_c


def pack_cell_params(W_ru, b_ru, W_c, b_c, *, D, U, K):
    """Split PyTorch flat rows (index f*K+k) into per-k, per-gate, x/h bf16 slabs + (3,U) bias."""
    F = D + U

    def per_k(W):                                              # (F*K, O) -> (K, F, O)
        O = W.shape[1]
        return jnp.transpose(W.reshape(F, K, O), (1, 0, 2))

    Wru = per_k(W_ru)                                          # (K, F, 2U)
    Wc = per_k(W_c)                                            # (K, F, U)
    wr_x, wu_x = Wru[:, :D, :U], Wru[:, :D, U:]
    wr_h, wu_h = Wru[:, D:, :U], Wru[:, D:, U:]
    wc_x, wc_h = Wc[:, :D, :], Wc[:, D:, :]
    bias = jnp.stack([b_ru[:U], b_ru[U:], b_c], axis=0).astype(jnp.float32)   # (3, U)
    bf = lambda a: a.astype(jnp.bfloat16)
    return [bf(wr_x), bf(wu_x), bf(wc_x), bf(wr_h), bf(wu_h), bf(wc_h), bias]


# ----------------------------------------------------------------------------
# Pure-JAX f32 reference (mirrors the PyTorch DCGRUCell math exactly)
# ----------------------------------------------------------------------------
def _gconv_ref(inputs_flat, state_flat, P, W, b, N, out_size, K):
    B = inputs_flat.shape[0]
    inputs = inputs_flat.reshape(B, N, -1)
    state = state_flat.reshape(B, N, -1)
    xcat = jnp.concatenate([inputs, state], axis=2)
    F = xcat.shape[2]
    x0 = jnp.transpose(xcat, (1, 2, 0)).reshape(N, F * B)
    xs = [x0]
    if K > 1:
        x1 = jnp.dot(P, x0, precision=_HI)
        xs.append(x1)
        xm2, xm1 = x0, x1
        for _ in range(2, K):
            x2 = 2.0 * jnp.dot(P, xm1, precision=_HI) - xm2
            xs.append(x2)
            xm2, xm1 = xm1, x2
    xstk = jnp.stack(xs, axis=0).reshape(K, N, F, B)
    xstk = jnp.transpose(xstk, (3, 1, 2, 0)).reshape(B * N, F * K)
    out = jnp.dot(xstk, W, precision=_HI) + b
    return out.reshape(B, N * out_size)


def _dcgru_cell_ref(x_flat, h_flat, P, W_ru, b_ru, W_c, b_c, N, U, K):
    B = x_flat.shape[0]
    ru = jax.nn.sigmoid(_gconv_ref(x_flat, h_flat, P, W_ru, b_ru, N, 2 * U, K))
    ru = ru.reshape(B, N, 2 * U)
    r = ru[..., :U].reshape(B, N * U)
    u = ru[..., U:].reshape(B, N * U)
    c = jnp.tanh(_gconv_ref(x_flat, r * h_flat, P, W_c, b_c, N, U, K))
    return u * h_flat + (1.0 - u) * c


# ----------------------------------------------------------------------------
# EncoderModel (stack of DCGRU layers), Pallas-backed
# ----------------------------------------------------------------------------
class EncoderModelPallas:
    def __init__(self, adj_mx, key, *, num_nodes, input_dim, rnn_units,
                 num_rnn_layers, max_diffusion_step, seq_len, batch_tile=8):
        self.num_nodes = num_nodes
        self.input_dim = input_dim
        self.rnn_units = rnn_units
        self.num_rnn_layers = num_rnn_layers
        self.hidden_state_size = num_nodes * rnn_units
        self.seq_len = seq_len
        self.batch_tile = batch_tile
        self.K = max_diffusion_step + 1          # filter_type='laplacian' -> 1 support

        P64 = calculate_scaled_laplacian(adj_mx)
        self.P = jnp.asarray(P64, jnp.float32)                         # reference path
        self.P_stk = jnp.asarray(chebyshev_supports(P64, self.K))      # kernel path (f64-derived)

        self.flat_params = []
        packed = []
        for layer in range(num_rnn_layers):
            key, sub = jax.random.split(key)
            D = input_dim if layer == 0 else rnn_units
            flat = init_cell_flat(sub, D, rnn_units, self.K)
            self.flat_params.append(flat)
            packed.extend(pack_cell_params(*flat, D=D, U=rnn_units, K=self.K))
        self.packed_params = tuple(packed)

    def _run(self, x_seq, hidden):
        B = x_seq.shape[1]
        return _encoder_pallas(
            x_seq, hidden, self.P_stk, self.packed_params,
            num_layers=self.num_rnn_layers, K=self.K, U=self.rnn_units,
            N=self.num_nodes, D_in=self.input_dim, B_tile=min(B, self.batch_tile))

    def __call__(self, inputs, hidden_state=None):
        """Single encoder step — matches EncoderModel.forward."""
        B = inputs.shape[0]
        if hidden_state is None:
            hidden_state = jnp.zeros(
                (self.num_rnn_layers, B, self.hidden_state_size), jnp.float32)
        out_seq, hidden_all = self._run(inputs[None], hidden_state)
        return out_seq[0], hidden_all

    def forward_sequence(self, inputs_seq, hidden_state=None):
        """Fused seq_len-step path: one pallas_call over the whole sequence."""
        T, B = inputs_seq.shape[0], inputs_seq.shape[1]
        if hidden_state is None:
            hidden_state = jnp.zeros(
                (self.num_rnn_layers, B, self.hidden_state_size), jnp.float32)
        return self._run(inputs_seq, hidden_state)

    # ---- pure-JAX references ----
    def reference(self, inputs, hidden_state=None):
        B = inputs.shape[0]
        L, N, U = self.num_rnn_layers, self.num_nodes, self.rnn_units
        if hidden_state is None:
            hidden_state = jnp.zeros((L, B, N * U), jnp.float32)
        hidden_states = []
        output = inputs
        for layer in range(L):
            W_ru, b_ru, W_c, b_c = self.flat_params[layer]
            hnew = _dcgru_cell_ref(output, hidden_state[layer], self.P,
                                   W_ru, b_ru, W_c, b_c, N, U, self.K)
            hidden_states.append(hnew)
            output = hnew
        return output, jnp.stack(hidden_states)

    def reference_sequence(self, inputs_seq, hidden_state=None):
        T, B = inputs_seq.shape[0], inputs_seq.shape[1]
        if hidden_state is None:
            hidden_state = jnp.zeros(
                (self.num_rnn_layers, B, self.hidden_state_size), jnp.float32)
        outs = []
        for t in range(T):
            out, hidden_state = self.reference(inputs_seq[t], hidden_state)
            outs.append(out)
        return jnp.stack(outs), hidden_state


# ----------------------------------------------------------------------------
if __name__ == "__main__":
    B, N, D_IN, U, L, MAX_STEP, SEQ_LEN = 2, 16, 2, 32, 2, 2, 8

    key = jax.random.PRNGKey(0)
    k_adj, k_x, k_seq, k_p = jax.random.split(key, 4)

    # writable numpy copy (np.asarray of a jax array is read-only)
    adj = np.asarray(jax.random.uniform(k_adj, (N, N), jnp.float32)).copy()
    np.fill_diagonal(adj, 0.0)

    model = EncoderModelPallas(adj, k_p, num_nodes=N, input_dim=D_IN, rnn_units=U,
                               num_rnn_layers=L, max_diffusion_step=MAX_STEP,
                               seq_len=SEQ_LEN)

    # --- single encoder step (matches EncoderModel.forward) ---
    inputs = jax.random.normal(k_x, (B, N * D_IN), jnp.float32)
    out, hidden = model(inputs)
    out = jax.block_until_ready(out)
    hidden = jax.block_until_ready(hidden)

    out_ref, hidden_ref = model.reference(inputs)
    # kernel runs bf16 weights / single-pass bf16 MXU with f32 accumulate -> relaxed tolerance
    np.testing.assert_allclose(np.asarray(out), np.asarray(out_ref), rtol=3e-2, atol=3e-2)
    np.testing.assert_allclose(np.asarray(hidden), np.asarray(hidden_ref), rtol=3e-2, atol=3e-2)
    assert out.shape == (B, N * U) and hidden.shape == (L, B, N * U)

    # --- fused seq_len-step path (time axis inside ONE pallas_call) ---
    x_seq = jax.random.normal(k_seq, (SEQ_LEN, B, N * D_IN), jnp.float32)
    outs_seq, hidden_T = model.forward_sequence(x_seq)
    outs_seq = jax.block_until_ready(outs_seq)
    hidden_T = jax.block_until_ready(hidden_T)

    outs_ref, hidden_T_ref = model.reference_sequence(x_seq)
    np.testing.assert_allclose(np.asarray(outs_seq), np.asarray(outs_ref), rtol=6e-2, atol=6e-2)
    np.testing.assert_allclose(np.asarray(hidden_T), np.asarray(hidden_T_ref), rtol=6e-2, atol=6e-2)
    assert outs_seq.shape == (SEQ_LEN, B, N * U) and hidden_T.shape == (L, B, N * U)

    print("KERNEL_OK")
</pallas_src>

<mosaic_0001>
module attributes {stable_mosaic.version = 11 : i64} {
  func.func @kernel(%arg0: i32, %arg1: i32, %arg2: memref<1x2x16x2xf32, #tpu.memory_space<vmem>>, %arg3: memref<2x2x16x32xf32, #tpu.memory_space<vmem>>, %arg4: memref<2x16x16xf32, #tpu.memory_space<vmem>>, %arg5: memref<3x2x32xbf16, #tpu.memory_space<vmem>>, %arg6: memref<3x2x32xbf16, #tpu.memory_space<vmem>>, %arg7: memref<3x2x32xbf16, #tpu.memory_space<vmem>>, %arg8: memref<3x32x32xbf16, #tpu.memory_space<vmem>>, %arg9: memref<3x32x32xbf16, #tpu.memory_space<vmem>>, %arg10: memref<3x32x32xbf16, #tpu.memory_space<vmem>>, %arg11: memref<3x32xf32, #tpu.memory_space<vmem>>, %arg12: memref<3x32x32xbf16, #tpu.memory_space<vmem>>, %arg13: memref<3x32x32xbf16, #tpu.memory_space<vmem>>, %arg14: memref<3x32x32xbf16, #tpu.memory_space<vmem>>, %arg15: memref<3x32x32xbf16, #tpu.memory_space<vmem>>, %arg16: memref<3x32x32xbf16, #tpu.memory_space<vmem>>, %arg17: memref<3x32x32xbf16, #tpu.memory_space<vmem>>, %arg18: memref<3x32xf32, #tpu.memory_space<vmem>>, %arg19: memref<2x2x16x32xf32, #tpu.memory_space<vmem>>, %arg20: memref<1x2x16x32xf32, #tpu.memory_space<vmem>>) attributes {dimension_semantics = [#tpu.dimension_semantics<parallel>, #tpu.dimension_semantics<arbitrary>], iteration_bounds = array<i64: 1, 1>, scalar_prefetch = 0 : i64, scratch_operands = 0 : i64, tpu.core_type = #tpu.core_type<tc>, window_params = [{transform_indices = @transform_0, window_bounds = array<i64: 1, 2, 16, 2>}, {transform_indices = @transform_1, window_bounds = array<i64: 2, 2, 16, 32>}, {pipeline_mode = #tpu.pipeline_mode<synchronous>, transform_indices = @transform_2, window_bounds = array<i64: 2, 16, 16>}, {pipeline_mode = #tpu.pipeline_mode<synchronous>, transform_indices = @transform_3, window_bounds = array<i64: 3, 2, 32>}, {pipeline_mode = #tpu.pipeline_mode<synchronous>, transform_indices = @transform_4, window_bounds = array<i64: 3, 2, 32>}, {pipeline_mode = #tpu.pipeline_mode<synchronous>, transform_indices = @transform_5, window_bounds = array<i64: 3, 2, 32>}, {pipeline_mode = #tpu.pipeline_mode<synchronous>, transform_indices = @transform_6, window_bounds = array<i64: 3, 32, 32>}, {pipeline_mode = #tpu.pipeline_mode<synchronous>, transform_indices = @transform_7, window_bounds = array<i64: 3, 32, 32>}, {pipeline_mode = #tpu.pipeline_mode<synchronous>, transform_indices = @transform_8, window_bounds = array<i64: 3, 32, 32>}, {pipeline_mode = #tpu.pipeline_mode<synchronous>, transform_indices = @transform_9, window_bounds = array<i64: 3, 32>}, {pipeline_mode = #tpu.pipeline_mode<synchronous>, transform_indices = @transform_10, window_bounds = array<i64: 3, 32, 32>}, {pipeline_mode = #tpu.pipeline_mode<synchronous>, transform_indices = @transform_11, window_bounds = array<i64: 3, 32, 32>}, {pipeline_mode = #tpu.pipeline_mode<synchronous>, transform_indices = @transform_12, window_bounds = array<i64: 3, 32, 32>}, {pipeline_mode = #tpu.pipeline_mode<synchronous>, transform_indices = @transform_13, window_bounds = array<i64: 3, 32, 32>}, {pipeline_mode = #tpu.pipeline_mode<synchronous>, transform_indices = @transform_14, window_bounds = array<i64: 3, 32, 32>}, {pipeline_mode = #tpu.pipeline_mode<synchronous>, transform_indices = @transform_15, window_bounds = array<i64: 3, 32, 32>}, {pipeline_mode = #tpu.pipeline_mode<synchronous>, transform_indices = @transform_16, window_bounds = array<i64: 3, 32>}, {transform_indices = @transform_17, window_bounds = array<i64: 2, 2, 16, 32>}, {transform_indices = @transform_18, window_bounds = array<i64: 1, 2, 16, 32>}]} {
    %c0_i32 = arith.constant 0 : i32
    %0 = arith.cmpi eq, %arg1, %c0_i32 : i32
    %1 = arith.extui %0 : i1 to i32
    %c0_i32_0 = arith.constant 0 : i32
    %2 = arith.cmpi ne, %1, %c0_i32_0 : i32
    scf.if %2 {
      %c0_202 = arith.constant 0 : index
      %c0_203 = arith.constant 0 : index
      %c0_204 = arith.constant 0 : index
      %c0_205 = arith.constant 0 : index
      %410 = vector.load %arg3[%c0_202, %c0_203, %c0_204, %c0_205] : memref<2x2x16x32xf32, #tpu.memory_space<vmem>>, vector<2x2x16x32xf32>
      %c0_206 = arith.constant 0 : index
      %c0_207 = arith.constant 0 : index
      %c0_208 = arith.constant 0 : index
      %c0_209 = arith.constant 0 : index
      %411 = vector.load %arg19[%c0_206, %c0_207, %c0_208, %c0_209] : memref<2x2x16x32xf32, #tpu.memory_space<vmem>>, vector<2x2x16x32xf32>
      tpu.vector_store %arg19[%c0_206, %c0_207, %c0_208, %c0_209], %410 {strides = array<i32>} : memref<2x2x16x32xf32, #tpu.memory_space<vmem>>, vector<2x2x16x32xf32>,
    } else {
    }
    %c0 = arith.constant 0 : index
    %c0_1 = arith.constant 0 : index
    %c0_2 = arith.constant 0 : index
    %3 = vector.load %arg4[%c0, %c0_1, %c0_2] : memref<2x16x16xf32, #tpu.memory_space<vmem>>, vector<2x16x16xf32>
    %4 = arith.truncf %3 : vector<2x16x16xf32> to vector<2x16x16xbf16>
    %c0_3 = arith.constant 0 : index
    %c0_4 = arith.constant 0 : index
    %c0_5 = arith.constant 0 : index
    %c0_6 = arith.constant 0 : index
    %5 = vector.load %arg2[%c0_3, %c0_4, %c0_5, %c0_6] : memref<1x2x16x2xf32, #tpu.memory_space<vmem>>, vector<1x2x16x2xf32>
    %6 = vector.shape_cast %5 : vector<1x2x16x2xf32> to vector<2x16x2xf32>
    %7 = arith.truncf %6 : vector<2x16x2xf32> to vector<2x16x2xbf16>
    %8 = vector.shape_cast %7 : vector<2x16x2xbf16> to vector<32x2xbf16>
    %9 = vector.extract_strided_slice %4 {offsets = [0, 0, 0], sizes = [1, 16, 16], strides = [1, 1, 1]} : vector<2x16x16xbf16> to vector<1x16x16xbf16>
    %10 = vector.shape_cast %9 : vector<1x16x16xbf16> to vector<16x16xbf16>
    %11 = vector.extract_strided_slice %7 {offsets = [0, 0, 0], sizes = [1, 16, 2], strides = [1, 1, 1]} : vector<2x16x2xbf16> to vector<1x16x2xbf16>
    %12 = vector.shape_cast %11 : vector<1x16x2xbf16> to vector<16x2xbf16>
    %cst = arith.constant dense<0.000000e+00> : vector<16x2xf32>
    %13 = tpu.matmul %10, %12, %cst {dimension_numbers = #tpu.dot_dimension_numbers<[1], [0], [0], [1], [0, 0, 1, 1], [], []>} : vector<16x16xbf16>, vector<16x2xbf16>, vector<16x2xf32> -> vector<16x2xf32>
    %14 = vector.extract_strided_slice %4 {offsets = [0, 0, 0], sizes = [1, 16, 16], strides = [1, 1, 1]} : vector<2x16x16xbf16> to vector<1x16x16xbf16>
    %15 = vector.shape_cast %14 : vector<1x16x16xbf16> to vector<16x16xbf16>
    %16 = vector.extract_strided_slice %7 {offsets = [1, 0, 0], sizes = [1, 16, 2], strides = [1, 1, 1]} : vector<2x16x2xbf16> to vector<1x16x2xbf16>
    %17 = vector.shape_cast %16 : vector<1x16x2xbf16> to vector<16x2xbf16>
    %cst_7 = arith.constant dense<0.000000e+00> : vector<16x2xf32>
    %18 = tpu.matmul %15, %17, %cst_7 {dimension_numbers = #tpu.dot_dimension_numbers<[1], [0], [0], [1], [0, 0, 1, 1], [], []>} : vector<16x16xbf16>, vector<16x2xbf16>, vector<16x2xf32> -> vector<16x2xf32>
    %19 = vector.shape_cast %13 : vector<16x2xf32> to vector<1x16x2xf32>
    %20 = vector.shape_cast %18 : vector<16x2xf32> to vector<1x16x2xf32>
    %21 = tpu.concatenate %19, %20 in 0 : vector<1x16x2xf32>, vector<1x16x2xf32> -> vector<2x16x2xf32>
    %22 = arith.truncf %21 : vector<2x16x2xf32> to vector<2x16x2xbf16>
    %23 = vector.shape_cast %22 : vector<2x16x2xbf16> to vector<32x2xbf16>
    %24 = vector.extract_strided_slice %4 {offsets = [1, 0, 0], sizes = [1, 16, 16], strides = [1, 1, 1]} : vector<2x16x16xbf16> to vector<1x16x16xbf16>
    %25 = vector.shape_cast %24 : vector<1x16x16xbf16> to vector<16x16xbf16>
    %26 = vector.extract_strided_slice %7 {offsets = [0, 0, 0], sizes = [1, 16, 2], strides = [1, 1, 1]} : vector<2x16x2xbf16> to vector<1x16x2xbf16>
    %27 = vector.shape_cast %26 : vector<1x16x2xbf16> to vector<16x2xbf16>
    %cst_8 = arith.constant dense<0.000000e+00> : vector<16x2xf32>
    %28 = tpu.matmul %25, %27, %cst_8 {dimension_numbers = #tpu.dot_dimension_numbers<[1], [0], [0], [1], [0, 0, 1, 1], [], []>} : vector<16x16xbf16>, vector<16x2xbf16>, vector<16x2xf32> -> vector<16x2xf32>
    %29 = vector.extract_strided_slice %4 {offsets = [1, 0, 0], sizes = [1, 16, 16], strides = [1, 1, 1]} : vector<2x16x16xbf16> to vector<1x16x16xbf16>
    %30 = vector.shape_cast %29 : vector<1x16x16xbf16> to vector<16x16xbf16>
    %31 = vector.extract_strided_slice %7 {offsets = [1, 0, 0], sizes = [1, 16, 2], strides = [1, 1, 1]} : vector<2x16x2xbf16> to vector<1x16x2xbf16>
    %32 = vector.shape_cast %31 : vector<1x16x2xbf16> to vector<16x2xbf16>
    %cst_9 = arith.constant dense<0.000000e+00> : vector<16x2xf32>
    %33 = tpu.matmul %30, %32, %cst_9 {dimension_numbers = #tpu.dot_dimension_numbers<[1], [0], [0], [1], [0, 0, 1, 1], [], []>} : vector<16x16xbf16>, vector<16x2xbf16>, vector<16x2xf32> -> vector<16x2xf32>
    %34 = vector.shape_cast %28 : vector<16x2xf32> to vector<1x16x2xf32>
    %35 = vector.shape_cast %33 : vector<16x2xf32> to vector<1x16x2xf32>
    %36 = tpu.concatenate %34, %35 in 0 : vector<1x16x2xf32>, vector<1x16x2xf32> -> vector<2x16x2xf32>
    %37 = arith.truncf %36 : vector<2x16x2xf32> to vector<2x16x2xbf16>
    %38 = vector.shape_cast %37 : vector<2x16x2xbf16> to vector<32x2xbf16>
    %c0_10 = arith.constant 0 : index
    %c0_11 = arith.constant 0 : index
    %39 = vector.load %arg11[%c0_10, %c0_11] : memref<3x32xf32, #tpu.memory_space<vmem>>, vector<3x32xf32>
    %40 = vector.extract_strided_slice %39 {offsets = [0, 0], sizes = [1, 32], strides = [1, 1]} : vector<3x32xf32> to vector<1x32xf32>
    %41 = vector.extract_strided_slice %39 {offsets = [1, 0], sizes = [1, 32], strides = [1, 1]} : vector<3x32xf32> to vector<1x32xf32>
    %42 = vector.extract_strided_slice %39 {offsets = [2, 0], sizes = [1, 32], strides = [1, 1]} : vector<3x32xf32> to vector<1x32xf32>
    %c0_12 = arith.constant 0 : index
    %c0_13 = arith.constant 0 : index
    %c0_14 = arith.constant 0 : index
    %c0_15 = arith.constant 0 : index
    %43 = vector.load %arg19[%c0_12, %c0_13, %c0_14, %c0_15] : memref<2x2x16x32xf32, #tpu.memory_space<vmem>>, vector<1x2x16x32xf32>
    %44 = vector.shape_cast %43 : vector<1x2x16x32xf32> to vector<2x16x32xf32>
    %45 = arith.truncf %44 : vector<2x16x32xf32> to vector<2x16x32xbf16>
    %46 = vector.shape_cast %45 : vector<2x16x32xbf16> to vector<32x32xbf16>
    %47 = vector.extract_strided_slice %4 {offsets = [0, 0, 0], sizes = [1, 16, 16], strides = [1, 1, 1]} : vector<2x16x16xbf16> to vector<1x16x16xbf16>
    %48 = vector.shape_cast %47 : vector<1x16x16xbf16> to vector<16x16xbf16>
    %49 = vector.extract_strided_slice %45 {offsets = [0, 0, 0], sizes = [1, 16, 32], strides = [1, 1, 1]} : vector<2x16x32xbf16> to vector<1x16x32xbf16>
    %50 = vector.shape_cast %49 : vector<1x16x32xbf16> to vector<16x32xbf16>
    %cst_16 = arith.constant dense<0.000000e+00> : vector<16x32xf32>
    %51 = tpu.matmul %48, %50, %cst_16 {dimension_numbers = #tpu.dot_dimension_numbers<[1], [0], [0], [1], [0, 0, 1, 1], [], []>} : vector<16x16xbf16>, vector<16x32xbf16>, vector<16x32xf32> -> vector<16x32xf32>
    %52 = vector.extract_strided_slice %4 {offsets = [0, 0, 0], sizes = [1, 16, 16], strides = [1, 1, 1]} : vector<2x16x16xbf16> to vector<1x16x16xbf16>
    %53 = vector.shape_cast %52 : vector<1x16x16xbf16> to vector<16x16xbf16>
    %54 = vector.extract_strided_slice %45 {offsets = [1, 0, 0], sizes = [1, 16, 32], strides = [1, 1, 1]} : vector<2x16x32xbf16> to vector<1x16x32xbf16>
    %55 = vector.shape_cast %54 : vector<1x16x32xbf16> to vector<16x32xbf16>
    %cst_17 = arith.constant dense<0.000000e+00> : vector<16x32xf32>
    %56 = tpu.matmul %53, %55, %cst_17 {dimension_numbers = #tpu.dot_dimension_numbers<[1], [0], [0], [1], [0, 0, 1, 1], [], []>} : vector<16x16xbf16>, vector<16x32xbf16>, vector<16x32xf32> -> vector<16x32xf32>
    %57 = vector.shape_cast %51 : vector<16x32xf32> to vector<1x16x32xf32>
    %58 = vector.shape_cast %56 : vector<16x32xf32> to vector<1x16x32xf32>
    %59 = tpu.concatenate %57, %58 in 0 : vector<1x16x32xf32>, vector<1x16x32xf32> -> vector<2x16x32xf32>
    %60 = arith.truncf %59 : vector<2x16x32xf32> to vector<2x16x32xbf16>
    %61 = vector.shape_cast %60 : vector<2x16x32xbf16> to vector<32x32xbf16>
    %62 = vector.extract_strided_slice %4 {offsets = [1, 0, 0], sizes = [1, 16, 16], strides = [1, 1, 1]} : vector<2x16x16xbf16> to vector<1x16x16xbf16>
    %63 = vector.shape_cast %62 : vector<1x16x16xbf16> to vector<16x16xbf16>
    %64 = vector.extract_strided_slice %45 {offsets = [0, 0, 0], sizes = [1, 16, 32], strides = [1, 1, 1]} : vector<2x16x32xbf16> to vector<1x16x32xbf16>
    %65 = vector.shape_cast %64 : vector<1x16x32xbf16> to vector<16x32xbf16>
    %cst_18 = arith.constant dense<0.000000e+00> : vector<16x32xf32>
    %66 = tpu.matmul %63, %65, %cst_18 {dimension_numbers = #tpu.dot_dimension_numbers<[1], [0], [0], [1], [0, 0, 1, 1], [], []>} : vector<16x16xbf16>, vector<16x32xbf16>, vector<16x32xf32> -> vector<16x32xf32>
    %67 = vector.extract_strided_slice %4 {offsets = [1, 0, 0], sizes = [1, 16, 16], strides = [1, 1, 1]} : vector<2x16x16xbf16> to vector<1x16x16xbf16>
    %68 = vector.shape_cast %67 : vector<1x16x16xbf16> to vector<16x16xbf16>
    %69 = vector.extract_strided_slice %45 {offsets = [1, 0, 0], sizes = [1, 16, 32], strides = [1, 1, 1]} : vector<2x16x32xbf16> to vector<1x16x32xbf16>
    %70 = vector.shape_cast %69 : vector<1x16x32xbf16> to vector<16x32xbf16>
    %cst_19 = arith.constant dense<0.000000e+00> : vector<16x32xf32>
    %71 = tpu.matmul %68, %70, %cst_19 {dimension_numbers = #tpu.dot_dimension_numbers<[1], [0], [0], [1], [0, 0, 1, 1], [], []>} : vector<16x16xbf16>, vector<16x32xbf16>, vector<16x32xf32> -> vector<16x32xf32>
    %72 = vector.shape_cast %66 : vector<16x32xf32> to vector<1x16x32xf32>
    %73 = vector.shape_cast %71 : vector<16x32xf32> to vector<1x16x32xf32>
    %74 = tpu.concatenate %72, %73 in 0 : vector<1x16x32xf32>, vector<1x16x32xf32> -> vector<2x16x32xf32>
    %75 = arith.truncf %74 : vector<2x16x32xf32> to vector<2x16x32xbf16>
    %76 = vector.shape_cast %75 : vector<2x16x32xbf16> to vector<32x32xbf16>
    %c0_20 = arith.constant 0 : index
    %c0_21 = arith.constant 0 : index
    %c0_22 = arith.constant 0 : index
    %77 = vector.load %arg5[%c0_20, %c0_21, %c0_22] : memref<3x2x32xbf16, #tpu.memory_space<vmem>>, vector<1x2x32xbf16>
    %78 = vector.shape_cast %77 : vector<1x2x32xbf16> to vector<2x32xbf16>
    %cst_23 = arith.constant dense<0.000000e+00> : vector<32x32xf32>
    %79 = tpu.matmul %8, %78, %cst_23 {dimension_numbers = #tpu.dot_dimension_numbers<[1], [0], [0], [1], [0, 0, 1, 1], [], []>} : vector<32x2xbf16>, vector<2x32xbf16>, vector<32x32xf32> -> vector<32x32xf32>
    %c0_24 = arith.constant 0 : index
    %c0_25 = arith.constant 0 : index
    %c0_26 = arith.constant 0 : index
    %80 = vector.load %arg8[%c0_24, %c0_25, %c0_26] : memref<3x32x32xbf16, #tpu.memory_space<vmem>>, vector<1x32x32xbf16>
    %81 = vector.shape_cast %80 : vector<1x32x32xbf16> to vector<32x32xbf16>
    %cst_27 = arith.constant dense<0.000000e+00> : vector<32x32xf32>
    %82 = tpu.matmul %46, %81, %cst_27 {dimension_numbers = #tpu.dot_dimension_numbers<[1], [0], [0], [1], [0, 0, 1, 1], [], []>} : vector<32x32xbf16>, vector<32x32xbf16>, vector<32x32xf32> -> vector<32x32xf32>
    %83 = arith.addf %79, %82 : vector<32x32xf32>
    %c1 = arith.constant 1 : index
    %c0_28 = arith.constant 0 : index
    %c0_29 = arith.constant 0 : index
    %84 = vector.load %arg5[%c1, %c0_28, %c0_29] : memref<3x2x32xbf16, #tpu.memory_space<vmem>>, vector<1x2x32xbf16>
    %85 = vector.shape_cast %84 : vector<1x2x32xbf16> to vector<2x32xbf16>
    %cst_30 = arith.constant dense<0.000000e+00> : vector<32x32xf32>
    %86 = tpu.matmul %23, %85, %cst_30 {dimension_numbers = #tpu.dot_dimension_numbers<[1], [0], [0], [1], [0, 0, 1, 1], [], []>} : vector<32x2xbf16>, vector<2x32xbf16>, vector<32x32xf32> -> vector<32x32xf32>
    %87 = arith.addf %83, %86 : vector<32x32xf32>
    %c1_31 = arith.constant 1 : index
    %c0_32 = arith.constant 0 : index
    %c0_33 = arith.constant 0 : index
    %88 = vector.load %arg8[%c1_31, %c0_32, %c0_33] : memref<3x32x32xbf16, #tpu.memory_space<vmem>>, vector<1x32x32xbf16>
    %89 = vector.shape_cast %88 : vector<1x32x32xbf16> to vector<32x32xbf16>
    %cst_34 = arith.constant dense<0.000000e+00> : vector<32x32xf32>
    %90 = tpu.matmul %61, %89, %cst_34 {dimension_numbers = #tpu.dot_dimension_numbers<[1], [0], [0], [1], [0, 0, 1, 1], [], []>} : vector<32x32xbf16>, vector<32x32xbf16>, vector<32x32xf32> -> vector<32x32xf32>
    %91 = arith.addf %87, %90 : vector<32x32xf32>
    %c2 = arith.constant 2 : index
    %c0_35 = arith.constant 0 : index
    %c0_36 = arith.constant 0 : index
    %92 = vector.load %arg5[%c2, %c0_35, %c0_36] : memref<3x2x32xbf16, #tpu.memory_space<vmem>>, vector<1x2x32xbf16>
    %93 = vector.shape_cast %92 : vector<1x2x32xbf16> to vector<2x32xbf16>
    %cst_37 = arith.constant dense<0.000000e+00> : vector<32x32xf32>
    %94 = tpu.matmul %38, %93, %cst_37 {dimension_numbers = #tpu.dot_dimension_numbers<[1], [0], [0], [1], [0, 0, 1, 1], [], []>} : vector<32x2xbf16>, vector<2x32xbf16>, vector<32x32xf32> -> vector<32x32xf32>
    %95 = arith.addf %91, %94 : vector<32x32xf32>
    %c2_38 = arith.constant 2 : index
    %c0_39 = arith.constant 0 : index
    %c0_40 = arith.constant 0 : index
    %96 = vector.load %arg8[%c2_38, %c0_39, %c0_40] : memref<3x32x32xbf16, #tpu.memory_space<vmem>>, vector<1x32x32xbf16>
    %97 = vector.shape_cast %96 : vector<1x32x32xbf16> to vector<32x32xbf16>
    %cst_41 = arith.constant dense<0.000000e+00> : vector<32x32xf32>
    %98 = tpu.matmul %76, %97, %cst_41 {dimension_numbers = #tpu.dot_dimension_numbers<[1], [0], [0], [1], [0, 0, 1, 1], [], []>} : vector<32x32xbf16>, vector<32x32xbf16>, vector<32x32xf32> -> vector<32x32xf32>
    %99 = arith.addf %95, %98 : vector<32x32xf32>
    %100 = vector.broadcast %40 : vector<1x32xf32> to vector<32x32xf32>
    %101 = arith.addf %99, %100 : vector<32x32xf32>
    %102 = arith.negf %101 : vector<32x32xf32>
    %103 = math.exp %102 : vector<32x32xf32>
    %cst_42 = arith.constant 1.000000e+00 : f32
    %104 = vector.broadcast %cst_42 : f32 to vector<32x32xf32>
    %105 = arith.addf %104, %103 : vector<32x32xf32>
    %106 = arith.divf %104, %105 : vector<32x32xf32>
    %c0_43 = arith.constant 0 : index
    %c0_44 = arith.constant 0 : index
    %c0_45 = arith.constant 0 : index
    %107 = vector.load %arg6[%c0_43, %c0_44, %c0_45] : memref<3x2x32xbf16, #tpu.memory_space<vmem>>, vector<1x2x32xbf16>
    %108 = vector.shape_cast %107 : vector<1x2x32xbf16> to vector<2x32xbf16>
    %cst_46 = arith.constant dense<0.000000e+00> : vector<32x32xf32>
    %109 = tpu.matmul %8, %108, %cst_46 {dimension_numbers = #tpu.dot_dimension_numbers<[1], [0], [0], [1], [0, 0, 1, 1], [], []>} : vector<32x2xbf16>, vector<2x32xbf16>, vector<32x32xf32> -> vector<32x32xf32>
    %c0_47 = arith.constant 0 : index
    %c0_48 = arith.constant 0 : index
    %c0_49 = arith.constant 0 : index
    %110 = vector.load %arg9[%c0_47, %c0_48, %c0_49] : memref<3x32x32xbf16, #tpu.memory_space<vmem>>, vector<1x32x32xbf16>
    %111 = vector.shape_cast %110 : vector<1x32x32xbf16> to vector<32x32xbf16>
    %cst_50 = arith.constant dense<0.000000e+00> : vector<32x32xf32>
    %112 = tpu.matmul %46, %111, %cst_50 {dimension_numbers = #tpu.dot_dimension_numbers<[1], [0], [0], [1], [0, 0, 1, 1], [], []>} : vector<32x32xbf16>, vector<32x32xbf16>, vector<32x32xf32> -> vector<32x32xf32>
    %113 = arith.addf %109, %112 : vector<32x32xf32>
    %c1_51 = arith.constant 1 : index
    %c0_52 = arith.constant 0 : index
    %c0_53 = arith.constant 0 : index
    %114 = vector.load %arg6[%c1_51, %c0_52, %c0_53] : memref<3x2x32xbf16, #tpu.memory_space<vmem>>, vector<1x2x32xbf16>
    %115 = vector.shape_cast %114 : vector<1x2x32xbf16> to vector<2x32xbf16>
    %cst_54 = arith.constant dense<0.000000e+00> : vector<32x32xf32>
    %116 = tpu.matmul %23, %115, %cst_54 {dimension_numbers = #tpu.dot_dimension_numbers<[1], [0], [0], [1], [0, 0, 1, 1], [], []>} : vector<32x2xbf16>, vector<2x32xbf16>, vector<32x32xf32> -> vector<32x32xf32>
    %117 = arith.addf %113, %116 : vector<32x32xf32>
    %c1_55 = arith.constant 1 : index
    %c0_56 = arith.constant 0 : index
    %c0_57 = arith.constant 0 : index
    %118 = vector.load %arg9[%c1_55, %c0_56, %c0_57] : memref<3x32x32xbf16, #tpu.memory_space<vmem>>, vector<1x32x32xbf16>
    %119 = vector.shape_cast %118 : vector<1x32x32xbf16> to vector<32x32xbf16>
    %cst_58 = arith.constant dense<0.000000e+00> : vector<32x32xf32>
    %120 = tpu.matmul %61, %119, %cst_58 {dimension_numbers = #tpu.dot_dimension_numbers<[1], [0], [0], [1], [0, 0, 1, 1], [], []>} : vector<32x32xbf16>, vector<32x32xbf16>, vector<32x32xf32> -> vector<32x32xf32>
    %121 = arith.addf %117, %120 : vector<32x32xf32>
    %c2_59 = arith.constant 2 : index
    %c0_60 = arith.constant 0 : index
    %c0_61 = arith.constant 0 : index
    %122 = vector.load %arg6[%c2_59, %c0_60, %c0_61] : memref<3x2x32xbf16, #tpu.memory_space<vmem>>, vector<1x2x32xbf16>
    %123 = vector.shape_cast %122 : vector<1x2x32xbf16> to vector<2x32xbf16>
    %cst_62 = arith.constant dense<0.000000e+00> : vector<32x32xf32>
    %124 = tpu.matmul %38, %123, %cst_62 {dimension_numbers = #tpu.dot_dimension_numbers<[1], [0], [0], [1], [0, 0, 1, 1], [], []>} : vector<32x2xbf16>, vector<2x32xbf16>, vector<32x32xf32> -> vector<32x32xf32>
    %125 = arith.addf %121, %124 : vector<32x32xf32>
    %c2_63 = arith.constant 2 : index
    %c0_64 = arith.constant 0 : index
    %c0_65 = arith.constant 0 : index
    %126 = vector.load %arg9[%c2_63, %c0_64, %c0_65] : memref<3x32x32xbf16, #tpu.memory_space<vmem>>, vector<1x32x32xbf16>
    %127 = vector.shape_cast %126 : vector<1x32x32xbf16> to vector<32x32xbf16>
    %cst_66 = arith.constant dense<0.000000e+00> : vector<32x32xf32>
    %128 = tpu.matmul %76, %127, %cst_66 {dimension_numbers = #tpu.dot_dimension_numbers<[1], [0], [0], [1], [0, 0, 1, 1], [], []>} : vector<32x32xbf16>, vector<32x32xbf16>, vector<32x32xf32> -> vector<32x32xf32>
    %129 = arith.addf %125, %128 : vector<32x32xf32>
    %130 = vector.broadcast %41 : vector<1x32xf32> to vector<32x32xf32>
    %131 = arith.addf %129, %130 : vector<32x32xf32>
    %132 = arith.negf %131 : vector<32x32xf32>
    %133 = math.exp %132 : vector<32x32xf32>
    %cst_67 = arith.constant 1.000000e+00 : f32
    %134 = vector.broadcast %cst_67 : f32 to vector<32x32xf32>
    %135 = arith.addf %134, %133 : vector<32x32xf32>
    %136 = arith.divf %134, %135 : vector<32x32xf32>
    %137 = vector.shape_cast %44 : vector<2x16x32xf32> to vector<32x32xf32>
    %138 = arith.mulf %106, %137 : vector<32x32xf32>
    %139 = vector.shape_cast %138 : vector<32x32xf32> to vector<2x16x32xf32>
    %140 = arith.truncf %139 : vector<2x16x32xf32> to vector<2x16x32xbf16>
    %141 = vector.shape_cast %140 : vector<2x16x32xbf16> to vector<32x32xbf16>
    %142 = vector.extract_strided_slice %4 {offsets = [0, 0, 0], sizes = [1, 16, 16], strides = [1, 1, 1]} : vector<2x16x16xbf16> to vector<1x16x16xbf16>
    %143 = vector.shape_cast %142 : vector<1x16x16xbf16> to vector<16x16xbf16>
    %144 = vector.extract_strided_slice %140 {offsets = [0, 0, 0], sizes = [1, 16, 32], strides = [1, 1, 1]} : vector<2x16x32xbf16> to vector<1x16x32xbf16>
    %145 = vector.shape_cast %144 : vector<1x16x32xbf16> to vector<16x32xbf16>
    %cst_68 = arith.constant dense<0.000000e+00> : vector<16x32xf32>
    %146 = tpu.matmul %143, %145, %cst_68 {dimension_numbers = #tpu.dot_dimension_numbers<[1], [0], [0], [1], [0, 0, 1, 1], [], []>} : vector<16x16xbf16>, vector<16x32xbf16>, vector<16x32xf32> -> vector<16x32xf32>
    %147 = vector.extract_strided_slice %4 {offsets = [0, 0, 0], sizes = [1, 16, 16], strides = [1, 1, 1]} : vector<2x16x16xbf16> to vector<1x16x16xbf16>
    %148 = vector.shape_cast %147 : vector<1x16x16xbf16> to vector<16x16xbf16>
    %149 = vector.extract_strided_slice %140 {offsets = [1, 0, 0], sizes = [1, 16, 32], strides = [1, 1, 1]} : vector<2x16x32xbf16> to vector<1x16x32xbf16>
    %150 = vector.shape_cast %149 : vector<1x16x32xbf16> to vector<16x32xbf16>
    %cst_69 = arith.constant dense<0.000000e+00> : vector<16x32xf32>
    %151 = tpu.matmul %148, %150, %cst_69 {dimension_numbers = #tpu.dot_dimension_numbers<[1], [0], [0], [1], [0, 0, 1, 1], [], []>} : vector<16x16xbf16>, vector<16x32xbf16>, vector<16x32xf32> -> vector<16x32xf32>
    %152 = vector.shape_cast %146 : vector<16x32xf32> to vector<1x16x32xf32>
    %153 = vector.shape_cast %151 : vector<16x32xf32> to vector<1x16x32xf32>
    %154 = tpu.concatenate %152, %153 in 0 : vector<1x16x32xf32>, vector<1x16x32xf32> -> vector<2x16x32xf32>
    %155 = arith.truncf %154 : vector<2x16x32xf32> to vector<2x16x32xbf16>
    %156 = vector.shape_cast %155 : vector<2x16x32xbf16> to vector<32x32xbf16>
    %157 = vector.extract_strided_slice %4 {offsets = [1, 0, 0], sizes = [1, 16, 16], strides = [1, 1, 1]} : vector<2x16x16xbf16> to vector<1x16x16xbf16>
    %158 = vector.shape_cast %157 : vector<1x16x16xbf16> to vector<16x16xbf16>
    %159 = vector.extract_strided_slice %140 {offsets = [0, 0, 0], sizes = [1, 16, 32], strides = [1, 1, 1]} : vector<2x16x32xbf16> to vector<1x16x32xbf16>
    %160 = vector.shape_cast %159 : vector<1x16x32xbf16> to vector<16x32xbf16>
    %cst_70 = arith.constant dense<0.000000e+00> : vector<16x32xf32>
    %161 = tpu.matmul %158, %160, %cst_70 {dimension_numbers = #tpu.dot_dimension_numbers<[1], [0], [0], [1], [0, 0, 1, 1], [], []>} : vector<16x16xbf16>, vector<16x32xbf16>, vector<16x32xf32> -> vector<16x32xf32>
    %162 = vector.extract_strided_slice %4 {offsets = [1, 0, 0], sizes = [1, 16, 16], strides = [1, 1, 1]} : vector<2x16x16xbf16> to vector<1x16x16xbf16>
    %163 = vector.shape_cast %162 : vector<1x16x16xbf16> to vector<16x16xbf16>
    %164 = vector.extract_strided_slice %140 {offsets = [1, 0, 0], sizes = [1, 16, 32], strides = [1, 1, 1]} : vector<2x16x32xbf16> to vector<1x16x32xbf16>
    %165 = vector.shape_cast %164 : vector<1x16x32xbf16> to vector<16x32xbf16>
    %cst_71 = arith.constant dense<0.000000e+00> : vector<16x32xf32>
    %166 = tpu.matmul %163, %165, %cst_71 {dimension_numbers = #tpu.dot_dimension_numbers<[1], [0], [0], [1], [0, 0, 1, 1], [], []>} : vector<16x16xbf16>, vector<16x32xbf16>, vector<16x32xf32> -> vector<16x32xf32>
    %167 = vector.shape_cast %161 : vector<16x32xf32> to vector<1x16x32xf32>
    %168 = vector.shape_cast %166 : vector<16x32xf32> to vector<1x16x32xf32>
    %169 = tpu.concatenate %167, %168 in 0 : vector<1x16x32xf32>, vector<1x16x32xf32> -> vector<2x16x32xf32>
    %170 = arith.truncf %169 : vector<2x16x32xf32> to vector<2x16x32xbf16>
    %171 = vector.shape_cast %170 : vector<2x16x32xbf16> to vector<32x32xbf16>
    %c0_72 = arith.constant 0 : index
    %c0_73 = arith.constant 0 : index
    %c0_74 = arith.constant 0 : index
    %172 = vector.load %arg7[%c0_72, %c0_73, %c0_74] : memref<3x2x32xbf16, #tpu.memory_space<vmem>>, vector<1x2x32xbf16>
    %173 = vector.shape_cast %172 : vector<1x2x32xbf16> to vector<2x32xbf16>
    %cst_75 = arith.constant dense<0.000000e+00> : vector<32x32xf32>
    %174 = tpu.matmul %8, %173, %cst_75 {dimension_numbers = #tpu.dot_dimension_numbers<[1], [0], [0], [1], [0, 0, 1, 1], [], []>} : vector<32x2xbf16>, vector<2x32xbf16>, vector<32x32xf32> -> vector<32x32xf32>
    %c0_76 = arith.constant 0 : index
    %c0_77 = arith.constant 0 : index
    %c0_78 = arith.constant 0 : index
    %175 = vector.load %arg10[%c0_76, %c0_77, %c0_78] : memref<3x32x32xbf16, #tpu.memory_space<vmem>>, vector<1x32x32xbf16>
    %176 = vector.shape_cast %175 : vector<1x32x32xbf16> to vector<32x32xbf16>
    %cst_79 = arith.constant dense<0.000000e+00> : vector<32x32xf32>
    %177 = tpu.matmul %141, %176, %cst_79 {dimension_numbers = #tpu.dot_dimension_numbers<[1], [0], [0], [1], [0, 0, 1, 1], [], []>} : vector<32x32xbf16>, vector<32x32xbf16>, vector<32x32xf32> -> vector<32x32xf32>
    %178 = arith.addf %174, %177 : vector<32x32xf32>
    %c1_80 = arith.constant 1 : index
    %c0_81 = arith.constant 0 : index
    %c0_82 = arith.constant 0 : index
    %179 = vector.load %arg7[%c1_80, %c0_81, %c0_82] : memref<3x2x32xbf16, #tpu.memory_space<vmem>>, vector<1x2x32xbf16>
    %180 = vector.shape_cast %179 : vector<1x2x32xbf16> to vector<2x32xbf16>
    %cst_83 = arith.constant dense<0.000000e+00> : vector<32x32xf32>
    %181 = tpu.matmul %23, %180, %cst_83 {dimension_numbers = #tpu.dot_dimension_numbers<[1], [0], [0], [1], [0, 0, 1, 1], [], []>} : vector<32x2xbf16>, vector<2x32xbf16>, vector<32x32xf32> -> vector<32x32xf32>
    %182 = arith.addf %178, %181 : vector<32x32xf32>
    %c1_84 = arith.constant 1 : index
    %c0_85 = arith.constant 0 : index
    %c0_86 = arith.constant 0 : index
    %183 = vector.load %arg10[%c1_84, %c0_85, %c0_86] : memref<3x32x32xbf16, #tpu.memory_space<vmem>>, vector<1x32x32xbf16>
    %184 = vector.shape_cast %183 : vector<1x32x32xbf16> to vector<32x32xbf16>
    %cst_87 = arith.constant dense<0.000000e+00> : vector<32x32xf32>
    %185 = tpu.matmul %156, %184, %cst_87 {dimension_numbers = #tpu.dot_dimension_numbers<[1], [0], [0], [1], [0, 0, 1, 1], [], []>} : vector<32x32xbf16>, vector<32x32xbf16>, vector<32x32xf32> -> vector<32x32xf32>
    %186 = arith.addf %182, %185 : vector<32x32xf32>
    %c2_88 = arith.constant 2 : index
    %c0_89 = arith.constant 0 : index
    %c0_90 = arith.constant 0 : index
    %187 = vector.load %arg7[%c2_88, %c0_89, %c0_90] : memref<3x2x32xbf16, #tpu.memory_space<vmem>>, vector<1x2x32xbf16>
    %188 = vector.shape_cast %187 : vector<1x2x32xbf16> to vector<2x32xbf16>
    %cst_91 = arith.constant dense<0.000000e+00> : vector<32x32xf32>
    %189 = tpu.matmul %38, %188, %cst_91 {dimension_numbers = #tpu.dot_dimension_numbers<[1], [0], [0], [1], [0, 0, 1, 1], [], []>} : vector<32x2xbf16>, vector<2x32xbf16>, vector<32x32xf32> -> vector<32x32xf32>
    %190 = arith.addf %186, %189 : vector<32x32xf32>
    %c2_92 = arith.constant 2 : index
    %c0_93 = arith.constant 0 : index
    %c0_94 = arith.constant 0 : index
    %191 = vector.load %arg10[%c2_92, %c0_93, %c0_94] : memref<3x32x32xbf16, #tpu.memory_space<vmem>>, vector<1x32x32xbf16>
    %192 = vector.shape_cast %191 : vector<1x32x32xbf16> to vector<32x32xbf16>
    %cst_95 = arith.constant dense<0.000000e+00> : vector<32x32xf32>
    %193 = tpu.matmul %171, %192, %cst_95 {dimension_numbers = #tpu.dot_dimension_numbers<[1], [0], [0], [1], [0, 0, 1, 1], [], []>} : vector<32x32xbf16>, vector<32x32xbf16>, vector<32x32xf32> -> vector<32x32xf32>
    %194 = arith.addf %190, %193 : vector<32x32xf32>
    %195 = vector.broadcast %42 : vector<1x32xf32> to vector<32x32xf32>
    %196 = arith.addf %194, %195 : vector<32x32xf32>
    %197 = math.tanh %196 : vector<32x32xf32>
    %198 = arith.mulf %136, %137 : vector<32x32xf32>
    %cst_96 = arith.constant 1.000000e+00 : f32
    %199 = vector.broadcast %cst_96 : f32 to vector<32x32xf32>
    %200 = arith.subf %199, %136 : vector<32x32xf32>
    %201 = arith.mulf %200, %197 : vector<32x32xf32>
    %202 = arith.addf %198, %201 : vector<32x32xf32>
    %203 = vector.shape_cast %202 : vector<32x32xf32> to vector<2x16x32xf32>
    %c0_97 = arith.constant 0 : index
    %c0_98 = arith.constant 0 : index
    %c0_99 = arith.constant 0 : index
    %c0_100 = arith.constant 0 : index
    %204 = vector.load %arg19[%c0_97, %c0_98, %c0_99, %c0_100] : memref<2x2x16x32xf32, #tpu.memory_space<vmem>>, vector<1x2x16x32xf32>
    %205 = vector.shape_cast %204 : vector<1x2x16x32xf32> to vector<2x16x32xf32>
    %206 = vector.shape_cast %203 : vector<2x16x32xf32> to vector<1x2x16x32xf32>
    tpu.vector_store %arg19[%c0_97, %c0_98, %c0_99, %c0_100], %206 {strides = array<i32>} : memref<2x2x16x32xf32, #tpu.memory_space<vmem>>, vector<1x2x16x32xf32>,
    %207 = arith.truncf %203 : vector<2x16x32xf32> to vector<2x16x32xbf16>
    %208 = vector.shape_cast %207 : vector<2x16x32xbf16> to vector<32x32xbf16>
    %209 = vector.extract_strided_slice %4 {offsets = [0, 0, 0], sizes = [1, 16, 16], strides = [1, 1, 1]} : vector<2x16x16xbf16> to vector<1x16x16xbf16>
    %210 = vector.shape_cast %209 : vector<1x16x16xbf16> to vector<16x16xbf16>
    %211 = vector.extract_strided_slice %207 {offsets = [0, 0, 0], sizes = [1, 16, 32], strides = [1, 1, 1]} : vector<2x16x32xbf16> to vector<1x16x32xbf16>
    %212 = vector.shape_cast %211 : vector<1x16x32xbf16> to vector<16x32xbf16>
    %cst_101 = arith.constant dense<0.000000e+00> : vector<16x32xf32>
    %213 = tpu.matmul %210, %212, %cst_101 {dimension_numbers = #tpu.dot_dimension_numbers<[1], [0], [0], [1], [0, 0, 1, 1], [], []>} : vector<16x16xbf16>, vector<16x32xbf16>, vector<16x32xf32> -> vector<16x32xf32>
    %214 = vector.extract_strided_slice %4 {offsets = [0, 0, 0], sizes = [1, 16, 16], strides = [1, 1, 1]} : vector<2x16x16xbf16> to vector<1x16x16xbf16>
    %215 = vector.shape_cast %214 : vector<1x16x16xbf16> to vector<16x16xbf16>
    %216 = vector.extract_strided_slice %207 {offsets = [1, 0, 0], sizes = [1, 16, 32], strides = [1, 1, 1]} : vector<2x16x32xbf16> to vector<1x16x32xbf16>
    %217 = vector.shape_cast %216 : vector<1x16x32xbf16> to vector<16x32xbf16>
    %cst_102 = arith.constant dense<0.000000e+00> : vector<16x32xf32>
    %218 = tpu.matmul %215, %217, %cst_102 {dimension_numbers = #tpu.dot_dimension_numbers<[1], [0], [0], [1], [0, 0, 1, 1], [], []>} : vector<16x16xbf16>, vector<16x32xbf16>, vector<16x32xf32> -> vector<16x32xf32>
    %219 = vector.shape_cast %213 : vector<16x32xf32> to vector<1x16x32xf32>
    %220 = vector.shape_cast %218 : vector<16x32xf32> to vector<1x16x32xf32>
    %221 = tpu.concatenate %219, %220 in 0 : vector<1x16x32xf32>, vector<1x16x32xf32> -> vector<2x16x32xf32>
    %222 = arith.truncf %221 : vector<2x16x32xf32> to vector<2x16x32xbf16>
    %223 = vector.shape_cast %222 : vector<2x16x32xbf16> to vector<32x32xbf16>
    %224 = vector.extract_strided_slice %4 {offsets = [1, 0, 0], sizes = [1, 16, 16], strides = [1, 1, 1]} : vector<2x16x16xbf16> to vector<1x16x16xbf16>
    %225 = vector.shape_cast %224 : vector<1x16x16xbf16> to vector<16x16xbf16>
    %226 = vector.extract_strided_slice %207 {offsets = [0, 0, 0], sizes = [1, 16, 32], strides = [1, 1, 1]} : vector<2x16x32xbf16> to vector<1x16x32xbf16>
    %227 = vector.shape_cast %226 : vector<1x16x32xbf16> to vector<16x32xbf16>
    %cst_103 = arith.constant dense<0.000000e+00> : vector<16x32xf32>
    %228 = tpu.matmul %225, %227, %cst_103 {dimension_numbers = #tpu.dot_dimension_numbers<[1], [0], [0], [1], [0, 0, 1, 1], [], []>} : vector<16x16xbf16>, vector<16x32xbf16>, vector<16x32xf32> -> vector<16x32xf32>
    %229 = vector.extract_strided_slice %4 {offsets = [1, 0, 0], sizes = [1, 16, 16], strides = [1, 1, 1]} : vector<2x16x16xbf16> to vector<1x16x16xbf16>
    %230 = vector.shape_cast %229 : vector<1x16x16xbf16> to vector<16x16xbf16>
    %231 = vector.extract_strided_slice %207 {offsets = [1, 0, 0], sizes = [1, 16, 32], strides = [1, 1, 1]} : vector<2x16x32xbf16> to vector<1x16x32xbf16>
    %232 = vector.shape_cast %231 : vector<1x16x32xbf16> to vector<16x32xbf16>
    %cst_104 = arith.constant dense<0.000000e+00> : vector<16x32xf32>
    %233 = tpu.matmul %230, %232, %cst_104 {dimension_numbers = #tpu.dot_dimension_numbers<[1], [0], [0], [1], [0, 0, 1, 1], [], []>} : vector<16x16xbf16>, vector<16x32xbf16>, vector<16x32xf32> -> vector<16x32xf32>
    %234 = vector.shape_cast %228 : vector<16x32xf32> to vector<1x16x32xf32>
    %235 = vector.shape_cast %233 : vector<16x32xf32> to vector<1x16x32xf32>
    %236 = tpu.concatenate %234, %235 in 0 : vector<1x16x32xf32>, vector<1x16x32xf32> -> vector<2x16x32xf32>
    %237 = arith.truncf %236 : vector<2x16x32xf32> to vector<2x16x32xbf16>
    %238 = vector.shape_cast %237 : vector<2x16x32xbf16> to vector<32x32xbf16>
    %c0_105 = arith.constant 0 : index
    %c0_106 = arith.constant 0 : index
    %239 = vector.load %arg18[%c0_105, %c0_106] : memref<3x32xf32, #tpu.memory_space<vmem>>, vector<3x32xf32>
    %240 = vector.extract_strided_slice %239 {offsets = [0, 0], sizes = [1, 32], strides = [1, 1]} : vector<3x32xf32> to vector<1x32xf32>
    %241 = vector.extract_strided_slice %239 {offsets = [1, 0], sizes = [1, 32], strides = [1, 1]} : vector<3x32xf32> to vector<1x32xf32>
    %242 = vector.extract_strided_slice %239 {offsets = [2, 0], sizes = [1, 32], strides = [1, 1]} : vector<3x32xf32> to vector<1x32xf32>
    %c1_107 = arith.constant 1 : index
    %c0_108 = arith.constant 0 : index
    %c0_109 = arith.constant 0 : index
    %c0_110 = arith.constant 0 : index
    %243 = vector.load %arg19[%c1_107, %c0_108, %c0_109, %c0_110] : memref<2x2x16x32xf32, #tpu.memory_space<vmem>>, vector<1x2x16x32xf32>
    %244 = vector.shape_cast %243 : vector<1x2x16x32xf32> to vector<2x16x32xf32>
    %245 = arith.truncf %244 : vector<2x16x32xf32> to vector<2x16x32xbf16>
    %246 = vector.shape_cast %245 : vector<2x16x32xbf16> to vector<32x32xbf16>
    %247 = vector.extract_strided_slice %4 {offsets = [0, 0, 0], sizes = [1, 16, 16], strides = [1, 1, 1]} : vector<2x16x16xbf16> to vector<1x16x16xbf16>
    %248 = vector.shape_cast %247 : vector<1x16x16xbf16> to vector<16x16xbf16>
    %249 = vector.extract_strided_slice %245 {offsets = [0, 0, 0], sizes = [1, 16, 32], strides = [1, 1, 1]} : vector<2x16x32xbf16> to vector<1x16x32xbf16>
    %250 = vector.shape_cast %249 : vector<1x16x32xbf16> to vector<16x32xbf16>
    %cst_111 = arith.constant dense<0.000000e+00> : vector<16x32xf32>
    %251 = tpu.matmul %248, %250, %cst_111 {dimension_numbers = #tpu.dot_dimension_numbers<[1], [0], [0], [1], [0, 0, 1, 1], [], []>} : vector<16x16xbf16>, vector<16x32xbf16>, vector<16x32xf32> -> vector<16x32xf32>
    %252 = vector.extract_strided_slice %4 {offsets = [0, 0, 0], sizes = [1, 16, 16], strides = [1, 1, 1]} : vector<2x16x16xbf16> to vector<1x16x16xbf16>
    %253 = vector.shape_cast %252 : vector<1x16x16xbf16> to vector<16x16xbf16>
    %254 = vector.extract_strided_slice %245 {offsets = [1, 0, 0], sizes = [1, 16, 32], strides = [1, 1, 1]} : vector<2x16x32xbf16> to vector<1x16x32xbf16>
    %255 = vector.shape_cast %254 : vector<1x16x32xbf16> to vector<16x32xbf16>
    %cst_112 = arith.constant dense<0.000000e+00> : vector<16x32xf32>
    %256 = tpu.matmul %253, %255, %cst_112 {dimension_numbers = #tpu.dot_dimension_numbers<[1], [0], [0], [1], [0, 0, 1, 1], [], []>} : vector<16x16xbf16>, vector<16x32xbf16>, vector<16x32xf32> -> vector<16x32xf32>
    %257 = vector.shape_cast %251 : vector<16x32xf32> to vector<1x16x32xf32>
    %258 = vector.shape_cast %256 : vector<16x32xf32> to vector<1x16x32xf32>
    %259 = tpu.concatenate %257, %258 in 0 : vector<1x16x32xf32>, vector<1x16x32xf32> -> vector<2x16x32xf32>
    %260 = arith.truncf %259 : vector<2x16x32xf32> to vector<2x16x32xbf16>
    %261 = vector.shape_cast %260 : vector<2x16x32xbf16> to vector<32x32xbf16>
    %262 = vector.extract_strided_slice %4 {offsets = [1, 0, 0], sizes = [1, 16, 16], strides = [1, 1, 1]} : vector<2x16x16xbf16> to vector<1x16x16xbf16>
    %263 = vector.shape_cast %262 : vector<1x16x16xbf16> to vector<16x16xbf16>
    %264 = vector.extract_strided_slice %245 {offsets = [0, 0, 0], sizes = [1, 16, 32], strides = [1, 1, 1]} : vector<2x16x32xbf16> to vector<1x16x32xbf16>
    %265 = vector.shape_cast %264 : vector<1x16x32xbf16> to vector<16x32xbf16>
    %cst_113 = arith.constant dense<0.000000e+00> : vector<16x32xf32>
    %266 = tpu.matmul %263, %265, %cst_113 {dimension_numbers = #tpu.dot_dimension_numbers<[1], [0], [0], [1], [0, 0, 1, 1], [], []>} : vector<16x16xbf16>, vector<16x32xbf16>, vector<16x32xf32> -> vector<16x32xf32>
    %267 = vector.extract_strided_slice %4 {offsets = [1, 0, 0], sizes = [1, 16, 16], strides = [1, 1, 1]} : vector<2x16x16xbf16> to vector<1x16x16xbf16>
    %268 = vector.shape_cast %267 : vector<1x16x16xbf16> to vector<16x16xbf16>
    %269 = vector.extract_strided_slice %245 {offsets = [1, 0, 0], sizes = [1, 16, 32], strides = [1, 1, 1]} : vector<2x16x32xbf16> to vector<1x16x32xbf16>
    %270 = vector.shape_cast %269 : vector<1x16x32xbf16> to vector<16x32xbf16>
    %cst_114 = arith.constant dense<0.000000e+00> : vector<16x32xf32>
    %271 = tpu.matmul %268, %270, %cst_114 {dimension_numbers = #tpu.dot_dimension_numbers<[1], [0], [0], [1], [0, 0, 1, 1], [], []>} : vector<16x16xbf16>, vector<16x32xbf16>, vector<16x32xf32> -> vector<16x32xf32>
    %272 = vector.shape_cast %266 : vector<16x32xf32> to vector<1x16x32xf32>
    %273 = vector.shape_cast %271 : vector<16x32xf32> to vector<1x16x32xf32>
    %274 = tpu.concatenate %272, %273 in 0 : vector<1x16x32xf32>, vector<1x16x32xf32> -> vector<2x16x32xf32>
    %275 = arith.truncf %274 : vector<2x16x32xf32> to vector<2x16x32xbf16>
    %276 = vector.shape_cast %275 : vector<2x16x32xbf16> to vector<32x32xbf16>
    %c0_115 = arith.constant 0 : index
    %c0_116 = arith.constant 0 : index
    %c0_117 = arith.constant 0 : index
    %277 = vector.load %arg12[%c0_115, %c0_116, %c0_117] : memref<3x32x32xbf16, #tpu.memory_space<vmem>>, vector<1x32x32xbf16>
    %278 = vector.shape_cast %277 : vector<1x32x32xbf16> to vector<32x32xbf16>
    %cst_118 = arith.constant dense<0.000000e+00> : vector<32x32xf32>
    %279 = tpu.matmul %208, %278, %cst_118 {dimension_numbers = #tpu.dot_dimension_numbers<[1], [0], [0], [1], [0, 0, 1, 1], [], []>} : vector<32x32xbf16>, vector<32x32xbf16>, vector<32x32xf32> -> vector<32x32xf32>
    %c0_119 = arith.constant 0 : index
    %c0_120 = arith.constant 0 : index
    %c0_121 = arith.constant 0 : index
    %280 = vector.load %arg15[%c0_119, %c0_120, %c0_121] : memref<3x32x32xbf16, #tpu.memory_space<vmem>>, vector<1x32x32xbf16>
    %281 = vector.shape_cast %280 : vector<1x32x32xbf16> to vector<32x32xbf16>
    %cst_122 = arith.constant dense<0.000000e+00> : vector<32x32xf32>
    %282 = tpu.matmul %246, %281, %cst_122 {dimension_numbers = #tpu.dot_dimension_numbers<[1], [0], [0], [1], [0, 0, 1, 1], [], []>} : vector<32x32xbf16>, vector<32x32xbf16>, vector<32x32xf32> -> vector<32x32xf32>
    %283 = arith.addf %279, %282 : vector<32x32xf32>
    %c1_123 = arith.constant 1 : index
    %c0_124 = arith.constant 0 : index
    %c0_125 = arith.constant 0 : index
    %284 = vector.load %arg12[%c1_123, %c0_124, %c0_125] : memref<3x32x32xbf16, #tpu.memory_space<vmem>>, vector<1x32x32xbf16>
    %285 = vector.shape_cast %284 : vector<1x32x32xbf16> to vector<32x32xbf16>
    %cst_126 = arith.constant dense<0.000000e+00> : vector<32x32xf32>
    %286 = tpu.matmul %223, %285, %cst_126 {dimension_numbers = #tpu.dot_dimension_numbers<[1], [0], [0], [1], [0, 0, 1, 1], [], []>} : vector<32x32xbf16>, vector<32x32xbf16>, vector<32x32xf32> -> vector<32x32xf32>
    %287 = arith.addf %283, %286 : vector<32x32xf32>
    %c1_127 = arith.constant 1 : index
    %c0_128 = arith.constant 0 : index
    %c0_129 = arith.constant 0 : index
    %288 = vector.load %arg15[%c1_127, %c0_128, %c0_129] : memref<3x32x32xbf16, #tpu.memory_space<vmem>>, vector<1x32x32xbf16>
    %289 = vector.shape_cast %288 : vector<1x32x32xbf16> to vector<32x32xbf16>
    %cst_130 = arith.constant dense<0.000000e+00> : vector<32x32xf32>
    %290 = tpu.matmul %261, %289, %cst_130 {dimension_numbers = #tpu.dot_dimension_numbers<[1], [0], [0], [1], [0, 0, 1, 1], [], []>} : vector<32x32xbf16>, vector<32x32xbf16>, vector<32x32xf32> -> vector<32x32xf32>
    %291 = arith.addf %287, %290 : vector<32x32xf32>
    %c2_131 = arith.constant 2 : index
    %c0_132 = arith.constant 0 : index
    %c0_133 = arith.constant 0 : index
    %292 = vector.load %arg12[%c2_131, %c0_132, %c0_133] : memref<3x32x32xbf16, #tpu.memory_space<vmem>>, vector<1x32x32xbf16>
    %293 = vector.shape_cast %292 : vector<1x32x32xbf16> to vector<32x32xbf16>
    %cst_134 = arith.constant dense<0.000000e+00> : vector<32x32xf32>
    %294 = tpu.matmul %238, %293, %cst_134 {dimension_numbers = #tpu.dot_dimension_numbers<[1], [0], [0], [1], [0, 0, 1, 1], [], []>} : vector<32x32xbf16>, vector<32x32xbf16>, vector<32x32xf32> -> vector<32x32xf32>
    %295 = arith.addf %291, %294 : vector<32x32xf32>
    %c2_135 = arith.constant 2 : index
    %c0_136 = arith.constant 0 : index
    %c0_137 = arith.constant 0 : index
    %296 = vector.load %arg15[%c2_135, %c0_136, %c0_137] : memref<3x32x32xbf16, #tpu.memory_space<vmem>>, vector<1x32x32xbf16>
    %297 = vector.shape_cast %296 : vector<1x32x32xbf16> to vector<32x32xbf16>
    %cst_138 = arith.constant dense<0.000000e+00> : vector<32x32xf32>
    %298 = tpu.matmul %276, %297, %cst_138 {dimension_numbers = #tpu.dot_dimension_numbers<[1], [0], [0], [1], [0, 0, 1, 1], [], []>} : vector<32x32xbf16>, vector<32x32xbf16>, vector<32x32xf32> -> vector<32x32xf32>
    %299 = arith.addf %295, %298 : vector<32x32xf32>
    %300 = vector.broadcast %240 : vector<1x32xf32> to vector<32x32xf32>
    %301 = arith.addf %299, %300 : vector<32x32xf32>
    %302 = arith.negf %301 : vector<32x32xf32>
    %303 = math.exp %302 : vector<32x32xf32>
    %cst_139 = arith.constant 1.000000e+00 : f32
    %304 = vector.broadcast %cst_139 : f32 to vector<32x32xf32>
    %305 = arith.addf %304, %303 : vector<32x32xf32>
    %306 = arith.divf %304, %305 : vector<32x32xf32>
    %c0_140 = arith.constant 0 : index
    %c0_141 = arith.constant 0 : index
    %c0_142 = arith.constant 0 : index
    %307 = vector.load %arg13[%c0_140, %c0_141, %c0_142] : memref<3x32x32xbf16, #tpu.memory_space<vmem>>, vector<1x32x32xbf16>
    %308 = vector.shape_cast %307 : vector<1x32x32xbf16> to vector<32x32xbf16>
    %cst_143 = arith.constant dense<0.000000e+00> : vector<32x32xf32>
    %309 = tpu.matmul %208, %308, %cst_143 {dimension_numbers = #tpu.dot_dimension_numbers<[1], [0], [0], [1], [0, 0, 1, 1], [], []>} : vector<32x32xbf16>, vector<32x32xbf16>, vector<32x32xf32> -> vector<32x32xf32>
    %c0_144 = arith.constant 0 : index
    %c0_145 = arith.constant 0 : index
    %c0_146 = arith.constant 0 : index
    %310 = vector.load %arg16[%c0_144, %c0_145, %c0_146] : memref<3x32x32xbf16, #tpu.memory_space<vmem>>, vector<1x32x32xbf16>
    %311 = vector.shape_cast %310 : vector<1x32x32xbf16> to vector<32x32xbf16>
    %cst_147 = arith.constant dense<0.000000e+00> : vector<32x32xf32>
    %312 = tpu.matmul %246, %311, %cst_147 {dimension_numbers = #tpu.dot_dimension_numbers<[1], [0], [0], [1], [0, 0, 1, 1], [], []>} : vector<32x32xbf16>, vector<32x32xbf16>, vector<32x32xf32> -> vector<32x32xf32>
    %313 = arith.addf %309, %312 : vector<32x32xf32>
    %c1_148 = arith.constant 1 : index
    %c0_149 = arith.constant 0 : index
    %c0_150 = arith.constant 0 : index
    %314 = vector.load %arg13[%c1_148, %c0_149, %c0_150] : memref<3x32x32xbf16, #tpu.memory_space<vmem>>, vector<1x32x32xbf16>
    %315 = vector.shape_cast %314 : vector<1x32x32xbf16> to vector<32x32xbf16>
    %cst_151 = arith.constant dense<0.000000e+00> : vector<32x32xf32>
    %316 = tpu.matmul %223, %315, %cst_151 {dimension_numbers = #tpu.dot_dimension_numbers<[1], [0], [0], [1], [0, 0, 1, 1], [], []>} : vector<32x32xbf16>, vector<32x32xbf16>, vector<32x32xf32> -> vector<32x32xf32>
    %317 = arith.addf %313, %316 : vector<32x32xf32>
    %c1_152 = arith.constant 1 : index
    %c0_153 = arith.constant 0 : index
    %c0_154 = arith.constant 0 : index
    %318 = vector.load %arg16[%c1_152, %c0_153, %c0_154] : memref<3x32x32xbf16, #tpu.memory_space<vmem>>, vector<1x32x32xbf16>
    %319 = vector.shape_cast %318 : vector<1x32x32xbf16> to vector<32x32xbf16>
    %cst_155 = arith.constant dense<0.000000e+00> : vector<32x32xf32>
    %320 = tpu.matmul %261, %319, %cst_155 {dimension_numbers = #tpu.dot_dimension_numbers<[1], [0], [0], [1], [0, 0, 1, 1], [], []>} : vector<32x32xbf16>, vector<32x32xbf16>, vector<32x32xf32> -> vector<32x32xf32>
    %321 = arith.addf %317, %320 : vector<32x32xf32>
    %c2_156 = arith.constant 2 : index
    %c0_157 = arith.constant 0 : index
    %c0_158 = arith.constant 0 : index
    %322 = vector.load %arg13[%c2_156, %c0_157, %c0_158] : memref<3x32x32xbf16, #tpu.memory_space<vmem>>, vector<1x32x32xbf16>
    %323 = vector.shape_cast %322 : vector<1x32x32xbf16> to vector<32x32xbf16>
    %cst_159 = arith.constant dense<0.000000e+00> : vector<32x32xf32>
    %324 = tpu.matmul %238, %323, %cst_159 {dimension_numbers = #tpu.dot_dimension_numbers<[1], [0], [0], [1], [0, 0, 1, 1], [], []>} : vector<32x32xbf16>, vector<32x32xbf16>, vector<32x32xf32> -> vector<32x32xf32>
    %325 = arith.addf %321, %324 : vector<32x32xf32>
    %c2_160 = arith.constant 2 : index
    %c0_161 = arith.constant 0 : index
    %c0_162 = arith.constant 0 : index
    %326 = vector.load %arg16[%c2_160, %c0_161, %c0_162] : memref<3x32x32xbf16, #tpu.memory_space<vmem>>, vector<1x32x32xbf16>
    %327 = vector.shape_cast %326 : vector<1x32x32xbf16> to vector<32x32xbf16>
    %cst_163 = arith.constant dense<0.000000e+00> : vector<32x32xf32>
    %328 = tpu.matmul %276, %327, %cst_163 {dimension_numbers = #tpu.dot_dimension_numbers<[1], [0], [0], [1], [0, 0, 1, 1], [], []>} : vector<32x32xbf16>, vector<32x32xbf16>, vector<32x32xf32> -> vector<32x32xf32>
    %329 = arith.addf %325, %328 : vector<32x32xf32>
    %330 = vector.broadcast %241 : vector<1x32xf32> to vector<32x32xf32>
    %331 = arith.addf %329, %330 : vector<32x32xf32>
    %332 = arith.negf %331 : vector<32x32xf32>
    %333 = math.exp %332 : vector<32x32xf32>
    %cst_164 = arith.constant 1.000000e+00 : f32
    %334 = vector.broadcast %cst_164 : f32 to vector<32x32xf32>
    %335 = arith.addf %334, %333 : vector<32x32xf32>
    %336 = arith.divf %334, %335 : vector<32x32xf32>
    %337 = vector.shape_cast %244 : vector<2x16x32xf32> to vector<32x32xf32>
    %338 = arith.mulf %306, %337 : vector<32x32xf32>
    %339 = vector.shape_cast %338 : vector<32x32xf32> to vector<2x16x32xf32>
    %340 = arith.truncf %339 : vector<2x16x32xf32> to vector<2x16x32xbf16>
    %341 = vector.shape_cast %340 : vector<2x16x32xbf16> to vector<32x32xbf16>
    %342 = vector.extract_strided_slice %4 {offsets = [0, 0, 0], sizes = [1, 16, 16], strides = [1, 1, 1]} : vector<2x16x16xbf16> to vector<1x16x16xbf16>
    %343 = vector.shape_cast %342 : vector<1x16x16xbf16> to vector<16x16xbf16>
    %344 = vector.extract_strided_slice %340 {offsets = [0, 0, 0], sizes = [1, 16, 32], strides = [1, 1, 1]} : vector<2x16x32xbf16> to vector<1x16x32xbf16>
    %345 = vector.shape_cast %344 : vector<1x16x32xbf16> to vector<16x32xbf16>
    %cst_165 = arith.constant dense<0.000000e+00> : vector<16x32xf32>
    %346 = tpu.matmul %343, %345, %cst_165 {dimension_numbers = #tpu.dot_dimension_numbers<[1], [0], [0], [1], [0, 0, 1, 1], [], []>} : vector<16x16xbf16>, vector<16x32xbf16>, vector<16x32xf32> -> vector<16x32xf32>
    %347 = vector.extract_strided_slice %4 {offsets = [0, 0, 0], sizes = [1, 16, 16], strides = [1, 1, 1]} : vector<2x16x16xbf16> to vector<1x16x16xbf16>
    %348 = vector.shape_cast %347 : vector<1x16x16xbf16> to vector<16x16xbf16>
    %349 = vector.extract_strided_slice %340 {offsets = [1, 0, 0], sizes = [1, 16, 32], strides = [1, 1, 1]} : vector<2x16x32xbf16> to vector<1x16x32xbf16>
    %350 = vector.shape_cast %349 : vector<1x16x32xbf16> to vector<16x32xbf16>
    %cst_166 = arith.constant dense<0.000000e+00> : vector<16x32xf32>
    %351 = tpu.matmul %348, %350, %cst_166 {dimension_numbers = #tpu.dot_dimension_numbers<[1], [0], [0], [1], [0, 0, 1, 1], [], []>} : vector<16x16xbf16>, vector<16x32xbf16>, vector<16x32xf32> -> vector<16x32xf32>
    %352 = vector.shape_cast %346 : vector<16x32xf32> to vector<1x16x32xf32>
    %353 = vector.shape_cast %351 : vector<16x32xf32> to vector<1x16x32xf32>
    %354 = tpu.concatenate %352, %353 in 0 : vector<1x16x32xf32>, vector<1x16x32xf32> -> vector<2x16x32xf32>
    %355 = arith.truncf %354 : vector<2x16x32xf32> to vector<2x16x32xbf16>
    %356 = vector.shape_cast %355 : vector<2x16x32xbf16> to vector<32x32xbf16>
    %357 = vector.extract_strided_slice %4 {offsets = [1, 0, 0], sizes = [1, 16, 16], strides = [1, 1, 1]} : vector<2x16x16xbf16> to vector<1x16x16xbf16>
    %358 = vector.shape_cast %357 : vector<1x16x16xbf16> to vector<16x16xbf16>
    %359 = vector.extract_strided_slice %340 {offsets = [0, 0, 0], sizes = [1, 16, 32], strides = [1, 1, 1]} : vector<2x16x32xbf16> to vector<1x16x32xbf16>
    %360 = vector.shape_cast %359 : vector<1x16x32xbf16> to vector<16x32xbf16>
    %cst_167 = arith.constant dense<0.000000e+00> : vector<16x32xf32>
    %361 = tpu.matmul %358, %360, %cst_167 {dimension_numbers = #tpu.dot_dimension_numbers<[1], [0], [0], [1], [0, 0, 1, 1], [], []>} : vector<16x16xbf16>, vector<16x32xbf16>, vector<16x32xf32> -> vector<16x32xf32>
    %362 = vector.extract_strided_slice %4 {offsets = [1, 0, 0], sizes = [1, 16, 16], strides = [1, 1, 1]} : vector<2x16x16xbf16> to vector<1x16x16xbf16>
    %363 = vector.shape_cast %362 : vector<1x16x16xbf16> to vector<16x16xbf16>
    %364 = vector.extract_strided_slice %340 {offsets = [1, 0, 0], sizes = [1, 16, 32], strides = [1, 1, 1]} : vector<2x16x32xbf16> to vector<1x16x32xbf16>
    %365 = vector.shape_cast %364 : vector<1x16x32xbf16> to vector<16x32xbf16>
    %cst_168 = arith.constant dense<0.000000e+00> : vector<16x32xf32>
    %366 = tpu.matmul %363, %365, %cst_168 {dimension_numbers = #tpu.dot_dimension_numbers<[1], [0], [0], [1], [0, 0, 1, 1], [], []>} : vector<16x16xbf16>, vector<16x32xbf16>, vector<16x32xf32> -> vector<16x32xf32>
    %367 = vector.shape_cast %361 : vector<16x32xf32> to vector<1x16x32xf32>
    %368 = vector.shape_cast %366 : vector<16x32xf32> to vector<1x16x32xf32>
    %369 = tpu.concatenate %367, %368 in 0 : vector<1x16x32xf32>, vector<1x16x32xf32> -> vector<2x16x32xf32>
    %370 = arith.truncf %369 : vector<2x16x32xf32> to vector<2x16x32xbf16>
    %371 = vector.shape_cast %370 : vector<2x16x32xbf16> to vector<32x32xbf16>
    %c0_169 = arith.constant 0 : index
    %c0_170 = arith.constant 0 : index
    %c0_171 = arith.constant 0 : index
    %372 = vector.load %arg14[%c0_169, %c0_170, %c0_171] : memref<3x32x32xbf16, #tpu.memory_space<vmem>>, vector<1x32x32xbf16>
    %373 = vector.shape_cast %372 : vector<1x32x32xbf16> to vector<32x32xbf16>
    %cst_172 = arith.constant dense<0.000000e+00> : vector<32x32xf32>
    %374 = tpu.matmul %208, %373, %cst_172 {dimension_numbers = #tpu.dot_dimension_numbers<[1], [0], [0], [1], [0, 0, 1, 1], [], []>} : vector<32x32xbf16>, vector<32x32xbf16>, vector<32x32xf32> -> vector<32x32xf32>
    %c0_173 = arith.constant 0 : index
    %c0_174 = arith.constant 0 : index
    %c0_175 = arith.constant 0 : index
    %375 = vector.load %arg17[%c0_173, %c0_174, %c0_175] : memref<3x32x32xbf16, #tpu.memory_space<vmem>>, vector<1x32x32xbf16>
    %376 = vector.shape_cast %375 : vector<1x32x32xbf16> to vector<32x32xbf16>
    %cst_176 = arith.constant dense<0.000000e+00> : vector<32x32xf32>
    %377 = tpu.matmul %341, %376, %cst_176 {dimension_numbers = #tpu.dot_dimension_numbers<[1], [0], [0], [1], [0, 0, 1, 1], [], []>} : vector<32x32xbf16>, vector<32x32xbf16>, vector<32x32xf32> -> vector<32x32xf32>
    %378 = arith.addf %374, %377 : vector<32x32xf32>
    %c1_177 = arith.constant 1 : index
    %c0_178 = arith.constant 0 : index
    %c0_179 = arith.constant 0 : index
    %379 = vector.load %arg14[%c1_177, %c0_178, %c0_179] : memref<3x32x32xbf16, #tpu.memory_space<vmem>>, vector<1x32x32xbf16>
    %380 = vector.shape_cast %379 : vector<1x32x32xbf16> to vector<32x32xbf16>
    %cst_180 = arith.constant dense<0.000000e+00> : vector<32x32xf32>
    %381 = tpu.matmul %223, %380, %cst_180 {dimension_numbers = #tpu.dot_dimension_numbers<[1], [0], [0], [1], [0, 0, 1, 1], [], []>} : vector<32x32xbf16>, vector<32x32xbf16>, vector<32x32xf32> -> vector<32x32xf32>
    %382 = arith.addf %378, %381 : vector<32x32xf32>
    %c1_181 = arith.constant 1 : index
    %c0_182 = arith.constant 0 : index
    %c0_183 = arith.constant 0 : index
    %383 = vector.load %arg17[%c1_181, %c0_182, %c0_183] : memref<3x32x32xbf16, #tpu.memory_space<vmem>>, vector<1x32x32xbf16>
    %384 = vector.shape_cast %383 : vector<1x32x32xbf16> to vector<32x32xbf16>
    %cst_184 = arith.constant dense<0.000000e+00> : vector<32x32xf32>
    %385 = tpu.matmul %356, %384, %cst_184 {dimension_numbers = #tpu.dot_dimension_numbers<[1], [0], [0], [1], [0, 0, 1, 1], [], []>} : vector<32x32xbf16>, vector<32x32xbf16>, vector<32x32xf32> -> vector<32x32xf32>
    %386 = arith.addf %382, %385 : vector<32x32xf32>
    %c2_185 = arith.constant 2 : index
    %c0_186 = arith.constant 0 : index
    %c0_187 = arith.constant 0 : index
    %387 = vector.load %arg14[%c2_185, %c0_186, %c0_187] : memref<3x32x32xbf16, #tpu.memory_space<vmem>>, vector<1x32x32xbf16>
    %388 = vector.shape_cast %387 : vector<1x32x32xbf16> to vector<32x32xbf16>
    %cst_188 = arith.constant dense<0.000000e+00> : vector<32x32xf32>
    %389 = tpu.matmul %238, %388, %cst_188 {dimension_numbers = #tpu.dot_dimension_numbers<[1], [0], [0], [1], [0, 0, 1, 1], [], []>} : vector<32x32xbf16>, vector<32x32xbf16>, vector<32x32xf32> -> vector<32x32xf32>
    %390 = arith.addf %386, %389 : vector<32x32xf32>
    %c2_189 = arith.constant 2 : index
    %c0_190 = arith.constant 0 : index
    %c0_191 = arith.constant 0 : index
    %391 = vector.load %arg17[%c2_189, %c0_190, %c0_191] : memref<3x32x32xbf16, #tpu.memory_space<vmem>>, vector<1x32x32xbf16>
    %392 = vector.shape_cast %391 : vector<1x32x32xbf16> to vector<32x32xbf16>
    %cst_192 = arith.constant dense<0.000000e+00> : vector<32x32xf32>
    %393 = tpu.matmul %371, %392, %cst_192 {dimension_numbers = #tpu.dot_dimension_numbers<[1], [0], [0], [1], [0, 0, 1, 1], [], []>} : vector<32x32xbf16>, vector<32x32xbf16>, vector<32x32xf32> -> vector<32x32xf32>
    %394 = arith.addf %390, %393 : vector<32x32xf32>
    %395 = vector.broadcast %242 : vector<1x32xf32> to vector<32x32xf32>
    %396 = arith.addf %394, %395 : vector<32x32xf32>
    %397 = math.tanh %396 : vector<32x32xf32>
    %398 = arith.mulf %336, %337 : vector<32x32xf32>
    %cst_193 = arith.constant 1.000000e+00 : f32
    %399 = vector.broadcast %cst_193 : f32 to vector<32x32xf32>
    %400 = arith.subf %399, %336 : vector<32x32xf32>
    %401 = arith.mulf %400, %397 : vector<32x32xf32>
    %402 = arith.addf %398, %401 : vector<32x32xf32>
    %403 = vector.shape_cast %402 : vector<32x32xf32> to vector<2x16x32xf32>
    %c1_194 = arith.constant 1 : index
    %c0_195 = arith.constant 0 : index
    %c0_196 = arith.constant 0 : index
    %c0_197 = arith.constant 0 : index
    %404 = vector.load %arg19[%c1_194, %c0_195, %c0_196, %c0_197] : memref<2x2x16x32xf32, #tpu.memory_space<vmem>>, vector<1x2x16x32xf32>
    %405 = vector.shape_cast %404 : vector<1x2x16x32xf32> to vector<2x16x32xf32>
    %406 = vector.shape_cast %403 : vector<2x16x32xf32> to vector<1x2x16x32xf32>
    tpu.vector_store %arg19[%c1_194, %c0_195, %c0_196, %c0_197], %406 {strides = array<i32>} : memref<2x2x16x32xf32, #tpu.memory_space<vmem>>, vector<1x2x16x32xf32>,
    %c0_198 = arith.constant 0 : index
    %c0_199 = arith.constant 0 : index
    %c0_200 = arith.constant 0 : index
    %c0_201 = arith.constant 0 : index
    %407 = vector.load %arg20[%c0_198, %c0_199, %c0_200, %c0_201] : memref<1x2x16x32xf32, #tpu.memory_space<vmem>>, vector<1x2x16x32xf32>
    %408 = vector.shape_cast %407 : vector<1x2x16x32xf32> to vector<2x16x32xf32>
    %409 = vector.shape_cast %403 : vector<2x16x32xf32> to vector<1x2x16x32xf32>
    tpu.vector_store %arg20[%c0_198, %c0_199, %c0_200, %c0_201], %409 {strides = array<i32>} : memref<1x2x16x32xf32, #tpu.memory_space<vmem>>, vector<1x2x16x32xf32>,
    return
  }
  func.func @transform_0(%arg0: i32, %arg1: i32) -> (i32, i32, i32, i32) {
    %c0_i32 = arith.constant 0 : i32
    %c0_i32_0 = arith.constant 0 : i32
    %c0_i32_1 = arith.constant 0 : i32
    return %arg1, %arg0, %c0_i32, %c0_i32_0 : i32, i32, i32, i32
  }
  func.func @transform_1(%arg0: i32, %arg1: i32) -> (i32, i32, i32, i32) {
    %c0_i32 = arith.constant 0 : i32
    %c0_i32_0 = arith.constant 0 : i32
    %c0_i32_1 = arith.constant 0 : i32
    %c0_i32_2 = arith.constant 0 : i32
    return %c0_i32, %arg0, %c0_i32_0, %c0_i32_1 : i32, i32, i32, i32
  }
  func.func @transform_2(%arg0: i32, %arg1: i32) -> (i32, i32, i32) {
    %c0_i32 = arith.constant 0 : i32
    %c0_i32_0 = arith.constant 0 : i32
    %c0_i32_1 = arith.constant 0 : i32
    %c0_i32_2 = arith.constant 0 : i32
    return %c0_i32, %c0_i32_0, %c0_i32_1 : i32, i32, i32
  }
  func.func @transform_3(%arg0: i32, %arg1: i32) -> (i32, i32, i32) {
    %c0_i32 = arith.constant 0 : i32
    %c0_i32_0 = arith.constant 0 : i32
    %c0_i32_1 = arith.constant 0 : i32
    %c0_i32_2 = arith.constant 0 : i32
    return %c0_i32, %c0_i32_0, %c0_i32_1 : i32, i32, i32
  }
  func.func @transform_4(%arg0: i32, %arg1: i32) -> (i32, i32, i32) {
    %c0_i32 = arith.constant 0 : i32
    %c0_i32_0 = arith.constant 0 : i32
    %c0_i32_1 = arith.constant 0 : i32
    %c0_i32_2 = arith.constant 0 : i32
    return %c0_i32, %c0_i32_0, %c0_i32_1 : i32, i32, i32
  }
  func.func @transform_5(%arg0: i32, %arg1: i32) -> (i32, i32, i32) {
    %c0_i32 = arith.constant 0 : i32
    %c0_i32_0 = arith.constant 0 : i32
    %c0_i32_1 = arith.constant 0 : i32
    %c0_i32_2 = arith.constant 0 : i32
    return %c0_i32, %c0_i32_0, %c0_i32_1 : i32, i32, i32
  }
  func.func @transform_6(%arg0: i32, %arg1: i32) -> (i32, i32, i32) {
    %c0_i32 = arith.constant 0 : i32
    %c0_i32_0 = arith.constant 0 : i32
    %c0_i32_1 = arith.constant 0 : i32
    %c0_i32_2 = arith.constant 0 : i32
    return %c0_i32, %c0_i32_0, %c0_i32_1 : i32, i32, i32
  }
  func.func @transform_7(%arg0: i32, %arg1: i32) -> (i32, i32, i32) {
    %c0_i32 = arith.constant 0 : i32
    %c0_i32_0 = arith.constant 0 : i32
    %c0_i32_1 = arith.constant 0 : i32
    %c0_i32_2 = arith.constant 0 : i32
    return %c0_i32, %c0_i32_0, %c0_i32_1 : i32, i32, i32
  }
  func.func @transform_8(%arg0: i32, %arg1: i32) -> (i32, i32, i32) {
    %c0_i32 = arith.constant 0 : i32
    %c0_i32_0 = arith.constant 0 : i32
    %c0_i32_1 = arith.constant 0 : i32
    %c0_i32_2 = arith.constant 0 : i32
    return %c0_i32, %c0_i32_0, %c0_i32_1 : i32, i32, i32
  }
  func.func @transform_9(%arg0: i32, %arg1: i32) -> (i32, i32) {
    %c0_i32 = arith.constant 0 : i32
    %c0_i32_0 = arith.constant 0 : i32
    %c0_i32_1 = arith.constant 0 : i32
    return %c0_i32, %c0_i32_0 : i32, i32
  }
  func.func @transform_10(%arg0: i32, %arg1: i32) -> (i32, i32, i32) {
    %c0_i32 = arith.constant 0 : i32
    %c0_i32_0 = arith.constant 0 : i32
    %c0_i32_1 = arith.constant 0 : i32
    %c0_i32_2 = arith.constant 0 : i32
    return %c0_i32, %c0_i32_0, %c0_i32_1 : i32, i32, i32
  }
  func.func @transform_11(%arg0: i32, %arg1: i32) -> (i32, i32, i32) {
    %c0_i32 = arith.constant 0 : i32
    %c0_i32_0 = arith.constant 0 : i32
    %c0_i32_1 = arith.constant 0 : i32
    %c0_i32_2 = arith.constant 0 : i32
    return %c0_i32, %c0_i32_0, %c0_i32_1 : i32, i32, i32
  }
  func.func @transform_12(%arg0: i32, %arg1: i32) -> (i32, i32, i32) {
    %c0_i32 = arith.constant 0 : i32
    %c0_i32_0 = arith.constant 0 : i32
    %c0_i32_1 = arith.constant 0 : i32
    %c0_i32_2 = arith.constant 0 : i32
    return %c0_i32, %c0_i32_0, %c0_i32_1 : i32, i32, i32
  }
  func.func @transform_13(%arg0: i32, %arg1: i32) -> (i32, i32, i32) {
    %c0_i32 = arith.constant 0 : i32
    %c0_i32_0 = arith.constant 0 : i32
    %c0_i32_1 = arith.constant 0 : i32
    %c0_i32_2 = arith.constant 0 : i32
    return %c0_i32, %c0_i32_0, %c0_i32_1 : i32, i32, i32
  }
  func.func @transform_14(%arg0: i32, %arg1: i32) -> (i32, i32, i32) {
    %c0_i32 = arith.constant 0 : i32
    %c0_i32_0 = arith.constant 0 : i32
    %c0_i32_1 = arith.constant 0 : i32
    %c0_i32_2 = arith.constant 0 : i32
    return %c0_i32, %c0_i32_0, %c0_i32_1 : i32, i32, i32
  }
  func.func @transform_15(%arg0: i32, %arg1: i32) -> (i32, i32, i32) {
    %c0_i32 = arith.constant 0 : i32
    %c0_i32_0 = arith.constant 0 : i32
    %c0_i32_1 = arith.constant 0 : i32
    %c0_i32_2 = arith.constant 0 : i32
    return %c0_i32, %c0_i32_0, %c0_i32_1 : i32, i32, i32
  }
  func.func @transform_16(%arg0: i32, %arg1: i32) -> (i32, i32) {
    %c0_i32 = arith.constant 0 : i32
    %c0_i32_0 = arith.constant 0 : i32
    %c0_i32_1 = arith.constant 0 : i32
    return %c0_i32, %c0_i32_0 : i32, i32
  }
  func.func @transform_17(%arg0: i32, %arg1: i32) -> (i32, i32, i32, i32) {
    %c0_i32 = arith.constant 0 : i32
    %c0_i32_0 = arith.constant 0 : i32
    %c0_i32_1 = arith.constant 0 : i32
    %c0_i32_2 = arith.constant 0 : i32
    return %c0_i32, %arg0, %c0_i32_0, %c0_i32_1 : i32, i32, i32, i32
  }
  func.func @transform_18(%arg0: i32, %arg1: i32) -> (i32, i32, i32, i32) {
    %c0_i32 = arith.constant 0 : i32
    %c0_i32_0 = arith.constant 0 : i32
    %c0_i32_1 = arith.constant 0 : i32
    return %arg1, %arg0, %c0_i32, %c0_i32_0 : i32, i32, i32, i32
  }
}

</mosaic_0001>

<bundles_post_ra>
// kernel: _encoder_pallas.1
= control target key start
LH: loop header
LB: loop body
LE: loop exit
PB: predicated region body
PF: predicated region fallthrough
CT: control target
= control target key end

     0   :  { %s5877_s0 = inlined_call_operand.vmem [shape: f32[1,2,16,2], index: 0, kind: input, shape index: {}]   ;;  %s5878_s1 = inlined_call_operand.vmem [shape: f32[2,2,16,32], index: 1, kind: input, shape index: {}]   ;;  %s5879_s2 = inlined_call_operand.hbm [shape: f32[2,16,16], index: 2, kind: input, shape index: {}]   ;;  %s5880_s3 = inlined_call_operand.hbm [shape: bf16[3,2,32], index: 3, kind: input, shape index: {}]   ;;  %s5881_s4 = inlined_call_operand.hbm [shape: bf16[3,2,32], index: 4, kind: input, shape index: {}]   ;;  %s5882_s5 = inlined_call_operand.vmem [shape: bf16[3,2,32], index: 5, kind: input, shape index: {}]   ;;  %s5883_s6 = inlined_call_operand.vmem [shape: bf16[3,32,32], index: 6, kind: input, shape index: {}]   ;;  %s5884_s7 = inlined_call_operand.vmem [shape: bf16[3,32,32], index: 7, kind: input, shape index: {}]   ;;  %s5885_s8 = inlined_call_operand.hbm [shape: bf16[3,32,32], index: 8, kind: input, shape index: {}]   ;;  %s5886_s9 = inlined_call_operand.vmem [shape: f32[3,32], index: 9, kind: input, shape index: {}]   ;;  %s5887_s10 = inlined_call_operand.hbm [shape: bf16[3,32,32], index: 10, kind: input, shape index: {}]   ;;  %s5888_s11 = inlined_call_operand.hbm [shape: bf16[3,32,32], index: 11, kind: input, shape index: {}]   ;;  %s5889_s12 = inlined_call_operand.hbm [shape: bf16[3,32,32], index: 12, kind: input, shape index: {}]   ;;  %s5890_s13 = inlined_call_operand.hbm [shape: bf16[3,32,32], index: 13, kind: input, shape index: {}]   ;;  %s5891_s14 = inlined_call_operand.hbm [shape: bf16[3,32,32], index: 14, kind: input, shape index: {}]   ;;  %s5892_s15 = inlined_call_operand.hbm [shape: bf16[3,32,32], index: 15, kind: input, shape index: {}]   ;;  %s5893_s16 = inlined_call_operand.vmem [shape: f32[3,32], index: 16, kind: input, shape index: {}]   ;;  %s5894_s17 = inlined_call_operand.vmem [shape: f32[2,2,16,32], index: 17, kind: output, shape index: {0}]   ;;  %s5895_s18 = inlined_call_operand.vmem [shape: f32[1,2,16,32], index: 18, kind: output, shape index: {1}]  }
   0x1   :  { %5898 = sst [smem:[#allocation24_spill]] %s5877_s0 }
   0x2   :  { %5899 = sst [smem:[#allocation25_spill]] %s5878_s1 }
   0x3   :  { %5900 = sst [smem:[#allocation26_spill]] %s5879_s2 }
   0x4   :  { %24 = vsyncpa [#allocation3], 0 }
   0x5   :  { %25 = vsyncpa [#allocation5], 0 }
   0x6   :  { %26 = vsyncpa [#allocation8], 0 }
   0x7   :  { %27 = vsyncpa [#allocation11], 0 }
   0x8   :  { %28 = vsyncpa [#allocation14], 0 }
   0x9   :  { %29 = vsyncpa [#allocation17], 0  ;;  %s5111_s27 = smov [#allocation4]  }
   0xa   :  { %s51_s28 = sshll.u32 %s5111_s27, 4  ;;  %s52_s28 = int_to_ptr.vmem [resolvable:$true] %s51_s28 }
   0xb   :  { %s4907_s29 = scalar_lea.vmem %s52_s28, 48  ;;  %s4911_s30 = scalar_lea.vmem %s52_s28, 64 }
   0xc   :  { %p4908_p0 = scmp.ne.s32.totalorder %s52_s28, %s4907_s29  ;;  %p4912_p1 = scmp.lt.s32.totalorder %s52_s28, %s52_s28 }
   0xd   :  { %p4913_p2 = scmp.lt.s32.totalorder %s4911_s30, %s4907_s29 }
   0xf   :  { %p4914_p3 = por %p4913_p2, %p4912_p1 }
  0x11   :  { %p4915_p4 = pnand %p4914_p3, %p4908_p0 }
  0x13   :  { %4918 = shalt.err (!%p4915_p4)
}
  0x14   :  { %s5112_s0 = smov 16   ;;  %s5113_s19 = smov 1  }
  0x15   :  { %57 = dma.hbm_to_vmem [thread:$0]  %s5880_s3, 48, %s52_s28, [#allocation5], %s5112_s0, %s5112_s0, %s5113_s19  }
  0x16   :  { %s5114_s21 = smov [#allocation7]  }
  0x17   :  { %s81_s22 = sshll.u32 %s5114_s21, 4  ;;  %s82_s22 = int_to_ptr.vmem [resolvable:$true] %s81_s22 }
  0x18   :  { %s4927_s2 = scalar_lea.vmem %s82_s22, 768  ;;  %p4932_p6 = scmp.lt.s32.totalorder %s82_s22, %s82_s22 }
  0x19   :  { %p4928_p5 = scmp.ne.s32.totalorder %s82_s22, %s4927_s2  ;;  %p4933_p7 = scmp.lt.s32.totalorder %s4927_s2, %s4927_s2 }
  0x1b   :  { %p4934_p8 = por %p4933_p7, %p4932_p6 }
  0x1d   :  { %p4935_p9 = pnand %p4934_p8, %p4928_p5 }
  0x1f   :  { %4938 = shalt.err (!%p4935_p9)
}
  0x20   :  { %s5115_s23 = smov 64   ;;  %s5116_s24 = smov 4  }
  0x21   :  { %87 = dma.hbm_to_vmem [thread:$0]  %s5885_s8, 768, %s82_s22, [#allocation8], %s5115_s23, %s5115_s23, %s5116_s24  }
  0x22   :  { %s5117_s3 = smov [#allocation10]   ;;  %s5118_s28 = smov [#allocation13]  }
  0x23   :  { %s107_s27 = sshll.u32 %s5117_s3, 4  ;;  %s131_s29 = sshll.u32 %s5118_s28, 4  ;;  %s108_s27 = int_to_ptr.vmem [resolvable:$true] %s107_s27  ;;  %s132_s29 = int_to_ptr.vmem [resolvable:$true] %s131_s29 }
  0x24   :  { %s4947_s30 = scalar_lea.vmem %s108_s27, 768  ;;  %p4952_p11 = scmp.lt.s32.totalorder %s108_s27, %s108_s27 }
  0x25   :  { %p4948_p10 = scmp.ne.s32.totalorder %s108_s27, %s4947_s30  ;;  %p4953_p12 = scmp.lt.s32.totalorder %s4947_s30, %s4947_s30 }
  0x27   :  { %p4954_p13 = por %p4953_p12, %p4952_p11 }
  0x29   :  { %p4955_p0 = pnand %p4954_p13, %p4948_p10 }
  0x2b   :  { %4958 = shalt.err (!%p4955_p0)
}
  0x2c   :  { %113 = dma.hbm_to_vmem [thread:$0]  %s5888_s11, 768, %s108_s27, [#allocation11], %s5115_s23, %s5115_s23, %s5116_s24  }
  0x2d   :  { %s4967_s8 = scalar_lea.vmem %s132_s29, 768  ;;  %p4972_p2 = scmp.lt.s32.totalorder %s132_s29, %s132_s29 }
  0x2e   :  { %p4968_p1 = scmp.ne.s32.totalorder %s132_s29, %s4967_s8  ;;  %p4973_p3 = scmp.lt.s32.totalorder %s4967_s8, %s4967_s8 }
  0x30   :  { %p4974_p4 = por %p4973_p3, %p4972_p2 }
  0x32   :  { %p4975_p5 = pnand %p4974_p4, %p4968_p1 }
  0x34   :  { %4978 = shalt.err (!%p4975_p5)
}
  0x35   :  { %137 = dma.hbm_to_vmem [thread:$0]  %s5890_s13, 768, %s132_s29, [#allocation14], %s5115_s23, %s5115_s23, %s5116_s24  }
  0x36   :  { %s5119_s2 = smov [#allocation2]  }
  0x37   :  { %s39_s25 = sshll.u32 %s5119_s2, 4  ;;  %s40_s25 = int_to_ptr.vmem [resolvable:$true] %s39_s25 }
  0x38   :  { %s4987_s26 = scalar_lea.vmem %s40_s25, 512  ;;  %p4992_p7 = scmp.lt.s32.totalorder %s40_s25, %s40_s25 }
  0x39   :  { %p4988_p6 = scmp.ne.s32.totalorder %s40_s25, %s4987_s26  ;;  %p4993_p8 = scmp.lt.s32.totalorder %s4987_s26, %s4987_s26 }
  0x3b   :  { %p4994_p9 = por %p4993_p8, %p4992_p7 }
  0x3d   :  { %p4995_p10 = pnand %p4994_p9, %p4988_p6 }
  0x3f   :  { %4998 = shalt.err (!%p4995_p10)
}
  0x40   :  { %s5120_s11 = smov 128   ;;  %s5121_s3 = smov 8  }
  0x41   :  { %s5901_s30 = sld [smem:[#allocation26_spill]]  ;;  %s5122_s1 = smov [#allocation6]  }
  0x42   :  { %s63_s20 = sshll.u32 %s5122_s1, 4  ;;  %s5123_s13 = smov [#allocation9]   ;;  %s64_s20 = int_to_ptr.vmem [resolvable:$true] %s63_s20 }
  0x43   :  { %s95_s29 = sshll.u32 %s5123_s13, 4  ;;  %s5007_s8 = scalar_lea.vmem %s64_s20, 48  ;;  %s96_s29 = int_to_ptr.vmem [resolvable:$true] %s95_s29 }
  0x44   :  { %p5008_p11 = scmp.ne.s32.totalorder %s64_s20, %s5007_s8  ;;  %s5011_s21 = scalar_lea.vmem %s64_s20, 64 }
  0x45   :  { %p5012_p12 = scmp.lt.s32.totalorder %s64_s20, %s64_s20  ;;  %p5013_p13 = scmp.lt.s32.totalorder %s5011_s21, %s5007_s8 }
  0x47   :  { %45 = dma.hbm_to_vmem [thread:$0]  %s5901_s30, 512, %s40_s25, [#allocation3], %s5120_s11, %s5120_s11, %s5121_s3  }
  0x48   :  { %p5014_p0 = por %p5013_p13, %p5012_p12 }
  0x4a   :  { %p5015_p1 = pnand %p5014_p0, %p5008_p11 }
  0x4c   :  { %5018 = shalt.err (!%p5015_p1)
}
  0x4d   :  { %69 = dma.hbm_to_vmem [thread:$0]  %s5881_s4, 48, %s64_s20, [#allocation5], %s5112_s0, %s5112_s0, %s5113_s19  }
  0x4e   :  { %s5027_s25 = scalar_lea.vmem %s96_s29, 768  ;;  %p5032_p3 = scmp.lt.s32.totalorder %s96_s29, %s96_s29 }
  0x4f   :  { %p5028_p2 = scmp.ne.s32.totalorder %s96_s29, %s5027_s25  ;;  %p5033_p4 = scmp.lt.s32.totalorder %s5027_s25, %s5027_s25 }
  0x51   :  { %p5034_p5 = por %p5033_p4, %p5032_p3 }
  0x53   :  { %p5035_p6 = pnand %p5034_p5, %p5028_p2 }
  0x55   :  { %5038 = shalt.err (!%p5035_p6)
}
  0x56   :  { %101 = dma.hbm_to_vmem [thread:$0]  %s5887_s10, 768, %s96_s29, [#allocation8], %s5115_s23, %s5115_s23, %s5116_s24  }
  0x57   :  { %s5124_s3 = smov [#allocation12]   ;;  %s5125_s28 = smov [#allocation15]  }
  0x58   :  { %s119_s27 = sshll.u32 %s5124_s3, 4  ;;  %s143_s4 = sshll.u32 %s5125_s28, 4  ;;  %s120_s27 = int_to_ptr.vmem [resolvable:$true] %s119_s27  ;;  %s144_s4 = int_to_ptr.vmem [resolvable:$true] %s143_s4 }
  0x59   :  { %s5047_s0 = scalar_lea.vmem %s120_s27, 768  ;;  %p5052_p8 = scmp.lt.s32.totalorder %s120_s27, %s120_s27 }
  0x5a   :  { %p5048_p7 = scmp.ne.s32.totalorder %s120_s27, %s5047_s0  ;;  %p5053_p9 = scmp.lt.s32.totalorder %s5047_s0, %s5047_s0 }
  0x5c   :  { %p5054_p10 = por %p5053_p9, %p5052_p8 }
  0x5e   :  { %p5055_p11 = pnand %p5054_p10, %p5048_p7 }
  0x60   :  { %5058 = shalt.err (!%p5055_p11)
}
  0x61   :  { %125 = dma.hbm_to_vmem [thread:$0]  %s5889_s12, 768, %s120_s27, [#allocation11], %s5115_s23, %s5115_s23, %s5116_s24  }
  0x62   :  { %s5067_s10 = scalar_lea.vmem %s144_s4, 768  ;;  %p5072_p13 = scmp.lt.s32.totalorder %s144_s4, %s144_s4 }
  0x63   :  { %p5068_p12 = scmp.ne.s32.totalorder %s144_s4, %s5067_s10  ;;  %p5073_p0 = scmp.lt.s32.totalorder %s5067_s10, %s5067_s10 }
  0x65   :  { %p5074_p1 = por %p5073_p0, %p5072_p13 }
  0x67   :  { %p5075_p2 = pnand %p5074_p1, %p5068_p12 }
  0x69   :  { %5078 = shalt.err (!%p5075_p2)
}
  0x6a   :  { %149 = dma.hbm_to_vmem [thread:$0]  %s5891_s14, 768, %s144_s4, [#allocation14], %s5115_s23, %s5115_s23, %s5116_s24  }
  0x6b   :  { %s5126_s13 = smov [#allocation16]  }
  0x6c   :  { %s155_s29 = sshll.u32 %s5126_s13, 4  ;;  %s156_s29 = int_to_ptr.vmem [resolvable:$true] %s155_s29 }
  0x6d   :  { %s5087_s8 = scalar_lea.vmem %s156_s29, 768  ;;  %p5092_p4 = scmp.lt.s32.totalorder %s156_s29, %s156_s29 }
  0x6e   :  { %p5088_p3 = scmp.ne.s32.totalorder %s156_s29, %s5087_s8  ;;  %p5093_p5 = scmp.lt.s32.totalorder %s5087_s8, %s5087_s8 }
  0x70   :  { %p5094_p6 = por %p5093_p5, %p5092_p4 }
  0x72   :  { %p5095_p7 = pnand %p5094_p6, %p5088_p3 }
  0x74   :  { %5098 = shalt.err (!%p5095_p7)
}
  0x75   :  { %161 = dma.hbm_to_vmem [thread:$0]  %s5892_s15, 768, %s156_s29, [#allocation17], %s5115_s23, %s5115_s23, %s5116_s24  }
  0x76   :  { %5099 = dma.done.wait [#allocation3], 512  }
  0x77   :  { %5100 = vsyncadd [#allocation3], 4294966784 }
  0x78   :  { %5101 = dma.done.wait [#allocation5], 96  }
  0x79   :  { %5102 = vsyncadd [#allocation5], 4294967200 }
  0x7a   :  { %5103 = dma.done.wait [#allocation8], 1536  }
  0x7b   :  { %5104 = vsyncadd [#allocation8], 4294965760 }
  0x7c   :  { %5105 = dma.done.wait [#allocation11], 1536  }
  0x7d   :  { %5106 = vsyncadd [#allocation11], 4294965760 }
  0x7e   :  { %5107 = dma.done.wait [#allocation14], 1536  }
  0x7f   :  { %5108 = vsyncadd [#allocation14], 4294965760 }
  0x80   :  { %5109 = dma.done.wait [#allocation17], 768  }
  0x81   :  { %5110 = vsyncadd [#allocation17], 4294966528  ;;  %v5127_v0 = vmov 0.0   ;;  %vm5128_vm0 = vmmov 0   ;;  %s5902_s23 = sld [smem:[#allocation24_spill]]  ;;  %vm207_vm1 = vcmask 261120  }
  0x82   :  { %4320 = vmatprep.subr.bf16.mxu0 %v5127_v0  ;;  %4326 = vmatprep.subr.bf16.mxu1 %v5127_v0  ;;  %v216_v6 = vld [vmem:[#allocation2] sm:$0xff]  ;;  %v217_v7 = vld [vmem:[#allocation2 + $0x8] sm:$0xff]  ;;  %s5903_s28 = sld [smem:[#allocation25_spill]]  ;;  %vm228_vm2 = vcmask 130048   ;;  %v218_v14 = vld [vmem:[#allocation2 + $0x10] sm:$0xff]  ;;  %vm658_vm3 = vcmask 1040384  }
  0x83   :  { %4322 = vmatprep.mubr.msk.bf16.mxu0 %vm5128_vm0, %v5127_v0  ;;  %4328 = vmatprep.mubr.msk.bf16.mxu1 %vm5128_vm0, %v5127_v0  ;;  %v5303_v9 = vpack.c.bf16 %v217_v7, %v216_v6  ;;  %v219_v15 = vld [vmem:[#allocation2 + $0x18] sm:$0xff]  ;;  %v4761_v23 = vld [vmem:[%s5883_s6 + $0x8] sm:$0xff]   ;;  %v4762_v24 = vld [vmem:[%s5883_s6] sm:$0xff]   ;;  %vm651_vm4 = vcmask 15360  }
  0x84   :  { %v5348_v16 = vpack.c.bf16 %v219_v15, %v218_v14  ;;  %v578_v25 = vld [vmem:[#allocation4] sm:$0x1]  ;;  %v712_v27 = vld [vmem:[#allocation4 + $0x1] sm:$0x1]  ;;  %v852_v29 = vld [vmem:[#allocation4 + $0x2] sm:$0x1] }
  0x85   :  { %v660_v26 = vsel %vm658_vm3, %v578_v25, 0  ;;  %v720_v28 = vsel %vm658_vm3, %v712_v27, 0  ;;  %v4763_v30 = vld [vmem:[%s5883_s6 + $0x18] sm:$0xff]   ;;  %v4765_v31 = vld [vmem:[%s5883_s6 + $0x10] sm:$0xff]   ;;  %v4767_v32 = vld [vmem:[%s5883_s6 + $0x28] sm:$0xff]   ;;  %v860_v42 = vsel %vm658_vm3, %v852_v29, 0 }
  0x86   :  { %v4764_v43 = vld [vmem:[%s5884_s7 + $0x8] sm:$0xff]   ;;  %v4766_v54 = vld [vmem:[%s5884_s7] sm:$0xff]  }
  0x87   :  { %v222_v1 = vld [vmem:[%s5902_s23] sm:$0xff]  ;;  %v223_v2 = vld [vmem:[%s5902_s23 + $0x8] sm:$0xff]  ;;  %v224_v3 = vld [vmem:[%s5902_s23 + $0x10] sm:$0xff] }
  0x88   :  { %v5296_v4 = vpack.c.bf16 %v223_v2, %v222_v1  ;;  %v225_v5 = vld [vmem:[%s5902_s23 + $0x18] sm:$0xff]  ;;  %v199_v10 = vld [vmem:[%s5903_s28] sm:$0xff]  ;;  %v200_v11 = vld [vmem:[%s5903_s28 + $0x8] sm:$0xff] }
  0x89   :  { %v5301_v8 = vpack.c.bf16 %v225_v5, %v224_v3  ;;  %208 = vst.msk [vmem:[%s5894_s17] sm:$0xff] %vm207_vm1, %v199_v10  ;;  %v201_v12 = vld [vmem:[%s5903_s28 + $0x10] sm:$0xff]  ;;  %v202_v13 = vld [vmem:[%s5903_s28 + $0x18] sm:$0xff]  ;;  %209 = vst.msk [vmem:[%s5894_s17 + $0x8] sm:$0xff] %vm207_vm1, %v200_v11 }
  0x8a   :  { %4321 = vmatpush3.bf16.msra.mxu0 %v5296_v4  ;;  %210 = vst.msk [vmem:[%s5894_s17 + $0x10] sm:$0xff] %vm207_vm1, %v201_v12  ;;  %211 = vst.msk [vmem:[%s5894_s17 + $0x18] sm:$0xff] %vm207_vm1, %v202_v13  ;;  %v1142_v60 = vld [vmem:[#allocation6 + $0x1] sm:$0x1]  ;;  %v1270_v10 = vld [vmem:[#allocation6 + $0x2] sm:$0x1] }
  0x8b   :  { %4327 = vmatpush3.bf16.msra.mxu1 %v5301_v8  ;;  %4332 = vmatprep.subr.bf16.mxu0 %v5127_v0  ;;  %v4768_v3 = vld [vmem:[%s5883_s6 + $0x20] sm:$0xff]   ;;  %v1144_v6 = vsel %vm658_vm3, %v1142_v60, 0 }
  0x8c   :  { %4338 = vmatprep.subr.bf16.mxu1 %v5127_v0  ;;  %v1023_v14 = vld [vmem:[#allocation6] sm:$0x1] }
  0x8d   :  { %4323 = vmatmul.mubr.msk.bf16.vlgmr.msra.gmra.mxu0 %vm228_vm2, %v5303_v9 }
  0x8e   :  { %4329 = vmatmul.mubr.msk.bf16.vlgmr.msra.gmra.mxu1 %vm228_vm2, %v5303_v9  ;;  %4333 = vmatpush3.bf16.msra.mxu0 %v5296_v4 }
  0x8f   :  { %4339 = vmatpush3.bf16.msra.mxu1 %v5301_v8  ;;  %4334 = vmatprep.mubr.msk.bf16.mxu0 %vm5128_vm0, %v5127_v0 }
  0x90   :  { %4340 = vmatprep.mubr.msk.bf16.mxu1 %vm5128_vm0, %v5127_v0  ;;  %4344 = vmatprep.subr.bf16.mxu0 %v5127_v0  ;;  %v5354_v17 = vld [vmem:[%s5894_s17] sm:$0xff]  ;;  %v5359_v18 = vld [vmem:[%s5894_s17 + $0x8] sm:$0xff] }
  0x91   :  { %4350 = vmatprep.subr.bf16.mxu1 %v5127_v0  ;;  %v5364_v19 = vld [vmem:[%s5894_s17 + $0x10] sm:$0xff]  ;;  %v5369_v20 = vld [vmem:[%s5894_s17 + $0x18] sm:$0xff]  ;;  %v5373_v21 = vpack.c.bf16 %v5359_v18, %v5354_v17 }
  0x92   :  { %v5377_v22 = vpack.c.bf16 %v5369_v20, %v5364_v19 }
  0x95   :  { %4335 = vmatmul.mubr.msk.bf16.vlgmr.msra.gmra.mxu0 %vm228_vm2, %v5348_v16 }
  0x96   :  { %4341 = vmatmul.mubr.msk.bf16.vlgmr.msra.gmra.mxu1 %vm228_vm2, %v5348_v16  ;;  %4345 = vmatpush3.bf16.msra.mxu0 %v5373_v21 }
  0x97   :  { %4351 = vmatpush3.bf16.msra.mxu1 %v5377_v22  ;;  %4346 = vmatprep.mubr.msk.bf16.mxu0 %vm5128_vm0, %v5127_v0 }
  0x98   :  { %4352 = vmatprep.mubr.msk.bf16.mxu1 %vm5128_vm0, %v5127_v0  ;;  %4356 = vmatprep.subr.bf16.mxu0 %v5127_v0 }
  0x99   :  { %4362 = vmatprep.subr.bf16.mxu1 %v5127_v0 }
  0x9d   :  { %4347 = vmatmul.mubr.msk.bf16.vlgmr.msra.gmra.mxu0 %vm228_vm2, %v5303_v9 }
  0x9e   :  { %4353 = vmatmul.mubr.msk.bf16.vlgmr.msra.gmra.mxu1 %vm228_vm2, %v5303_v9  ;;  %4357 = vmatpush3.bf16.msra.mxu0 %v5373_v21 }
  0x9f   :  { %4363 = vmatpush3.bf16.msra.mxu1 %v5377_v22  ;;  %4358 = vmatprep.mubr.msk.bf16.mxu0 %vm5128_vm0, %v5127_v0 }
  0xa0   :  { %4364 = vmatprep.mubr.msk.bf16.mxu1 %vm5128_vm0, %v5127_v0  ;;  %4368 = vmatprep.subr.bf16.mxu0 %v4761_v23 }
  0xa1   :  { %4734 = vmatprep.subr.msk.bf16.mxu1 %vm658_vm3, %v578_v25 }
  0xa5   :  { %4359 = vmatmul.mubr.msk.bf16.vlgmr.msra.gmra.mxu0 %vm228_vm2, %v5348_v16 }
  0xa6   :  { %4365 = vmatmul.mubr.msk.bf16.vlgmr.msra.gmra.mxu1 %vm228_vm2, %v5348_v16  ;;  %4369 = vmatpush3.bf16.msra.mxu0 %v4761_v23 }
  0xa7   :  { %4370 = vmatprep.subr.bf16.mxu0 %v4762_v24  ;;  %4372 = vmatprep.mubr.msk.bf16.mxu0 %vm207_vm1, %v5373_v21 }
  0xa8   :  { %4377 = vmatpush3.bf16.msra.mxu1 %v660_v26  ;;  %4378 = vmatprep.mubr.msk.bf16.mxu1 %vm651_vm4, %v5296_v4 }
  0xa9   :  { %4388 = vmatprep.subr.bf16.mxu1 %v4763_v30 }
  0xaa   :  { %4371 = vmatpush3.bf16.msra.mxu0 %v4762_v24 }
  0xab   :  { %4735 = vmatprep.subr.msk.bf16.mxu0 %vm658_vm3, %v712_v27  ;;  %v1272_v27 = vsel %vm658_vm3, %v1270_v10, 0 }
  0xad   :  { %4373 = vmatmul.mubr.msk.bf16.vlgmr.msra.gmra.mxu0 %vm207_vm1, %v5377_v22 }
  0xae   :  { %4383 = vmatpush3.bf16.msra.mxu0 %v720_v28  ;;  %4379 = vmatmul.mubr.msk.bf16.vlgmr.msra.gmra.mxu1 %vm651_vm4, %v5301_v8  ;;  %v4769_v28 = vld [vmem:[%s5884_s7 + $0x18] sm:$0xff]  }
  0xaf   :  { %4736 = vmatprep.subr.msk.bf16.mxu0 %vm658_vm3, %v852_v29  ;;  %4389 = vmatpush3.bf16.msra.mxu1 %v4763_v30  ;;  %v4770_v29 = vld [vmem:[%s5884_s7 + $0x10] sm:$0xff]   ;;  %v4771_v30 = vld [vmem:[%s5884_s7 + $0x28] sm:$0xff]  }
  0xb0   :  { %4390 = vmatprep.subr.bf16.mxu1 %v4765_v31 }
  0xb3   :  { %4391 = vmatpush3.bf16.msra.mxu1 %v4765_v31  ;;  %v4772_v31 = vld [vmem:[%s5884_s7 + $0x20] sm:$0xff]  }
  0xb4   :  { %4402 = vmatprep.subr.bf16.mxu1 %v4767_v32 }
 0x14d   :  { %v266_v33 = vpop.f32.mrf.mxu0 }
 0x14e   :  { %v307_v34 = vpop.f32.mrf.mxu1 }
 0x14f   :  { %v4324_v35 = vpop.f32.mrf.mxu0 }
 0x150   :  { %v4330_v36 = vpop.f32.mrf.mxu1 }
 0x151   :  { %v269_v37 = vpop.f32.mrf.mxu0 }
 0x152   :  { %v5433_v38 = vpack.c.bf16 %v269_v37, %v266_v33  ;;  %v310_v39 = vpop.f32.mrf.mxu1 }
 0x153   :  { %v5435_v40 = vpack.c.bf16 %v310_v39, %v307_v34  ;;  %v4325_v41 = vpop.f32.mrf.mxu0 }
 0x154   :  { %v4331_v44 = vpop.f32.mrf.mxu1  ;;  %4384 = vmatprep.mubr.msk.bf16.mxu0 %vm651_vm4, %v5433_v38 }
 0x155   :  { %v353_v45 = vpop.f32.mrf.mxu0  ;;  %4385 = vmatmul.mubr.msk.bf16.vlgmr.msra.gmra.mxu0 %vm651_vm4, %v5435_v40 }
 0x156   :  { %v394_v46 = vpop.f32.mrf.mxu1  ;;  %4397 = vmatpush3.bf16.msra.mxu0 %v860_v42 }
 0x157   :  { %v4336_v47 = vpop.f32.mrf.mxu0  ;;  %4410 = vmatprep.subr.bf16.mxu0 %v4764_v43 }
 0x158   :  { %v4342_v48 = vpop.f32.mrf.mxu1  ;;  %v991_v47 = vlaneseq }
 0x159   :  { %v356_v49 = vpop.f32.mrf.mxu0 }
 0x15a   :  { %v5445_v50 = vpack.c.bf16 %v356_v49, %v353_v45  ;;  %v397_v51 = vpop.f32.mrf.mxu1 }
 0x15b   :  { %v5447_v52 = vpack.c.bf16 %v397_v51, %v394_v46  ;;  %v4337_v53 = vpop.f32.mrf.mxu0 }
 0x15c   :  { %v4343_v55 = vpop.f32.mrf.mxu1  ;;  %4398 = vmatprep.mubr.msk.bf16.mxu0 %vm651_vm4, %v5445_v50 }
 0x15d   :  { %v444_v56 = vpop.f32.mrf.mxu0  ;;  %4399 = vmatmul.mubr.msk.bf16.vlgmr.msra.gmra.mxu0 %vm651_vm4, %v5447_v52  ;;  %v5507_v55 = vshrl.u32 %v991_v47, 7 }
 0x15e   :  { %v485_v57 = vpop.f32.mrf.mxu1  ;;  %4411 = vmatpush3.bf16.msra.mxu0 %v4764_v43  ;;  %4414 = vmatprep.mubr.msk.bf16.mxu0 %vm207_vm1, %v5373_v21 }
 0x15f   :  { %v4348_v58 = vpop.f32.mrf.mxu0  ;;  %4412 = vmatprep.subr.bf16.mxu0 %v4766_v54 }
 0x160   :  { %v4354_v59 = vpop.f32.mrf.mxu1 }
 0x161   :  { %v447_v61 = vpop.f32.mrf.mxu0 }
 0x162   :  { %v492_v62 = vpack.c.bf16 %v447_v61, %v444_v56  ;;  %v488_v63 = vpop.f32.mrf.mxu1  ;;  %4413 = vmatpush3.bf16.msra.mxu0 %v4766_v54 }
 0x163   :  { %v493_v1 = vpack.c.bf16 %v488_v63, %v485_v57  ;;  %v4349_v2 = vpop.f32.mrf.mxu0  ;;  %4738 = vmatprep.subr.msk.bf16.mxu0 %vm658_vm3, %v1142_v60 }
 0x164   :  { %v4355_v5 = vpop.f32.mrf.mxu1  ;;  %4392 = vmatprep.mubr.msk.bf16.mxu1 %vm207_vm1, %v492_v62  ;;  %v993_v2 = vsub.s32 0, %v5507_v55 }
 0x165   :  { %v528_v7 = vpop.f32.mrf.mxu0  ;;  %4393 = vmatmul.mubr.msk.bf16.vlgmr.msra.gmra.mxu1 %vm207_vm1, %v493_v1  ;;  %4415 = vmatmul.mubr.msk.bf16.vlgmr.msra.gmra.mxu0 %vm207_vm1, %v5377_v22  ;;  %v1090_v22 = vsel %vm658_vm3, %v1023_v14, 0 }
 0x166   :  { %v569_v11 = vpop.f32.mrf.mxu1  ;;  %4403 = vmatpush3.bf16.msra.mxu1 %v4767_v32  ;;  %4426 = vmatprep.mubr.msk.bf16.mxu0 %vm651_vm4, %v5433_v38 }
 0x167   :  { %v4360_v12 = vpop.f32.mrf.mxu0  ;;  %4404 = vmatprep.subr.bf16.mxu1 %v4768_v3  ;;  %4425 = vmatpush3.bf16.msra.mxu0 %v1144_v6  ;;  %v5513_v6 = vld [vmem:[%s5886_s9] sm:$0x7] }
 0x168   :  { %v4366_v13 = vpop.f32.mrf.mxu1  ;;  %4739 = vmatprep.subr.msk.bf16.mxu0 %vm658_vm3, %v1270_v10 }
 0x169   :  { %v531_v15 = vpop.f32.mrf.mxu0 }
 0x16a   :  { %v576_v21 = vpack.c.bf16 %v531_v15, %v528_v7  ;;  %v572_v23 = vpop.f32.mrf.mxu1  ;;  %4405 = vmatpush3.bf16.msra.mxu1 %v4768_v3 }
 0x16b   :  { %v577_v24 = vpack.c.bf16 %v572_v23, %v569_v11  ;;  %v4361_v25 = vpop.f32.mrf.mxu0  ;;  %4737 = vmatprep.subr.msk.bf16.mxu1 %vm658_vm3, %v1023_v14 }
 0x16c   :  { %v4367_v26 = vpop.f32.mrf.mxu1  ;;  %4406 = vmatprep.mubr.msk.bf16.mxu1 %vm207_vm1, %v576_v21 }
 0x16d   :  { %4407 = vmatmul.mubr.msk.bf16.vlgmr.msra.gmra.mxu1 %vm207_vm1, %v577_v24  ;;  %4427 = vmatmul.mubr.msk.bf16.vlgmr.msra.gmra.mxu0 %vm651_vm4, %v5435_v40  ;;  %v4374_v32 = vpop.f32.mrf.mxu0 }
 0x16e   :  { %4440 = vmatprep.mubr.msk.bf16.mxu0 %vm651_vm4, %v5445_v50  ;;  %4419 = vmatpush3.bf16.msra.mxu1 %v1090_v22  ;;  %v4380_v37 = vpop.f32.mrf.mxu1 }
 0x16f   :  { %4439 = vmatpush3.bf16.msra.mxu0 %v1272_v27  ;;  %4420 = vmatprep.mubr.msk.bf16.mxu1 %vm651_vm4, %v5296_v4  ;;  %v636_v33 = vpop.f32.mrf.mxu0  ;;  %v705_v49 = vadd.f32 %v4380_v37, %v4374_v32 }
 0x170   :  { %4430 = vmatprep.subr.bf16.mxu1 %v4769_v28  ;;  %4452 = vmatprep.subr.bf16.mxu0 %v5127_v0  ;;  %v696_v42 = vpop.f32.mrf.mxu1 }
 0x171   :  { %v4375_v34 = vpop.f32.mrf.mxu0  ;;  %v697_v54 = vadd.f32 %v696_v42, %v636_v33 }
 0x172   :  { %v4381_v45 = vpop.f32.mrf.mxu1 }
 0x173   :  { %v639_v35 = vpop.f32.mrf.mxu0  ;;  %v708_v59 = vadd.f32 %v4381_v45, %v4375_v34 }
 0x174   :  { %v699_v51 = vpop.f32.mrf.mxu1 }
 0x175   :  { %4421 = vmatmul.mubr.msk.bf16.vlgmr.msra.gmra.mxu1 %vm651_vm4, %v5301_v8  ;;  %4441 = vmatmul.mubr.msk.bf16.vlgmr.msra.gmra.mxu0 %vm651_vm4, %v5447_v52  ;;  %v700_v63 = vadd.f32 %v699_v51, %v639_v35 }
 0x176   :  { %4431 = vmatpush3.bf16.msra.mxu1 %v4769_v28  ;;  %4434 = vmatprep.mubr.msk.bf16.mxu1 %vm207_vm1, %v492_v62 }
 0x177   :  { %4432 = vmatprep.subr.bf16.mxu1 %v4770_v29  ;;  %4454 = vmatprep.mubr.msk.bf16.mxu0 %vm5128_vm0, %v5127_v0 }
 0x17a   :  { %4433 = vmatpush3.bf16.msra.mxu1 %v4770_v29 }
 0x17b   :  { %4444 = vmatprep.subr.bf16.mxu1 %v4771_v30 }
 0x17d   :  { %4435 = vmatmul.mubr.msk.bf16.vlgmr.msra.gmra.mxu1 %vm207_vm1, %v493_v1 }
 0x17e   :  { %4445 = vmatpush3.bf16.msra.mxu1 %v4771_v30  ;;  %4448 = vmatprep.mubr.msk.bf16.mxu1 %vm207_vm1, %v576_v21  ;;  %v994_v21 = vrot.slane %v5513_v6, %v993_v2 }
 0x17f   :  { %4446 = vmatprep.subr.bf16.mxu1 %v4772_v31 }
 0x182   :  { %4447 = vmatpush3.bf16.msra.mxu1 %v4772_v31 }
 0x183   :  { %4458 = vmatprep.subr.bf16.mxu1 %v5127_v0 }
 0x185   :  { %4449 = vmatmul.mubr.msk.bf16.vlgmr.msra.gmra.mxu1 %vm207_vm1, %v577_v24 }
 0x186   :  { %4460 = vmatprep.mubr.msk.bf16.mxu1 %vm5128_vm0, %v5127_v0 }
 0x215   :  { %v4386_v36 = vpop.f32.mrf.mxu0 }
 0x216   :  { %v773_v58 = vadd.f32 %v4386_v36, %v705_v49 }
 0x217   :  { %v756_v39 = vpop.f32.mrf.mxu0 }
 0x218   :  { %v771_v62 = vadd.f32 %v756_v39, %v697_v54 }
 0x219   :  { %v4387_v41 = vpop.f32.mrf.mxu0 }
 0x21a   :  { %v774_v7 = vadd.f32 %v4387_v41, %v708_v59 }
 0x21b   :  { %v759_v43 = vpop.f32.mrf.mxu0 }
 0x21c   :  { %v772_v13 = vadd.f32 %v759_v43, %v700_v63 }
 0x21d   :  { %v4400_v44 = vpop.f32.mrf.mxu0 }
 0x21f   :  { %v896_v46 = vpop.f32.mrf.mxu0 }
 0x221   :  { %v4401_v48 = vpop.f32.mrf.mxu0 }
 0x223   :  { %v899_v53 = vpop.f32.mrf.mxu0 }
 0x225   :  { %v4394_v56 = vpop.f32.mrf.mxu1  ;;  %v4416_v57 = vpop.f32.mrf.mxu0 }
 0x226   :  { %v849_v1 = vadd.f32 %v4394_v56, %v773_v58 }
 0x227   :  { %v832_v60 = vpop.f32.mrf.mxu1  ;;  %v1074_v61 = vpop.f32.mrf.mxu0 }
 0x228   :  { %v847_v10 = vadd.f32 %v832_v60, %v771_v62  ;;  %v913_v15 = vadd.f32 %v4400_v44, %v849_v1 }
 0x229   :  { %v4395_v3 = vpop.f32.mrf.mxu1  ;;  %v4417_v5 = vpop.f32.mrf.mxu0 }
 0x22a   :  { %v850_v14 = vadd.f32 %v4395_v3, %v774_v7  ;;  %v911_v26 = vadd.f32 %v896_v46, %v847_v10 }
 0x22b   :  { %v835_v11 = vpop.f32.mrf.mxu1  ;;  %v1077_v12 = vpop.f32.mrf.mxu0 }
 0x22c   :  { %v848_v25 = vadd.f32 %v835_v11, %v772_v13  ;;  %v914_v31 = vadd.f32 %v4401_v48, %v850_v14 }
 0x22d   :  { %v4408_v23 = vpop.f32.mrf.mxu1  ;;  %v4428_v24 = vpop.f32.mrf.mxu0 }
 0x22e   :  { %v989_v22 = vadd.f32 %v4408_v23, %v913_v15  ;;  %v912_v36 = vadd.f32 %v899_v53, %v848_v25 }
 0x22f   :  { %v972_v27 = vpop.f32.mrf.mxu1  ;;  %v1180_v28 = vpop.f32.mrf.mxu0 }
 0x230   :  { %v997_v29 = vadd.f32 %v994_v21, %v989_v22  ;;  %v987_v30 = vadd.f32 %v972_v27, %v911_v26 }
 0x231   :  { %v4409_v32 = vpop.f32.mrf.mxu1  ;;  %v4429_v37 = vpop.f32.mrf.mxu0 }
 0x232   :  { %v3981_v33 = vmul.f32 -1.442695, %v997_v29  ;;  %v995_v34 = vadd.f32 %v994_v21, %v987_v30  ;;  %v990_v35 = vadd.f32 %v4409_v32, %v914_v31 }
 0x233   :  { %v975_v39 = vpop.f32.mrf.mxu1  ;;  %v1183_v49 = vpop.f32.mrf.mxu0 }
 0x234   :  { %4815 = vpow2.f32 %v3981_v33  ;;  %v3979_v41 = vmul.f32 -1.442695, %v995_v34  ;;  %v998_v42 = vadd.f32 %v994_v21, %v990_v35  ;;  %v988_v43 = vadd.f32 %v975_v39, %v912_v36 }
 0x235   :  { %v4422_v44 = vpop.f32.mrf.mxu1  ;;  %v4442_v60 = vpop.f32.mrf.mxu0 }
 0x236   :  { %4817 = vpow2.f32 %v3979_v41  ;;  %v3982_v45 = vmul.f32 -1.442695, %v998_v42  ;;  %v996_v46 = vadd.f32 %v994_v21, %v988_v43  ;;  %v1135_v47 = vadd.f32 %v4422_v44, %v4416_v57 }
 0x237   :  { %v1126_v51 = vpop.f32.mrf.mxu1  ;;  %v1308_v11 = vpop.f32.mrf.mxu0 }
 0x238   :  { %4819 = vpow2.f32 %v3982_v45  ;;  %v3980_v48 = vmul.f32 -1.442695, %v996_v46  ;;  %v1127_v54 = vadd.f32 %v1126_v51, %v1074_v61  ;;  %v1197_v56 = vadd.f32 %v4428_v24, %v1135_v47 }
 0x239   :  { %v4423_v58 = vpop.f32.mrf.mxu1  ;;  %v4443_v22 = vpop.f32.mrf.mxu0 }
 0x23a   :  { %4821 = vpow2.f32 %v3980_v48  ;;  %v1138_v53 = vadd.f32 %v4423_v58, %v4417_v5  ;;  %v1195_v59 = vadd.f32 %v1180_v28, %v1127_v54  ;;  %v1603_v48 = vld [vmem:[%s5882_s5] sm:$0x1]  ;;  %v4777_v58 = vld [vmem:[#allocation7 + $0x28] sm:$0xff]  }
 0x23b   :  { %v1129_v62 = vpop.f32.mrf.mxu1 }
 0x23c   :  { %v1130_v63 = vadd.f32 %v1129_v62, %v1077_v12  ;;  %v1198_v1 = vadd.f32 %v4429_v37, %v1138_v53  ;;  %v1311_v53 = vpop.f32.mrf.mxu0 }
 0x23d   :  { %v4436_v3 = vpop.f32.mrf.mxu1 }
 0x23e   :  { %v1267_v7 = vadd.f32 %v4436_v3, %v1197_v56  ;;  %v1196_v10 = vadd.f32 %v1183_v49, %v1130_v63 }
 0x23f   :  { %v1250_v13 = vpop.f32.mrf.mxu1 }
 0x240   :  { %v1265_v57 = vadd.f32 %v1250_v13, %v1195_v59  ;;  %v1325_v14 = vadd.f32 %v4442_v60, %v1267_v7  ;;  %v4778_v13 = vld [vmem:[#allocation7 + $0x20] sm:$0xff]  }
 0x241   :  { %v4816_v15 = vpop.eup %4815  ;;  %v4437_v21 = vpop.f32.mrf.mxu1 }
 0x242   :  { %v1013_v23 = vadd.f32 1.0, %v4816_v15  ;;  %v1268_v61 = vadd.f32 %v4437_v21, %v1198_v1  ;;  %v1323_v24 = vadd.f32 %v1308_v11, %v1265_v57 }
 0x243   :  { %v4818_v25 = vpop.eup %4817  ;;  %v1253_v5 = vpop.f32.mrf.mxu1 }
 0x244   :  { %v1011_v26 = vadd.f32 1.0, %v4818_v25  ;;  %v5518_v27 = vadd.f32 %v1253_v5, %v1196_v10  ;;  %v1326_v12 = vadd.f32 %v4443_v22, %v1268_v61  ;;  %4823 = vrcp.f32 %v1013_v23  ;;  %v205_v5 = vld [vmem:[%s5903_s28 + $0x30] sm:$0xff] }
 0x245   :  { %v4820_v28 = vpop.eup %4819  ;;  %v4450_v29 = vpop.f32.mrf.mxu1  ;;  %214 = vst.msk [vmem:[%s5894_s17 + $0x30] sm:$0xff] %vm207_vm1, %v205_v5 }
 0x246   :  { %v1014_v30 = vadd.f32 1.0, %v4820_v28  ;;  %v5520_v31 = vadd.f32 %v4450_v29, %v1325_v14  ;;  %4825 = vrcp.f32 %v1011_v26  ;;  %v206_v26 = vld [vmem:[%s5903_s28 + $0x38] sm:$0xff]  ;;  %v204_v28 = vld [vmem:[%s5903_s28 + $0x28] sm:$0xff] }
 0x247   :  { %v4822_v32 = vpop.eup %4821  ;;  %v1378_v33 = vpop.f32.mrf.mxu1  ;;  %215 = vst.msk [vmem:[%s5894_s17 + $0x38] sm:$0xff] %vm207_vm1, %v206_v26  ;;  %213 = vst.msk [vmem:[%s5894_s17 + $0x28] sm:$0xff] %vm207_vm1, %v204_v28 }
 0x248   :  { %4827 = vrcp.f32 %v1014_v30  ;;  %v1012_v34 = vadd.f32 1.0, %v4822_v32  ;;  %v5522_v35 = vadd.f32 %v1378_v33, %v1323_v24  ;;  %v1399_v32 = vsub.s32 1, %v5507_v55 }
 0x249   :  { %v4451_v36 = vpop.f32.mrf.mxu1 }
 0x24a   :  { %4829 = vrcp.f32 %v1012_v34  ;;  %v5524_v37 = vadd.f32 %v4451_v36, %v1326_v12  ;;  %v203_v12 = vld [vmem:[%s5903_s28 + $0x20] sm:$0xff]  ;;  %v1400_v34 = vrot.slane %v5513_v6, %v1399_v32  ;;  %v1324_v36 = vadd.f32 %v1311_v53, %v5518_v27 }
 0x24b   :  { %212 = vst.msk [vmem:[%s5894_s17 + $0x20] sm:$0xff] %vm207_vm1, %v203_v12 }
 0x251   :  { %v4824_v39 = vpop.eup %4823 }
 0x252   :  { %v1431_v43 = vmul.f32 %v4824_v39, %v5364_v19  ;;  %v4773_v19 = vld [vmem:[#allocation7 + $0x8] sm:$0xff]  }
 0x253   :  { %v4826_v41 = vpop.eup %4825 }
 0x254   :  { %v1429_v47 = vmul.f32 %v4826_v41, %v5354_v17  ;;  %v1676_v17 = vsel %vm658_vm3, %v1603_v48, 0  ;;  %v1403_v41 = vadd.f32 %v1400_v34, %v5520_v31 }
 0x255   :  { %v4828_v42 = vpop.eup %4827 }
 0x256   :  { %v1432_v44 = vmul.f32 %v4828_v42, %v5369_v20  ;;  %v4023_v20 = vld [vmem:[%s5882_s5 + $0x1] sm:$0x1]  ;;  %v1401_v42 = vadd.f32 %v1400_v34, %v5522_v35 }
 0x257   :  { %v4830_v45 = vpop.eup %4829  ;;  %v1730_v54 = vsel %vm658_vm3, %v4023_v20, 0 }
 0x258   :  { %v1434_v46 = vpack.c.bf16 %v1432_v44, %v1431_v43  ;;  %v1430_v49 = vmul.f32 %v4830_v45, %v5359_v18  ;;  %v4774_v18 = vld [vmem:[#allocation7] sm:$0xff]   ;;  %v1404_v44 = vadd.f32 %v1400_v34, %v5524_v37 }
 0x25a   :  { %4459 = vmatpush3.bf16.msra.mxu1 %v1434_v46  ;;  %v1433_v51 = vpack.c.bf16 %v1430_v49, %v1429_v47  ;;  %v4009_v47 = vmul.f32 -1.442695, %v1401_v42 }
 0x25b   :  { %4470 = vmatprep.subr.bf16.mxu1 %v5127_v0 }
 0x25c   :  { %4453 = vmatpush3.bf16.msra.mxu0 %v1433_v51 }
 0x25d   :  { %4461 = vmatmul.mubr.msk.bf16.vlgmr.msra.gmra.mxu1 %vm228_vm2, %v5303_v9  ;;  %4464 = vmatprep.subr.bf16.mxu0 %v5127_v0 }
 0x25e   :  { %4471 = vmatpush3.bf16.msra.mxu1 %v1434_v46  ;;  %4472 = vmatprep.mubr.msk.bf16.mxu1 %vm5128_vm0, %v5127_v0 }
 0x25f   :  { %4455 = vmatmul.mubr.msk.bf16.vlgmr.msra.gmra.mxu0 %vm228_vm2, %v5303_v9  ;;  %4740 = vmatprep.subr.msk.bf16.mxu1 %vm658_vm3, %v1603_v48  ;;  %v4012_v48 = vmul.f32 -1.442695, %v1404_v44 }
 0x260   :  { %4465 = vmatpush3.bf16.msra.mxu0 %v1433_v51  ;;  %4466 = vmatprep.mubr.msk.bf16.mxu0 %vm5128_vm0, %v5127_v0 }
 0x261   :  { %4476 = vmatprep.subr.bf16.mxu0 %v4773_v19 }
 0x265   :  { %4473 = vmatmul.mubr.msk.bf16.vlgmr.msra.gmra.mxu1 %vm228_vm2, %v5348_v16 }
 0x266   :  { %4485 = vmatpush3.bf16.msra.mxu1 %v1676_v17  ;;  %4486 = vmatprep.mubr.msk.bf16.mxu1 %vm651_vm4, %v5296_v4  ;;  %v4030_v4 = vld [vmem:[%s5882_s5 + $0x2] sm:$0x1] }
 0x267   :  { %4467 = vmatmul.mubr.msk.bf16.vlgmr.msra.gmra.mxu0 %vm228_vm2, %v5348_v16  ;;  %v1864_v56 = vsel %vm658_vm3, %v4030_v4, 0 }
 0x268   :  { %4477 = vmatpush3.bf16.msra.mxu0 %v4773_v19  ;;  %4480 = vmatprep.mubr.msk.bf16.mxu0 %vm207_vm1, %v1433_v51 }
 0x269   :  { %4478 = vmatprep.subr.bf16.mxu0 %v4774_v18 }
 0x26c   :  { %4479 = vmatpush3.bf16.msra.mxu0 %v4774_v18 }
 0x26d   :  { %4487 = vmatmul.mubr.msk.bf16.vlgmr.msra.gmra.mxu1 %vm651_vm4, %v5301_v8  ;;  %4741 = vmatprep.subr.msk.bf16.mxu0 %vm658_vm3, %v4023_v20  ;;  %v4775_v8 = vld [vmem:[#allocation7 + $0x18] sm:$0xff]  }
 0x26e   :  { %4496 = vmatprep.subr.bf16.mxu1 %v4775_v8 }
 0x26f   :  { %4481 = vmatmul.mubr.msk.bf16.vlgmr.msra.gmra.mxu0 %vm207_vm1, %v1434_v46  ;;  %4497 = vmatpush3.bf16.msra.mxu1 %v4775_v8  ;;  %v4011_v46 = vmul.f32 -1.442695, %v1403_v41 }
 0x270   :  { %4492 = vmatprep.mubr.msk.bf16.mxu0 %vm651_vm4, %v5433_v38  ;;  %4491 = vmatpush3.bf16.msra.mxu0 %v1730_v54  ;;  %v4776_v38 = vld [vmem:[#allocation7 + $0x10] sm:$0xff]  }
 0x271   :  { %4742 = vmatprep.subr.msk.bf16.mxu0 %vm658_vm3, %v4030_v4  ;;  %4498 = vmatprep.subr.bf16.mxu1 %v4776_v38  ;;  %4831 = vpow2.f32 %v4011_v46 }
 0x272   :  { %4833 = vpow2.f32 %v4009_v47 }
 0x273   :  { %4499 = vmatpush3.bf16.msra.mxu1 %v4776_v38  ;;  %4835 = vpow2.f32 %v4012_v48 }
 0x274   :  { %4510 = vmatprep.subr.bf16.mxu1 %v4777_v58 }
 0x277   :  { %4493 = vmatmul.mubr.msk.bf16.vlgmr.msra.gmra.mxu0 %vm651_vm4, %v5435_v40  ;;  %v1381_v40 = vpop.f32.mrf.mxu1 }
 0x278   :  { %4506 = vmatprep.mubr.msk.bf16.mxu0 %vm651_vm4, %v5445_v50  ;;  %4505 = vmatpush3.bf16.msra.mxu0 %v1864_v56  ;;  %v1394_v43 = vadd.f32 %v1381_v40, %v1324_v36 }
 0x279   :  { %4518 = vmatprep.subr.bf16.mxu0 %v5127_v0 }
 0x27a   :  { %v1402_v49 = vadd.f32 %v1400_v34, %v1394_v43 }
 0x27c   :  { %v4010_v17 = vmul.f32 -1.442695, %v1402_v49 }
 0x27e   :  { %4837 = vpow2.f32 %v4010_v17  ;;  %v4832_v38 = vpop.eup %4831  ;;  %v4895_v17 = vld [vmem:[%s5894_s17 + $0x10] sm:$0xff] }
 0x27f   :  { %4507 = vmatmul.mubr.msk.bf16.vlgmr.msra.gmra.mxu0 %vm651_vm4, %v5447_v52  ;;  %v4834_v40 = vpop.eup %4833 }
 0x280   :  { %4520 = vmatprep.mubr.msk.bf16.mxu0 %vm5128_vm0, %v5127_v0 }
 0x31d   :  { %v1510_v50 = vpop.f32.mrf.mxu1 }
 0x31f   :  { %v1469_v59 = vpop.f32.mrf.mxu0  ;;  %v4462_v60 = vpop.f32.mrf.mxu1 }
 0x320   :  { %v1997_v60 = vsub.s32 2, %v5507_v55 }
 0x321   :  { %v4456_v62 = vpop.f32.mrf.mxu0  ;;  %v1513_v63 = vpop.f32.mrf.mxu1 }
 0x322   :  { %v1518_v7 = vpack.c.bf16 %v1513_v63, %v1510_v50 }
 0x323   :  { %v1472_v1 = vpop.f32.mrf.mxu0  ;;  %v4463_v52 = vpop.f32.mrf.mxu1 }
 0x324   :  { %v1517_v3 = vpack.c.bf16 %v1472_v1, %v1469_v59  ;;  %v4836_v1 = vpop.eup %4835  ;;  %v1419_v52 = vadd.f32 1.0, %v4832_v38  ;;  %v4897_v38 = vld [vmem:[%s5894_s17 + $0x18] sm:$0xff] }
 0x325   :  { %v4457_v10 = vpop.f32.mrf.mxu0  ;;  %v1594_v11 = vpop.f32.mrf.mxu1 }
 0x326   :  { %4500 = vmatprep.mubr.msk.bf16.mxu1 %vm207_vm1, %v1517_v3  ;;  %4839 = vrcp.f32 %v1419_v52 }
 0x327   :  { %v1553_v57 = vpop.f32.mrf.mxu0  ;;  %v4474_v14 = vpop.f32.mrf.mxu1  ;;  %4501 = vmatmul.mubr.msk.bf16.vlgmr.msra.gmra.mxu1 %vm207_vm1, %v1518_v7 }
 0x328   :  { %4511 = vmatpush3.bf16.msra.mxu1 %v4777_v58 }
 0x329   :  { %v4468_v15 = vpop.f32.mrf.mxu0  ;;  %v1597_v21 = vpop.f32.mrf.mxu1  ;;  %4512 = vmatprep.subr.bf16.mxu1 %v4778_v13 }
 0x32a   :  { %v1602_v25 = vpack.c.bf16 %v1597_v21, %v1594_v11  ;;  %v1417_v11 = vadd.f32 1.0, %v4834_v40 }
 0x32b   :  { %v1556_v23 = vpop.f32.mrf.mxu0  ;;  %v4475_v61 = vpop.f32.mrf.mxu1 }
 0x32c   :  { %v1601_v24 = vpack.c.bf16 %v1556_v23, %v1553_v57  ;;  %4513 = vmatpush3.bf16.msra.mxu1 %v4778_v13  ;;  %v4838_v57 = vpop.eup %4837  ;;  %v1998_v23 = vrot.slane %v5513_v6, %v1997_v60  ;;  %v1420_v61 = vadd.f32 1.0, %v4836_v1  ;;  %4841 = vrcp.f32 %v1417_v11  ;;  %v5670_v11 = vld [vmem:[%s5894_s17 + $0x30] sm:$0xff] }
 0x32d   :  { %v4469_v22 = vpop.f32.mrf.mxu0  ;;  %4524 = vmatprep.subr.bf16.mxu1 %v5127_v0  ;;  %v4488_v51 = vpop.f32.mrf.mxu1  ;;  %v1418_v12 = vadd.f32 1.0, %v4838_v57  ;;  %v5684_v57 = vld [vmem:[%s5894_s17 + $0x20] sm:$0xff] }
 0x32e   :  { %4514 = vmatprep.mubr.msk.bf16.mxu1 %vm207_vm1, %v1601_v24  ;;  %4843 = vrcp.f32 %v1420_v61  ;;  %v4780_v61 = vld [vmem:[#allocation13 + $0x8] sm:$0xff]  }
 0x32f   :  { %4515 = vmatmul.mubr.msk.bf16.vlgmr.msra.gmra.mxu1 %vm207_vm1, %v1602_v25  ;;  %v4482_v29 = vpop.f32.mrf.mxu0  ;;  %v1712_v18 = vpop.f32.mrf.mxu1 }
 0x330   :  { %4526 = vmatprep.mubr.msk.bf16.mxu1 %vm5128_vm0, %v5127_v0  ;;  %v1721_v54 = vadd.f32 %v4488_v51, %v4482_v29 }
 0x331   :  { %v1660_v30 = vpop.f32.mrf.mxu0  ;;  %v4489_v31 = vpop.f32.mrf.mxu1 }
 0x332   :  { %v1713_v56 = vadd.f32 %v1712_v18, %v1660_v30 }
 0x333   :  { %v4483_v33 = vpop.f32.mrf.mxu0  ;;  %v1715_v35 = vpop.f32.mrf.mxu1 }
 0x334   :  { %v1724_v53 = vadd.f32 %v4489_v31, %v4483_v33  ;;  %v4840_v46 = vpop.eup %4839 }
 0x335   :  { %v1663_v39 = vpop.f32.mrf.mxu0  ;;  %v2013_v51 = vsub.f32 1.0, %v4840_v46  ;;  %v2009_v18 = vmul.f32 %v4895_v17, %v4840_v46  ;;  %v4786_v46 = vld [vmem:[#allocation9 + $0x20] sm:$0xff]  }
 0x336   :  { %v1716_v3 = vadd.f32 %v1715_v35, %v1663_v39 }
 0x337   :  { %v4494_v45 = vpop.f32.mrf.mxu0 }
 0x338   :  { %v1783_v8 = vadd.f32 %v4494_v45, %v1721_v54 }
 0x339   :  { %v1766_v19 = vpop.f32.mrf.mxu0  ;;  %v4842_v47 = vpop.eup %4841 }
 0x33a   :  { %v1781_v50 = vadd.f32 %v1766_v19, %v1713_v56  ;;  %v2011_v31 = vsub.f32 1.0, %v4842_v47 }
 0x33b   :  { %v4495_v27 = vpop.f32.mrf.mxu0  ;;  %v4844_v49 = vpop.eup %4843 }
 0x33c   :  { %v1784_v7 = vadd.f32 %v4495_v27, %v1724_v53  ;;  %v2014_v35 = vsub.f32 1.0, %v4844_v49 }
 0x33d   :  { %v1769_v20 = vpop.f32.mrf.mxu0 }
 0x33e   :  { %v1782_v14 = vadd.f32 %v1769_v20, %v1716_v3 }
 0x33f   :  { %v4508_v4 = vpop.f32.mrf.mxu0 }
 0x341   :  { %v1900_v62 = vpop.f32.mrf.mxu0 }
 0x343   :  { %v4509_v24 = vpop.f32.mrf.mxu0 }
 0x345   :  { %v1903_v34 = vpop.f32.mrf.mxu0 }
 0x3e7   :  { %v4502_v37 = vpop.f32.mrf.mxu1 }
 0x3e8   :  { %v1859_v59 = vadd.f32 %v4502_v37, %v1783_v8 }
 0x3e9   :  { %v1842_v58 = vpop.f32.mrf.mxu1 }
 0x3ea   :  { %v1857_v10 = vadd.f32 %v1842_v58, %v1781_v50  ;;  %v1917_v21 = vadd.f32 %v4508_v4, %v1859_v59  ;;  %v4896_v4 = vld [vmem:[%s5894_s17] sm:$0xff]  ;;  %v2010_v58 = vmul.f32 %v4897_v38, %v4844_v49 }
 0x3eb   :  { %v4503_v63 = vpop.f32.mrf.mxu1  ;;  %v2007_v37 = vmul.f32 %v4896_v4, %v4842_v47  ;;  %v4792_v38 = vld [vmem:[#allocation10 + $0x18] sm:$0xff]  }
 0x3ec   :  { %v1860_v15 = vadd.f32 %v4503_v63, %v1784_v7  ;;  %v1915_v26 = vadd.f32 %v1900_v62, %v1857_v10  ;;  %v4898_v63 = vld [vmem:[%s5894_s17 + $0x8] sm:$0xff] }
 0x3ed   :  { %v1845_v13 = vpop.f32.mrf.mxu1 }
 0x3ee   :  { %v1858_v22 = vadd.f32 %v1845_v13, %v1782_v14  ;;  %v1918_v33 = vadd.f32 %v4509_v24, %v1860_v15  ;;  %v5675_v13 = vld [vmem:[%s5894_s17 + $0x38] sm:$0xff]  ;;  %v5689_v14 = vld [vmem:[%s5894_s17 + $0x28] sm:$0xff] }
 0x3ef   :  { %v4516_v25 = vpop.f32.mrf.mxu1  ;;  %v5693_v15 = vpack.c.bf16 %v5675_v13, %v5670_v11  ;;  %v4781_v24 = vld [vmem:[#allocation9] sm:$0xff]  }
 0x3f0   :  { %v1993_v5 = vadd.f32 %v4516_v25, %v1917_v21  ;;  %v1916_v6 = vadd.f32 %v1903_v34, %v1858_v22  ;;  %v5697_v21 = vpack.c.bf16 %v5689_v14, %v5684_v57  ;;  %v4782_v25 = vld [vmem:[#allocation13] sm:$0xff]   ;;  %v4783_v22 = vld [vmem:[#allocation9 + $0x18] sm:$0xff]  }
 0x3f1   :  { %v1976_v28 = vpop.f32.mrf.mxu1 }
 0x3f2   :  { %v2001_v29 = vadd.f32 %v1998_v23, %v1993_v5  ;;  %v1991_v30 = vadd.f32 %v1976_v28, %v1915_v26  ;;  %v4784_v5 = vld [vmem:[#allocation9 + $0x10] sm:$0xff]   ;;  %v4785_v26 = vld [vmem:[#allocation9 + $0x28] sm:$0xff]   ;;  %v4789_v28 = vld [vmem:[#allocation13 + $0x10] sm:$0xff]  }
 0x3f3   :  { %v4517_v36 = vpop.f32.mrf.mxu1 }
 0x3f4   :  { %4845 = vtanh.f32 %v2001_v29  ;;  %v1999_v39 = vadd.f32 %v1998_v23, %v1991_v30  ;;  %v1994_v41 = vadd.f32 %v4517_v36, %v1918_v33  ;;  %v4791_v29 = vld [vmem:[#allocation13 + $0x28] sm:$0xff]  }
 0x3f5   :  { %4847 = vrcp.f32 %v1418_v12  ;;  %v1979_v42 = vpop.f32.mrf.mxu1  ;;  %v4787_v12 = vld [vmem:[#allocation13 + $0x18] sm:$0xff]  }
 0x3f6   :  { %4849 = vtanh.f32 %v1999_v39  ;;  %v2002_v43 = vadd.f32 %v1998_v23, %v1994_v41  ;;  %v1992_v44 = vadd.f32 %v1979_v42, %v1916_v6 }
 0x3f8   :  { %4851 = vtanh.f32 %v2002_v43  ;;  %v2000_v45 = vadd.f32 %v1998_v23, %v1992_v44  ;;  %v4779_v23 = vld [vmem:[#allocation9 + $0x8] sm:$0xff]  }
 0x3fa   :  { %4853 = vtanh.f32 %v2000_v45 }
 0x401   :  { %v4846_v48 = vpop.eup %4845 }
 0x402   :  { %v4848_v19 = vpop.eup %4847  ;;  %v2017_v27 = vmul.f32 %v4846_v48, %v2013_v51 }
 0x403   :  { %v4850_v20 = vpop.eup %4849  ;;  %v2012_v53 = vsub.f32 1.0, %v4848_v19  ;;  %v2008_v1 = vmul.f32 %v4898_v63, %v4848_v19  ;;  %v4788_v19 = vld [vmem:[#allocation15 + $0x8] sm:$0xff]   ;;  %v4793_v63 = vld [vmem:[#allocation13 + $0x20] sm:$0xff]  }
 0x404   :  { %v2021_v54 = vadd.f32 %v2017_v27, %v2009_v18  ;;  %v2015_v56 = vmul.f32 %v4850_v20, %v2011_v31 }
 0x405   :  { %v4852_v8 = vpop.eup %4851 }
 0x406   :  { %v2018_v40 = vmul.f32 %v4852_v8, %v2014_v35  ;;  %2025 = vst.msk [vmem:[%s5894_s17 + $0x10] sm:$0xff] %vm207_vm1, %v2021_v54  ;;  %v2019_v50 = vadd.f32 %v2015_v56, %v2007_v37 }
 0x407   :  { %v4854_v59 = vpop.eup %4853 }
 0x408   :  { %v2022_v62 = vadd.f32 %v2018_v40, %v2010_v58  ;;  %v2016_v52 = vmul.f32 %v4854_v59, %v2012_v53  ;;  %2023 = vst.msk [vmem:[%s5894_s17] sm:$0xff] %vm207_vm1, %v2019_v50 }
 0x40a   :  { %2026 = vst.msk [vmem:[%s5894_s17 + $0x18] sm:$0xff] %vm207_vm1, %v2022_v62  ;;  %v5647_v3 = vpack.c.bf16 %v2022_v62, %v2021_v54  ;;  %v2020_v7 = vadd.f32 %v2016_v52, %v2008_v1  ;;  %v4790_v54 = vld [vmem:[#allocation15] sm:$0xff]  }
 0x40b   :  { %v4794_v1 = vld [vmem:[#allocation10 + $0x10] sm:$0xff]  }
 0x40c   :  { %4525 = vmatpush3.bf16.msra.mxu1 %v5647_v3  ;;  %2024 = vst.msk [vmem:[%s5894_s17 + $0x8] sm:$0xff] %vm207_vm1, %v2020_v7  ;;  %v5654_v10 = vpack.c.bf16 %v2020_v7, %v2019_v50 }
 0x40d   :  { %4536 = vmatprep.subr.bf16.mxu1 %v5127_v0 }
 0x40e   :  { %4519 = vmatpush3.bf16.msra.mxu0 %v5654_v10 }
 0x40f   :  { %4527 = vmatmul.mubr.msk.bf16.vlgmr.msra.gmra.mxu1 %vm228_vm2, %v5303_v9  ;;  %4530 = vmatprep.subr.bf16.mxu0 %v5127_v0 }
 0x410   :  { %4537 = vmatpush3.bf16.msra.mxu1 %v5647_v3  ;;  %4538 = vmatprep.mubr.msk.bf16.mxu1 %vm5128_vm0, %v5127_v0 }
 0x411   :  { %4521 = vmatmul.mubr.msk.bf16.vlgmr.msra.gmra.mxu0 %vm228_vm2, %v5303_v9  ;;  %4548 = vmatprep.subr.bf16.mxu1 %v5127_v0 }
 0x412   :  { %4531 = vmatpush3.bf16.msra.mxu0 %v5654_v10  ;;  %4532 = vmatprep.mubr.msk.bf16.mxu0 %vm5128_vm0, %v5127_v0 }
 0x413   :  { %4542 = vmatprep.subr.bf16.mxu0 %v5127_v0 }
 0x417   :  { %4539 = vmatmul.mubr.msk.bf16.vlgmr.msra.gmra.mxu1 %vm228_vm2, %v5348_v16 }
 0x418   :  { %4549 = vmatpush3.bf16.msra.mxu1 %v5693_v15  ;;  %4550 = vmatprep.mubr.msk.bf16.mxu1 %vm5128_vm0, %v5127_v0 }
 0x419   :  { %4533 = vmatmul.mubr.msk.bf16.vlgmr.msra.gmra.mxu0 %vm228_vm2, %v5348_v16  ;;  %4560 = vmatprep.subr.bf16.mxu1 %v5127_v0 }
 0x41a   :  { %4543 = vmatpush3.bf16.msra.mxu0 %v5697_v21  ;;  %4544 = vmatprep.mubr.msk.bf16.mxu0 %vm5128_vm0, %v5127_v0 }
 0x41b   :  { %4554 = vmatprep.subr.bf16.mxu0 %v5127_v0 }
 0x41f   :  { %4551 = vmatmul.mubr.msk.bf16.vlgmr.msra.gmra.mxu1 %vm228_vm2, %v5303_v9 }
 0x420   :  { %4561 = vmatpush3.bf16.msra.mxu1 %v5693_v15  ;;  %4562 = vmatprep.mubr.msk.bf16.mxu1 %vm5128_vm0, %v5127_v0 }
 0x421   :  { %4545 = vmatmul.mubr.msk.bf16.vlgmr.msra.gmra.mxu0 %vm228_vm2, %v5303_v9  ;;  %4574 = vmatprep.subr.bf16.mxu1 %v4779_v23 }
 0x422   :  { %4555 = vmatpush3.bf16.msra.mxu0 %v5697_v21  ;;  %4556 = vmatprep.mubr.msk.bf16.mxu0 %vm5128_vm0, %v5127_v0 }
 0x423   :  { %4566 = vmatprep.subr.bf16.mxu0 %v4780_v61 }
 0x427   :  { %4563 = vmatmul.mubr.msk.bf16.vlgmr.msra.gmra.mxu1 %vm228_vm2, %v5348_v16 }
 0x428   :  { %4575 = vmatpush3.bf16.msra.mxu1 %v4779_v23  ;;  %4578 = vmatprep.mubr.msk.bf16.mxu1 %vm207_vm1, %v5654_v10 }
 0x429   :  { %4557 = vmatmul.mubr.msk.bf16.vlgmr.msra.gmra.mxu0 %vm228_vm2, %v5348_v16  ;;  %4576 = vmatprep.subr.bf16.mxu1 %v4781_v24 }
 0x42a   :  { %4567 = vmatpush3.bf16.msra.mxu0 %v4780_v61  ;;  %4570 = vmatprep.mubr.msk.bf16.mxu0 %vm207_vm1, %v5697_v21  ;;  %v4795_v61 = vld [vmem:[#allocation10 + $0x8] sm:$0xff]  }
 0x42b   :  { %4568 = vmatprep.subr.bf16.mxu0 %v4782_v25 }
 0x42c   :  { %4577 = vmatpush3.bf16.msra.mxu1 %v4781_v24  ;;  %v4796_v24 = vld [vmem:[#allocation10 + $0x28] sm:$0xff]  }
 0x42d   :  { %4590 = vmatprep.subr.bf16.mxu1 %v4787_v12 }
 0x42e   :  { %4569 = vmatpush3.bf16.msra.mxu0 %v4782_v25 }
 0x42f   :  { %4579 = vmatmul.mubr.msk.bf16.vlgmr.msra.gmra.mxu1 %vm207_vm1, %v5647_v3  ;;  %4582 = vmatprep.subr.bf16.mxu0 %v4783_v22 }
 0x430   :  { %4591 = vmatpush3.bf16.msra.mxu1 %v4787_v12 }
 0x431   :  { %4571 = vmatmul.mubr.msk.bf16.vlgmr.msra.gmra.mxu0 %vm207_vm1, %v5693_v15  ;;  %4592 = vmatprep.subr.bf16.mxu1 %v4789_v28 }
 0x432   :  { %4583 = vmatpush3.bf16.msra.mxu0 %v4783_v22 }
 0x433   :  { %4584 = vmatprep.subr.bf16.mxu0 %v4784_v5 }
 0x434   :  { %4593 = vmatpush3.bf16.msra.mxu1 %v4789_v28  ;;  %v4798_v28 = vld [vmem:[#allocation10 + $0x20] sm:$0xff]  }
 0x435   :  { %4606 = vmatprep.subr.bf16.mxu1 %v4791_v29 }
 0x436   :  { %4585 = vmatpush3.bf16.msra.mxu0 %v4784_v5 }
 0x437   :  { %4598 = vmatprep.subr.bf16.mxu0 %v4785_v26 }
 0x4cf   :  { %v2104_v30 = vpop.f32.mrf.mxu1 }
 0x4d1   :  { %v2063_v33 = vpop.f32.mrf.mxu0  ;;  %v4528_v34 = vpop.f32.mrf.mxu1 }
 0x4d2   :  { %v4802_v34 = vld [vmem:[#allocation15 + $0x20] sm:$0xff]  }
 0x4d3   :  { %v4522_v36 = vpop.f32.mrf.mxu0  ;;  %v2107_v39 = vpop.f32.mrf.mxu1 }
 0x4d4   :  { %v5735_v43 = vpack.c.bf16 %v2107_v39, %v2104_v30  ;;  %v4800_v30 = vld [vmem:[#allocation15 + $0x10] sm:$0xff]  }
 0x4d5   :  { %v2066_v41 = vpop.f32.mrf.mxu0  ;;  %v4529_v6 = vpop.f32.mrf.mxu1 }
 0x4d6   :  { %v5733_v42 = vpack.c.bf16 %v2066_v41, %v2063_v33  ;;  %v4801_v33 = vld [vmem:[#allocation15 + $0x28] sm:$0xff]  }
 0x4d7   :  { %v4523_v44 = vpop.f32.mrf.mxu0  ;;  %v2188_v45 = vpop.f32.mrf.mxu1 }
 0x4d8   :  { %4586 = vmatprep.mubr.msk.bf16.mxu0 %vm207_vm1, %v5733_v42 }
 0x4d9   :  { %v2147_v47 = vpop.f32.mrf.mxu0  ;;  %v4540_v49 = vpop.f32.mrf.mxu1  ;;  %4587 = vmatmul.mubr.msk.bf16.vlgmr.msra.gmra.mxu0 %vm207_vm1, %v5735_v43 }
 0x4da   :  { %4599 = vmatpush3.bf16.msra.mxu0 %v4785_v26 }
 0x4db   :  { %v4534_v51 = vpop.f32.mrf.mxu0  ;;  %v2191_v48 = vpop.f32.mrf.mxu1  ;;  %4600 = vmatprep.subr.bf16.mxu0 %v4786_v46 }
 0x4dc   :  { %v5743_v31 = vpack.c.bf16 %v2191_v48, %v2188_v45 }
 0x4dd   :  { %v2150_v17 = vpop.f32.mrf.mxu0  ;;  %v4541_v18 = vpop.f32.mrf.mxu1 }
 0x4de   :  { %v5741_v27 = vpack.c.bf16 %v2150_v17, %v2147_v47  ;;  %4601 = vmatpush3.bf16.msra.mxu0 %v4786_v46 }
 0x4df   :  { %v4535_v20 = vpop.f32.mrf.mxu0  ;;  %v2280_v35 = vpop.f32.mrf.mxu1  ;;  %4614 = vmatprep.subr.bf16.mxu0 %v4788_v19 }
 0x4e0   :  { %4602 = vmatprep.mubr.msk.bf16.mxu0 %vm207_vm1, %v5741_v27 }
 0x4e1   :  { %v2239_v4 = vpop.f32.mrf.mxu0  ;;  %v4552_v37 = vpop.f32.mrf.mxu1  ;;  %4603 = vmatmul.mubr.msk.bf16.vlgmr.msra.gmra.mxu0 %vm207_vm1, %v5743_v31 }
 0x4e2   :  { %4615 = vmatpush3.bf16.msra.mxu0 %v4788_v19  ;;  %4618 = vmatprep.mubr.msk.bf16.mxu0 %vm207_vm1, %v5697_v21 }
 0x4e3   :  { %v4546_v56 = vpop.f32.mrf.mxu0  ;;  %v2283_v8 = vpop.f32.mrf.mxu1  ;;  %4616 = vmatprep.subr.bf16.mxu0 %v4790_v54 }
 0x4e4   :  { %v2288_v50 = vpack.c.bf16 %v2283_v8, %v2280_v35 }
 0x4e5   :  { %v2242_v58 = vpop.f32.mrf.mxu0  ;;  %v4553_v40 = vpop.f32.mrf.mxu1 }
 0x4e6   :  { %v2287_v53 = vpack.c.bf16 %v2242_v58, %v2239_v4  ;;  %4617 = vmatpush3.bf16.msra.mxu0 %v4790_v54 }
 0x4e7   :  { %v4547_v59 = vpop.f32.mrf.mxu0  ;;  %v2364_v62 = vpop.f32.mrf.mxu1  ;;  %4630 = vmatprep.subr.bf16.mxu0 %v4792_v38 }
 0x4e8   :  { %4594 = vmatprep.mubr.msk.bf16.mxu1 %vm207_vm1, %v2287_v53 }
 0x4e9   :  { %v2323_v52 = vpop.f32.mrf.mxu0  ;;  %v4564_v7 = vpop.f32.mrf.mxu1  ;;  %4595 = vmatmul.mubr.msk.bf16.vlgmr.msra.gmra.mxu1 %vm207_vm1, %v2288_v50  ;;  %4619 = vmatmul.mubr.msk.bf16.vlgmr.msra.gmra.mxu0 %vm207_vm1, %v5693_v15  ;;  %v4797_v15 = vld [vmem:[#allocation10] sm:$0xff]  }
 0x4ea   :  { %4607 = vmatpush3.bf16.msra.mxu1 %v4791_v29  ;;  %4631 = vmatpush3.bf16.msra.mxu0 %v4792_v38  ;;  %v4799_v29 = vld [vmem:[#allocation15 + $0x18] sm:$0xff]  }
 0x4eb   :  { %4634 = vmatprep.mubr.msk.bf16.mxu0 %vm207_vm1, %v5733_v42  ;;  %v4558_v21 = vpop.f32.mrf.mxu0  ;;  %v2367_v23 = vpop.f32.mrf.mxu1  ;;  %4608 = vmatprep.subr.bf16.mxu1 %v4793_v63 }
 0x4ec   :  { %4632 = vmatprep.subr.bf16.mxu0 %v4794_v1  ;;  %v2372_v26 = vpack.c.bf16 %v2367_v23, %v2364_v62 }
 0x4ed   :  { %v2326_v25 = vpop.f32.mrf.mxu0  ;;  %v4565_v22 = vpop.f32.mrf.mxu1 }
 0x4ee   :  { %v2371_v5 = vpack.c.bf16 %v2326_v25, %v2323_v52  ;;  %4609 = vmatpush3.bf16.msra.mxu1 %v4793_v63  ;;  %4633 = vmatpush3.bf16.msra.mxu0 %v4794_v1  ;;  %v5782_v63 = vld [vmem:[%s5893_s16] sm:$0x7] }
 0x4ef   :  { %v4559_v12 = vpop.f32.mrf.mxu0  ;;  %4622 = vmatprep.subr.bf16.mxu1 %v4795_v61  ;;  %4646 = vmatprep.subr.bf16.mxu0 %v4796_v24  ;;  %v4580_v45 = vpop.f32.mrf.mxu1  ;;  %v2822_v22 = vrot.slane %v5782_v63, %v993_v2 }
 0x4f0   :  { %4610 = vmatprep.mubr.msk.bf16.mxu1 %vm207_vm1, %v2371_v5 }
 0x4f1   :  { %4611 = vmatmul.mubr.msk.bf16.vlgmr.msra.gmra.mxu1 %vm207_vm1, %v2372_v26  ;;  %4635 = vmatmul.mubr.msk.bf16.vlgmr.msra.gmra.mxu0 %vm207_vm1, %v5735_v43  ;;  %v4572_v36 = vpop.f32.mrf.mxu0  ;;  %v2500_v49 = vpop.f32.mrf.mxu1 }
 0x4f2   :  { %4623 = vmatpush3.bf16.msra.mxu1 %v4795_v61  ;;  %4626 = vmatprep.mubr.msk.bf16.mxu1 %vm207_vm1, %v5654_v10  ;;  %v2509_v54 = vadd.f32 %v4580_v45, %v4572_v36 }
 0x4f3   :  { %4647 = vmatpush3.bf16.msra.mxu0 %v4796_v24  ;;  %4650 = vmatprep.mubr.msk.bf16.mxu0 %vm207_vm1, %v5741_v27  ;;  %v2433_v39 = vpop.f32.mrf.mxu0  ;;  %v4581_v19 = vpop.f32.mrf.mxu1 }
 0x4f4   :  { %4624 = vmatprep.subr.bf16.mxu1 %v4797_v15  ;;  %4648 = vmatprep.subr.bf16.mxu0 %v4798_v28  ;;  %v2501_v56 = vadd.f32 %v2500_v49, %v2433_v39 }
 0x4f5   :  { %v4573_v41 = vpop.f32.mrf.mxu0  ;;  %v2503_v20 = vpop.f32.mrf.mxu1 }
 0x4f6   :  { %4625 = vmatpush3.bf16.msra.mxu1 %v4797_v15  ;;  %v2512_v40 = vadd.f32 %v4581_v19, %v4573_v41 }
 0x4f7   :  { %4649 = vmatpush3.bf16.msra.mxu0 %v4798_v28  ;;  %4638 = vmatprep.subr.bf16.mxu1 %v4799_v29  ;;  %v2436_v6 = vpop.f32.mrf.mxu0 }
 0x4f8   :  { %4662 = vmatprep.subr.bf16.mxu0 %v5127_v0  ;;  %v2504_v1 = vadd.f32 %v2503_v20, %v2436_v6 }
 0x4f9   :  { %4627 = vmatmul.mubr.msk.bf16.vlgmr.msra.gmra.mxu1 %vm207_vm1, %v5647_v3 }
 0x4fa   :  { %4651 = vmatmul.mubr.msk.bf16.vlgmr.msra.gmra.mxu0 %vm207_vm1, %v5743_v31  ;;  %4639 = vmatpush3.bf16.msra.mxu1 %v4799_v29 }
 0x4fb   :  { %4642 = vmatprep.mubr.msk.bf16.mxu1 %vm207_vm1, %v2287_v53  ;;  %4640 = vmatprep.subr.bf16.mxu1 %v4800_v30 }
 0x4fc   :  { %4664 = vmatprep.mubr.msk.bf16.mxu0 %vm5128_vm0, %v5127_v0 }
 0x4fe   :  { %4641 = vmatpush3.bf16.msra.mxu1 %v4800_v30 }
 0x4ff   :  { %4654 = vmatprep.subr.bf16.mxu1 %v4801_v33 }
 0x501   :  { %4643 = vmatmul.mubr.msk.bf16.vlgmr.msra.gmra.mxu1 %vm207_vm1, %v2288_v50 }
 0x502   :  { %4655 = vmatpush3.bf16.msra.mxu1 %v4801_v33  ;;  %4658 = vmatprep.mubr.msk.bf16.mxu1 %vm207_vm1, %v2371_v5 }
 0x503   :  { %4656 = vmatprep.subr.bf16.mxu1 %v4802_v34 }
 0x506   :  { %4657 = vmatpush3.bf16.msra.mxu1 %v4802_v34 }
 0x507   :  { %4668 = vmatprep.subr.bf16.mxu1 %v5127_v0 }
 0x509   :  { %4659 = vmatmul.mubr.msk.bf16.vlgmr.msra.gmra.mxu1 %vm207_vm1, %v2372_v26 }
 0x50a   :  { %4670 = vmatprep.mubr.msk.bf16.mxu1 %vm5128_vm0, %v5127_v0 }
 0x599   :  { %v4588_v44 = vpop.f32.mrf.mxu0 }
 0x59a   :  { %v2589_v8 = vadd.f32 %v4588_v44, %v2509_v54 }
 0x59b   :  { %v2572_v46 = vpop.f32.mrf.mxu0 }
 0x59c   :  { %v2587_v53 = vadd.f32 %v2572_v46, %v2501_v56 }
 0x59d   :  { %v4589_v47 = vpop.f32.mrf.mxu0 }
 0x59e   :  { %v2590_v52 = vadd.f32 %v4589_v47, %v2512_v40 }
 0x59f   :  { %v2575_v51 = vpop.f32.mrf.mxu0 }
 0x5a0   :  { %v2588_v61 = vadd.f32 %v2575_v51, %v2504_v1 }
 0x5a1   :  { %v4604_v48 = vpop.f32.mrf.mxu0 }
 0x5a3   :  { %v2724_v17 = vpop.f32.mrf.mxu0 }
 0x5a5   :  { %v4605_v18 = vpop.f32.mrf.mxu0 }
 0x5a7   :  { %v2727_v35 = vpop.f32.mrf.mxu0 }
 0x5a9   :  { %v4596_v4 = vpop.f32.mrf.mxu1  ;;  %v4620_v37 = vpop.f32.mrf.mxu0 }
 0x5aa   :  { %v2665_v50 = vadd.f32 %v4596_v4, %v2589_v8 }
 0x5ab   :  { %v2648_v38 = vpop.f32.mrf.mxu1  ;;  %v2905_v58 = vpop.f32.mrf.mxu0 }
 0x5ac   :  { %v2663_v7 = vadd.f32 %v2648_v38, %v2587_v53  ;;  %v2741_v25 = vadd.f32 %v4604_v48, %v2665_v50 }
 0x5ad   :  { %v4597_v59 = vpop.f32.mrf.mxu1  ;;  %v4621_v62 = vpop.f32.mrf.mxu0 }
 0x5ae   :  { %v2666_v24 = vadd.f32 %v4597_v59, %v2590_v52  ;;  %v2739_v28 = vadd.f32 %v2724_v17, %v2663_v7 }
 0x5af   :  { %v2651_v21 = vpop.f32.mrf.mxu1  ;;  %v2908_v23 = vpop.f32.mrf.mxu0 }
 0x5b0   :  { %v2664_v12 = vadd.f32 %v2651_v21, %v2588_v61  ;;  %v2742_v36 = vadd.f32 %v4605_v18, %v2666_v24 }
 0x5b1   :  { %v4612_v5 = vpop.f32.mrf.mxu1  ;;  %v4636_v26 = vpop.f32.mrf.mxu0 }
 0x5b2   :  { %v2817_v15 = vadd.f32 %v4612_v5, %v2741_v25  ;;  %v2740_v45 = vadd.f32 %v2727_v35, %v2664_v12 }
 0x5b3   :  { %v2800_v29 = vpop.f32.mrf.mxu1  ;;  %v3032_v30 = vpop.f32.mrf.mxu0 }
 0x5b4   :  { %v2825_v33 = vadd.f32 %v2822_v22, %v2817_v15  ;;  %v2815_v34 = vadd.f32 %v2800_v29, %v2739_v28 }
 0x5b5   :  { %v4613_v39 = vpop.f32.mrf.mxu1  ;;  %v4637_v46 = vpop.f32.mrf.mxu0 }
 0x5b6   :  { %v4075_v41 = vmul.f32 -1.442695, %v2825_v33  ;;  %v2823_v6 = vadd.f32 %v2822_v22, %v2815_v34  ;;  %v2818_v44 = vadd.f32 %v4613_v39, %v2742_v36 }
 0x5b7   :  { %v2803_v47 = vpop.f32.mrf.mxu1  ;;  %v3035_v54 = vpop.f32.mrf.mxu0 }
 0x5b8   :  { %4855 = vpow2.f32 %v4075_v41  ;;  %v4073_v49 = vmul.f32 -1.442695, %v2823_v6  ;;  %v2826_v2 = vadd.f32 %v2822_v22, %v2818_v44  ;;  %v2816_v51 = vadd.f32 %v2803_v47, %v2740_v45 }
 0x5b9   :  { %v4628_v48 = vpop.f32.mrf.mxu1 }
 0x5ba   :  { %4857 = vpow2.f32 %v4073_v49  ;;  %v4076_v19 = vmul.f32 -1.442695, %v2826_v2  ;;  %v2824_v17 = vadd.f32 %v2822_v22, %v2816_v51  ;;  %v2975_v20 = vadd.f32 %v4628_v48, %v4620_v37  ;;  %v4652_v53 = vpop.f32.mrf.mxu0 }
 0x5bb   :  { %v2966_v4 = vpop.f32.mrf.mxu1 }
 0x5bc   :  { %4859 = vpow2.f32 %v4076_v19  ;;  %v4074_v18 = vmul.f32 -1.442695, %v2824_v17  ;;  %v2967_v56 = vadd.f32 %v2966_v4, %v2905_v58  ;;  %v3049_v8 = vadd.f32 %v4636_v26, %v2975_v20  ;;  %v3172_v61 = vpop.f32.mrf.mxu0 }
 0x5bd   :  { %v4629_v38 = vpop.f32.mrf.mxu1 }
 0x5be   :  { %4861 = vpow2.f32 %v4074_v18  ;;  %v2978_v35 = vadd.f32 %v4629_v38, %v4621_v62  ;;  %v3047_v40 = vadd.f32 %v3032_v30, %v2967_v56  ;;  %v4653_v28 = vpop.f32.mrf.mxu0  ;;  %v4803_v56 = vld [vmem:[#allocation12 + $0x8] sm:$0xff]   ;;  %v4805_v38 = vld [vmem:[#allocation12] sm:$0xff]  }
 0x5bf   :  { %v2969_v50 = vpop.f32.mrf.mxu1 }
 0x5c0   :  { %v2970_v59 = vadd.f32 %v2969_v50, %v2908_v23  ;;  %v3050_v1 = vadd.f32 %v4637_v46, %v2978_v35  ;;  %v4806_v35 = vld [vmem:[#allocation16] sm:$0xff]   ;;  %v3175_v50 = vpop.f32.mrf.mxu0 }
 0x5c1   :  { %v4644_v52 = vpop.f32.mrf.mxu1 }
 0x5c2   :  { %v3119_v7 = vadd.f32 %v4644_v52, %v3049_v8  ;;  %v3048_v21 = vadd.f32 %v3035_v54, %v2970_v59  ;;  %v4804_v8 = vld [vmem:[#allocation16 + $0x8] sm:$0xff]  }
 0x5c3   :  { %v3102_v24 = vpop.f32.mrf.mxu1 }
 0x5c4   :  { %v3117_v37 = vadd.f32 %v3102_v24, %v3047_v40  ;;  %v3189_v25 = vadd.f32 %v4652_v53, %v3119_v7  ;;  %v4813_v40 = vld [vmem:[#allocation16 + $0x28] sm:$0xff]  }
 0x5c5   :  { %v4856_v22 = vpop.eup %4855  ;;  %v4645_v5 = vpop.f32.mrf.mxu1 }
 0x5c6   :  { %v2841_v12 = vadd.f32 1.0, %v4856_v22  ;;  %v3120_v58 = vadd.f32 %v4645_v5, %v3050_v1  ;;  %v3187_v26 = vadd.f32 %v3172_v61, %v3117_v37 }
 0x5c7   :  { %v4858_v15 = vpop.eup %4857  ;;  %v3105_v62 = vpop.f32.mrf.mxu1 }
 0x5c8   :  { %v2839_v29 = vadd.f32 1.0, %v4858_v15  ;;  %v5787_v30 = vadd.f32 %v3105_v62, %v3048_v21  ;;  %v3190_v23 = vadd.f32 %v4653_v28, %v3120_v58  ;;  %4863 = vrcp.f32 %v2841_v12 }
 0x5c9   :  { %v4860_v33 = vpop.eup %4859  ;;  %v4660_v34 = vpop.f32.mrf.mxu1 }
 0x5ca   :  { %v2842_v36 = vadd.f32 1.0, %v4860_v33  ;;  %v5789_v39 = vadd.f32 %v4660_v34, %v3189_v25  ;;  %4865 = vrcp.f32 %v2839_v29  ;;  %v4814_v25 = vld [vmem:[#allocation16 + $0x20] sm:$0xff]  }
 0x5cb   :  { %v4862_v41 = vpop.eup %4861  ;;  %v3242_v6 = vpop.f32.mrf.mxu1 }
 0x5cc   :  { %4867 = vrcp.f32 %v2842_v36  ;;  %v2840_v44 = vadd.f32 1.0, %v4862_v41  ;;  %v5791_v45 = vadd.f32 %v3242_v6, %v3187_v26  ;;  %v3264_v36 = vrot.slane %v5782_v63, %v1399_v32 }
 0x5cd   :  { %v4661_v46 = vpop.f32.mrf.mxu1  ;;  %v3188_v41 = vadd.f32 %v3175_v50, %v5787_v30 }
 0x5ce   :  { %4869 = vrcp.f32 %v2840_v44  ;;  %v5793_v47 = vadd.f32 %v4661_v46, %v3190_v23  ;;  %v3267_v44 = vadd.f32 %v3264_v36, %v5789_v39  ;;  %v3265_v46 = vadd.f32 %v3264_v36, %v5791_v45 }
 0x5cf   :  { %v3245_v53 = vpop.f32.mrf.mxu1 }
 0x5d5   :  { %v4864_v49 = vpop.eup %4863 }
 0x5d6   :  { %v3295_v48 = vmul.f32 %v4864_v49, %v5670_v11  ;;  %v3258_v49 = vadd.f32 %v3245_v53, %v3188_v41 }
 0x5d7   :  { %v4866_v2 = vpop.eup %4865 }
 0x5d8   :  { %v3293_v54 = vmul.f32 %v4866_v2, %v5684_v57  ;;  %v3268_v2 = vadd.f32 %v3264_v36, %v5793_v47 }
 0x5d9   :  { %v4868_v51 = vpop.eup %4867 }
 0x5da   :  { %v3296_v19 = vmul.f32 %v4868_v51, %v5675_v13 }
 0x5db   :  { %v4870_v17 = vpop.eup %4869 }
 0x5dc   :  { %v3298_v20 = vpack.c.bf16 %v3296_v19, %v3295_v48  ;;  %v3294_v4 = vmul.f32 %v4870_v17, %v5689_v14  ;;  %v4103_v48 = vmul.f32 -1.442695, %v3267_v44  ;;  %v4101_v19 = vmul.f32 -1.442695, %v3265_v46 }
 0x5dd   :  { %v3266_v17 = vadd.f32 %v3264_v36, %v3258_v49 }
 0x5de   :  { %4669 = vmatpush3.bf16.msra.mxu1 %v3298_v20  ;;  %v3297_v18 = vpack.c.bf16 %v3294_v4, %v3293_v54  ;;  %v4104_v54 = vmul.f32 -1.442695, %v3268_v2  ;;  %4871 = vpow2.f32 %v4103_v48 }
 0x5df   :  { %4680 = vmatprep.subr.bf16.mxu1 %v5127_v0  ;;  %4873 = vpow2.f32 %v4101_v19  ;;  %v4102_v32 = vmul.f32 -1.442695, %v3266_v17 }
 0x5e0   :  { %4663 = vmatpush3.bf16.msra.mxu0 %v3297_v18  ;;  %4875 = vpow2.f32 %v4104_v54 }
 0x5e1   :  { %4671 = vmatmul.mubr.msk.bf16.vlgmr.msra.gmra.mxu1 %vm228_vm2, %v5303_v9  ;;  %4674 = vmatprep.subr.bf16.mxu0 %v5127_v0  ;;  %4877 = vpow2.f32 %v4102_v32 }
 0x5e2   :  { %4681 = vmatpush3.bf16.msra.mxu1 %v3298_v20  ;;  %4682 = vmatprep.mubr.msk.bf16.mxu1 %vm5128_vm0, %v5127_v0 }
 0x5e3   :  { %4665 = vmatmul.mubr.msk.bf16.vlgmr.msra.gmra.mxu0 %vm228_vm2, %v5303_v9  ;;  %4694 = vmatprep.subr.bf16.mxu1 %v4803_v56  ;;  %v4807_v9 = vld [vmem:[#allocation12 + $0x18] sm:$0xff]  }
 0x5e4   :  { %4675 = vmatpush3.bf16.msra.mxu0 %v3297_v18  ;;  %4676 = vmatprep.mubr.msk.bf16.mxu0 %vm5128_vm0, %v5127_v0  ;;  %v4808_v0 = vld [vmem:[#allocation12 + $0x10] sm:$0xff]  }
 0x5e5   :  { %4686 = vmatprep.subr.bf16.mxu0 %v4804_v8 }
 0x5e9   :  { %4683 = vmatmul.mubr.msk.bf16.vlgmr.msra.gmra.mxu1 %vm228_vm2, %v5348_v16 }
 0x5ea   :  { %4695 = vmatpush3.bf16.msra.mxu1 %v4803_v56  ;;  %4698 = vmatprep.mubr.msk.bf16.mxu1 %vm207_vm1, %v5654_v10  ;;  %v4810_v10 = vld [vmem:[#allocation12 + $0x20] sm:$0xff]  }
 0x5eb   :  { %4677 = vmatmul.mubr.msk.bf16.vlgmr.msra.gmra.mxu0 %vm228_vm2, %v5348_v16  ;;  %4696 = vmatprep.subr.bf16.mxu1 %v4805_v38  ;;  %v4809_v16 = vld [vmem:[#allocation12 + $0x28] sm:$0xff]  }
 0x5ec   :  { %4687 = vmatpush3.bf16.msra.mxu0 %v4804_v8  ;;  %4690 = vmatprep.mubr.msk.bf16.mxu0 %vm207_vm1, %v3297_v18 }
 0x5ed   :  { %4688 = vmatprep.subr.bf16.mxu0 %v4806_v35 }
 0x5ee   :  { %4697 = vmatpush3.bf16.msra.mxu1 %v4805_v38 }
 0x5f0   :  { %4689 = vmatpush3.bf16.msra.mxu0 %v4806_v35 }
 0x5f1   :  { %4699 = vmatmul.mubr.msk.bf16.vlgmr.msra.gmra.mxu1 %vm207_vm1, %v5647_v3  ;;  %4702 = vmatprep.subr.bf16.mxu0 %v4807_v9  ;;  %v4811_v3 = vld [vmem:[#allocation16 + $0x18] sm:$0xff]  }
 0x5f2   :  { %4710 = vmatprep.subr.bf16.mxu1 %v4811_v3 }
 0x5f3   :  { %4691 = vmatmul.mubr.msk.bf16.vlgmr.msra.gmra.mxu0 %vm207_vm1, %v3298_v20  ;;  %4711 = vmatpush3.bf16.msra.mxu1 %v4811_v3 }
 0x5f4   :  { %4703 = vmatpush3.bf16.msra.mxu0 %v4807_v9  ;;  %4706 = vmatprep.mubr.msk.bf16.mxu0 %vm207_vm1, %v5733_v42  ;;  %v4812_v42 = vld [vmem:[#allocation16 + $0x10] sm:$0xff]  }
 0x5f5   :  { %4704 = vmatprep.subr.bf16.mxu0 %v4808_v0  ;;  %4712 = vmatprep.subr.bf16.mxu1 %v4812_v42 }
 0x5f7   :  { %4713 = vmatpush3.bf16.msra.mxu1 %v4812_v42 }
 0x5f8   :  { %4705 = vmatpush3.bf16.msra.mxu0 %v4808_v0  ;;  %4726 = vmatprep.subr.bf16.mxu1 %v4813_v40  ;;  %v4872_v0 = vpop.eup %4871 }
 0x5f9   :  { %4718 = vmatprep.subr.bf16.mxu0 %v4809_v16 }
 0x5fb   :  { %4707 = vmatmul.mubr.msk.bf16.vlgmr.msra.gmra.mxu0 %vm207_vm1, %v5735_v43 }
 0x5fc   :  { %4719 = vmatpush3.bf16.msra.mxu0 %v4809_v16  ;;  %4722 = vmatprep.mubr.msk.bf16.mxu0 %vm207_vm1, %v5741_v27 }
 0x5fd   :  { %4720 = vmatprep.subr.bf16.mxu0 %v4810_v10 }
 0x600   :  { %4721 = vmatpush3.bf16.msra.mxu0 %v4810_v10  ;;  %v4874_v10 = vpop.eup %4873 }
 0x603   :  { %4723 = vmatmul.mubr.msk.bf16.vlgmr.msra.gmra.mxu0 %vm207_vm1, %v5743_v31 }
 0x6a1   :  { %v3374_v43 = vpop.f32.mrf.mxu1 }
 0x6a3   :  { %v3333_v59 = vpop.f32.mrf.mxu0  ;;  %v4672_v1 = vpop.f32.mrf.mxu1 }
 0x6a5   :  { %v4666_v52 = vpop.f32.mrf.mxu0  ;;  %v3377_v27 = vpop.f32.mrf.mxu1 }
 0x6a6   :  { %v3382_v24 = vpack.c.bf16 %v3377_v27, %v3374_v43  ;;  %v4876_v43 = vpop.eup %4875 }
 0x6a7   :  { %v3336_v7 = vpop.f32.mrf.mxu0  ;;  %v4673_v21 = vpop.f32.mrf.mxu1 }
 0x6a8   :  { %v3381_v61 = vpack.c.bf16 %v3336_v7, %v3333_v59  ;;  %v3283_v59 = vadd.f32 1.0, %v4872_v0  ;;  %v3281_v7 = vadd.f32 1.0, %v4874_v10 }
 0x6a9   :  { %v4667_v31 = vpop.f32.mrf.mxu0  ;;  %v3458_v37 = vpop.f32.mrf.mxu1 }
 0x6aa   :  { %4714 = vmatprep.mubr.msk.bf16.mxu1 %vm207_vm1, %v3381_v61  ;;  %v4878_v61 = vpop.eup %4877  ;;  %4879 = vrcp.f32 %v3283_v59 }
 0x6ab   :  { %v3417_v22 = vpop.f32.mrf.mxu0  ;;  %v4684_v5 = vpop.f32.mrf.mxu1  ;;  %4715 = vmatmul.mubr.msk.bf16.vlgmr.msra.gmra.mxu1 %vm207_vm1, %v3382_v24  ;;  %4881 = vrcp.f32 %v3281_v7 }
 0x6ac   :  { %4727 = vmatpush3.bf16.msra.mxu1 %v4813_v40 }
 0x6ad   :  { %v4678_v12 = vpop.f32.mrf.mxu0  ;;  %v3461_v58 = vpop.f32.mrf.mxu1  ;;  %4728 = vmatprep.subr.bf16.mxu1 %v4814_v25 }
 0x6ae   :  { %v3466_v62 = vpack.c.bf16 %v3461_v58, %v3458_v37 }
 0x6af   :  { %v3420_v26 = vpop.f32.mrf.mxu0  ;;  %v4685_v15 = vpop.f32.mrf.mxu1 }
 0x6b0   :  { %v3465_v28 = vpack.c.bf16 %v3420_v26, %v3417_v22  ;;  %4729 = vmatpush3.bf16.msra.mxu1 %v4814_v25  ;;  %v3898_v25 = vrot.slane %v5782_v63, %v1997_v60  ;;  %v3284_v22 = vadd.f32 1.0, %v4876_v43 }
 0x6b1   :  { %v4679_v29 = vpop.f32.mrf.mxu0  ;;  %v4700_v20 = vpop.f32.mrf.mxu1 }
 0x6b2   :  { %4730 = vmatprep.mubr.msk.bf16.mxu1 %vm207_vm1, %v3465_v28  ;;  %v3282_v28 = vadd.f32 1.0, %v4878_v61  ;;  %4883 = vrcp.f32 %v3284_v22 }
 0x6b3   :  { %4731 = vmatmul.mubr.msk.bf16.vlgmr.msra.gmra.mxu1 %vm207_vm1, %v3466_v62  ;;  %v4692_v23 = vpop.f32.mrf.mxu0  ;;  %v3588_v18 = vpop.f32.mrf.mxu1 }
 0x6b4   :  { %v3597_v8 = vadd.f32 %v4700_v20, %v4692_v23 }
 0x6b5   :  { %v3527_v33 = vpop.f32.mrf.mxu0  ;;  %v4701_v39 = vpop.f32.mrf.mxu1 }
 0x6b6   :  { %v3589_v35 = vadd.f32 %v3588_v18, %v3527_v33 }
 0x6b7   :  { %v4693_v34 = vpop.f32.mrf.mxu0  ;;  %v3591_v45 = vpop.f32.mrf.mxu1 }
 0x6b8   :  { %v3600_v3 = vadd.f32 %v4701_v39, %v4693_v34  ;;  %v4880_v49 = vpop.eup %4879 }
 0x6b9   :  { %v3530_v6 = vpop.f32.mrf.mxu0  ;;  %v4882_v2 = vpop.eup %4881  ;;  %v3913_v48 = vsub.f32 1.0, %v4880_v49  ;;  %v3909_v20 = vmul.f32 %v4880_v49, %v5670_v11 }
 0x6ba   :  { %v3592_v1 = vadd.f32 %v3591_v45, %v3530_v6 }
 0x6bb   :  { %v4708_v51 = vpop.f32.mrf.mxu0 }
 0x6bc   :  { %v3671_v9 = vadd.f32 %v4708_v51, %v3597_v8 }
 0x6bd   :  { %v3654_v4 = vpop.f32.mrf.mxu0 }
 0x6be   :  { %v3669_v42 = vadd.f32 %v3654_v4, %v3589_v35  ;;  %v3911_v4 = vsub.f32 1.0, %v4882_v2 }
 0x6bf   :  { %v4709_v30 = vpop.f32.mrf.mxu0  ;;  %v4884_v51 = vpop.eup %4883 }
 0x6c0   :  { %v3672_v52 = vadd.f32 %v4709_v30, %v3600_v3  ;;  %v3907_v30 = vmul.f32 %v4882_v2, %v5684_v57  ;;  %v3910_v8 = vmul.f32 %v4884_v51, %v5675_v13 }
 0x6c1   :  { %v3657_v56 = vpop.f32.mrf.mxu0 }
 0x6c2   :  { %v3670_v24 = vadd.f32 %v3657_v56, %v3592_v1  ;;  %v3914_v56 = vsub.f32 1.0, %v4884_v51 }
 0x6c3   :  { %v4724_v38 = vpop.f32.mrf.mxu0 }
 0x6c5   :  { %v3800_v53 = vpop.f32.mrf.mxu0 }
 0x6c7   :  { %v4725_v5 = vpop.f32.mrf.mxu0 }
 0x6c9   :  { %v3803_v34 = vpop.f32.mrf.mxu0 }
 0x76b   :  { %v4716_v47 = vpop.f32.mrf.mxu1 }
 0x76c   :  { %v3747_v40 = vadd.f32 %v4716_v47, %v3671_v9 }
 0x76d   :  { %v3730_v16 = vpop.f32.mrf.mxu1 }
 0x76e   :  { %v3745_v27 = vadd.f32 %v3730_v16, %v3669_v42  ;;  %v3817_v37 = vadd.f32 %v4724_v38, %v3747_v40 }
 0x76f   :  { %v4717_v50 = vpop.f32.mrf.mxu1 }
 0x770   :  { %v3748_v31 = vadd.f32 %v4717_v50, %v3672_v52  ;;  %v3815_v15 = vadd.f32 %v3800_v53, %v3745_v27 }
 0x771   :  { %v3733_v21 = vpop.f32.mrf.mxu1 }
 0x772   :  { %v3746_v58 = vadd.f32 %v3733_v21, %v3670_v24  ;;  %v3818_v33 = vadd.f32 %v4725_v5, %v3748_v31 }
 0x773   :  { %v4732_v12 = vpop.f32.mrf.mxu1 }
 0x774   :  { %v3893_v26 = vadd.f32 %v4732_v12, %v3817_v37  ;;  %v3816_v60 = vadd.f32 %v3803_v34, %v3746_v58 }
 0x775   :  { %v3876_v62 = vpop.f32.mrf.mxu1 }
 0x776   :  { %v3901_v29 = vadd.f32 %v3898_v25, %v3893_v26  ;;  %v3891_v23 = vadd.f32 %v3876_v62, %v3815_v15 }
 0x777   :  { %v4733_v36 = vpop.f32.mrf.mxu1 }
 0x778   :  { %4885 = vtanh.f32 %v3901_v29  ;;  %v3899_v55 = vadd.f32 %v3898_v25, %v3891_v23  ;;  %v3894_v41 = vadd.f32 %v4733_v36, %v3818_v33 }
 0x779   :  { %4887 = vrcp.f32 %v3282_v28  ;;  %v3879_v63 = vpop.f32.mrf.mxu1 }
 0x77a   :  { %4889 = vtanh.f32 %v3899_v55  ;;  %v3902_v6 = vadd.f32 %v3898_v25, %v3894_v41  ;;  %v3892_v44 = vadd.f32 %v3879_v63, %v3816_v60 }
 0x77c   :  { %4891 = vtanh.f32 %v3902_v6  ;;  %v3900_v46 = vadd.f32 %v3898_v25, %v3892_v44 }
 0x77e   :  { %4893 = vtanh.f32 %v3900_v46 }
 0x785   :  { %v4886_v19 = vpop.eup %4885 }
 0x786   :  { %v4888_v17 = vpop.eup %4887  ;;  %v3917_v54 = vmul.f32 %v4886_v19, %v3913_v48 }
 0x787   :  { %v4890_v32 = vpop.eup %4889  ;;  %v3912_v47 = vsub.f32 1.0, %v4888_v17  ;;  %v3908_v9 = vmul.f32 %v4888_v17, %v5689_v14 }
 0x788   :  { %v3921_v18 = vadd.f32 %v3917_v54, %v3909_v20  ;;  %v3915_v39 = vmul.f32 %v4890_v32, %v3911_v4 }
 0x789   :  { %v4892_v45 = vpop.eup %4891 }
 0x78a   :  { %4135 = vst.msk [vmem:[%s5894_s17 + $0x30] sm:$0xff] %vm207_vm1, %v3921_v18  ;;  %3929 = vst.msk [vmem:[%s5895_s18 + $0x10] sm:$0xff] %vm207_vm1, %v3921_v18  ;;  %v3919_v11 = vadd.f32 %v3915_v39, %v3907_v30  ;;  %v3918_v38 = vmul.f32 %v4892_v45, %v3914_v56 }
 0x78b   :  { %v4894_v35 = vpop.eup %4893 }
 0x78c   :  { %4133 = vst.msk [vmem:[%s5894_s17 + $0x20] sm:$0xff] %vm207_vm1, %v3919_v11  ;;  %3927 = vst.msk [vmem:[%s5895_s18] sm:$0xff] %vm207_vm1, %v3919_v11  ;;  %v3922_v57 = vadd.f32 %v3918_v38, %v3910_v8  ;;  %v3916_v0 = vmul.f32 %v4894_v35, %v3912_v47 }
 0x78e   :  { %4136 = vst.msk [vmem:[%s5894_s17 + $0x38] sm:$0xff] %vm207_vm1, %v3922_v57  ;;  %3930 = vst.msk [vmem:[%s5895_s18 + $0x18] sm:$0xff] %vm207_vm1, %v3922_v57  ;;  %v3920_v13 = vadd.f32 %v3916_v0, %v3908_v9 }
 0x790   :  { %4134 = vst.msk [vmem:[%s5894_s17 + $0x28] sm:$0xff] %vm207_vm1, %v3920_v13  ;;  %3928 = vst.msk [vmem:[%s5895_s18 + $0x8] sm:$0xff] %vm207_vm1, %v3920_v13 }
 0x791   :  { %3939 = vsyncpa [#allocation3], 1 }
 0x792   :  { %3940 = vsyncpa [#allocation5], 1 }
 0x793   :  { %3941 = vsyncpa [#allocation8], 1 }
 0x794   :  { %3942 = vsyncpa [#allocation11], 1 }
 0x795   :  { %3943 = vsyncpa [#allocation14], 1 }
 0x796   :  { %3944 = vsyncpa [#allocation17], 1 }

</bundles_post_ra>
